<compile_context>
chip_gen: v5e
topology: v5e:2x2
jax: 0.10.0
libtpu: 0.0.40
codegen_flags: <defaults>
</compile_context>

<pallas_src>
import jax
import jax.numpy as jnp
from jax.experimental import pallas as pl
from jax.experimental.pallas import tpu as pltpu


def _round_up(x, m):
    return ((x + m - 1) // m) * m


# ----------------------------- Pallas kernel --------------------------------
def dkvmn_chunk_kernel(q_ref, qa_ref, keyT_ref, init_vm_ref,
                       weT_ref, be_ref, waT_ref, ba_ref,
                       w1rcT_ref, w1qT_ref, b1_ref, w2_ref, b2_ref,
                       out_ref, vm_scratch, rc_scratch):
    Ts, Bt, Dk = q_ref.shape
    Dv = qa_ref.shape[2]
    Ff = w1qT_ref.shape[1]

    # (Re)initialize the carried value memory at the start of each sequence
    # (chunk index 0 of the current batch tile).
    @pl.when(pl.program_id(1) == 0)
    def _():
        vm_scratch[...] = jnp.broadcast_to(
            init_vm_ref[...][None, :, :], vm_scratch.shape)

    # --- chunk-batched, recurrence-independent projections -------------------
    q2 = q_ref[...].reshape(Ts * Bt, Dk)          # (Ts*B, Dk)
    qa2 = qa_ref[...].reshape(Ts * Bt, Dv)        # (Ts*B, Dv)

    # attention weights for every timestep in the chunk
    sim = jnp.dot(q2, keyT_ref[...], preferred_element_type=jnp.float32)
    sim = sim - jnp.max(sim, axis=1, keepdims=True)
    e = jnp.exp(sim)
    inv = pl.reciprocal(jnp.sum(e, axis=1, keepdims=True), approx=True)
    w_all = (e * inv).reshape(Ts, Bt, -1)         # (Ts, B, M)

    # erase / add signals for every timestep in the chunk
    erase_all = jax.nn.sigmoid(
        jnp.dot(qa2, weT_ref[...], preferred_element_type=jnp.float32)
        + be_ref[...]).reshape(Ts, Bt, Dv)
    add_all = jnp.tanh(
        jnp.dot(qa2, waT_ref[...], preferred_element_type=jnp.float32)
        + ba_ref[...]).reshape(Ts, Bt, Dv)

    # q-half of the read_embed linear (plus bias), hoisted
    qw1 = (jnp.dot(q2, w1qT_ref[...], preferred_element_type=jnp.float32)
           + b1_ref[...])                         # (Ts*B, F)

    # --- true recurrence: weighted read + erase/add memory update ------------
    mem = vm_scratch[...]                         # (B, M, Dv), f32 carry
    for t in range(Ts):                           # static unrolled loop
        w_t = w_all[t]                            # (B, M)
        w3 = w_t[:, :, None]                      # (B, M, 1)
        rc_scratch[t] = jnp.sum(w3 * mem, axis=1)  # read content (B, Dv)
        mem = (mem * (1.0 - w3 * erase_all[t][:, None, :])
               + w3 * add_all[t][:, None, :])
    vm_scratch[...] = mem                         # write carry once per chunk

    # --- chunk-batched prediction head ---------------------------------------
    rc2 = rc_scratch[...].reshape(Ts * Bt, Dv)
    h = jnp.tanh(jnp.dot(rc2, w1rcT_ref[...],
                         preferred_element_type=jnp.float32) + qw1)  # (Ts*B, F)
    # N=1 predict linear as a VPU multiply + lane reduce
    pred = jnp.sum(h.reshape(Ts, Bt, Ff) * w2_ref[...], axis=-1) + b2_ref[...]
    out_ref[...] = pred                           # (Ts, B) lane-dense block


# ----------------------------- wrapper ---------------------------------------
def dkvmn_forward_pallas(q_embed_sbd, qa_embed_sbd, key_memory,
                         init_value_memory, params, *,
                         seq_tile=None, batch_tile=None,
                         compute_dtype=jnp.float32):
    """q_embed_sbd: (S, B, Dk), qa_embed_sbd: (S, B, Dv). Returns logits (S, B).

    compute_dtype=jnp.bfloat16 halves q/qa/weight DMA and uses the bf16 MXU
    path on v6e/v7x (accumulation stays f32; softmax / value memory stay f32).
    """
    S, B, Dk = q_embed_sbd.shape
    Dv = qa_embed_sbd.shape[2]
    M = key_memory.shape[0]
    Ff = params["b1"].shape[-1]

    # sequence chunking (Ts multiple of 8 so (Ts, B) blocks tile legally)
    if seq_tile is None:
        seq_tile = min(_round_up(S, 8), 64)
    Ts = _round_up(seq_tile, 8)
    S_pad = _round_up(S, Ts)
    num_chunks = S_pad // Ts

    # batch padding / tiling (sublane multiple of 8)
    B_pad = _round_up(B, 8)
    if batch_tile is None:
        # Single batch tile by default.  On v7x, set batch_tile to a multiple
        # of 128 (and pad B accordingly) to split the batch across both
        # TensorCores via the "parallel" grid axis.
        batch_tile = B_pad
    Bt = batch_tile
    assert B_pad % Bt == 0 and (Bt == B_pad or Bt % 128 == 0)
    num_btiles = B_pad // Bt

    # pad inputs (zero rows/steps are harmless: they never feed real outputs)
    q_p = jnp.pad(q_embed_sbd,
                  ((0, S_pad - S), (0, B_pad - B), (0, 0))).astype(compute_dtype)
    qa_p = jnp.pad(qa_embed_sbd,
                   ((0, S_pad - S), (0, B_pad - B), (0, 0))).astype(compute_dtype)

    keyT = key_memory.T.astype(compute_dtype)                 # (Dk, M)
    weT = params["W_erase"].T.astype(compute_dtype)           # (Dv, Dv)
    waT = params["W_add"].T.astype(compute_dtype)             # (Dv, Dv)
    w1T = params["W_read_embed"].T                            # (Dv+Dk, F)
    w1rcT = w1T[:Dv, :].astype(compute_dtype)                 # (Dv, F)
    w1qT = w1T[Dv:, :].astype(compute_dtype)                  # (Dk, F)
    w2 = params["W_predict"].reshape(1, Ff).astype(compute_dtype)
    be = params["b_erase"].reshape(1, Dv).astype(jnp.float32)
    ba = params["b_add"].reshape(1, Dv).astype(jnp.float32)
    b1 = params["b1"].reshape(1, Ff).astype(jnp.float32)
    b2 = params["b2"].reshape(1, 1).astype(jnp.float32)
    init_vm = init_value_memory.astype(jnp.float32)

    const = lambda shape: pl.BlockSpec(shape, lambda b, c: (0, 0))

    grid_spec = pltpu.PrefetchScalarGridSpec(
        num_scalar_prefetch=0,
        grid=(num_btiles, num_chunks),          # (parallel batch, serial seq)
        in_specs=[
            pl.BlockSpec((Ts, Bt, Dk), lambda b, c: (c, b, 0)),   # q chunk
            pl.BlockSpec((Ts, Bt, Dv), lambda b, c: (c, b, 0)),   # qa chunk
            const((Dk, M)),                                        # key mem^T
            const((M, Dv)),                                        # init value mem
            const((Dv, Dv)),                                       # W_erase^T
            const((1, Dv)),                                        # b_erase
            const((Dv, Dv)),                                       # W_add^T
            const((1, Dv)),                                        # b_add
            const((Dv, Ff)),                                       # W1_rc^T
            const((Dk, Ff)),                                       # W1_q^T
            const((1, Ff)),                                        # b1
            const((1, Ff)),                                        # W_predict row
            const((1, 1)),                                         # b2
        ],
        out_specs=pl.BlockSpec((Ts, Bt), lambda b, c: (c, b)),
        scratch_shapes=[pltpu.VMEM((Bt, M, Dv), jnp.float32),      # value memory
                        pltpu.VMEM((Ts, Bt, Dv), jnp.float32)],    # read contents
    )

    logits = pl.pallas_call(
        dkvmn_chunk_kernel,
        out_shape=jax.ShapeDtypeStruct((S_pad, B_pad), jnp.float32),
        grid_spec=grid_spec,
        compiler_params=pltpu.CompilerParams(
            dimension_semantics=("parallel", "arbitrary")),
    )(q_p, qa_p, keyT, init_vm, weT, be, waT, ba, w1rcT, w1qT, b1, w2, b2)

    return logits[:S, :B]                       # (S, B)


# ----------------------------- parameter setup -------------------------------
def kaiming_normal(key, shape, fan_in):
    return jax.random.normal(key, shape, dtype=jnp.float32) * jnp.sqrt(2.0 / fan_in)


def make_params(key, n_question, key_embedding_dim, value_embedding_dim,
                memory_size, key_memory_state_dim, value_memory_state_dim,
                final_fc_dim):
    ks = jax.random.split(key, 8)
    params = {}
    # embeddings (padding_idx=0 -> zero row)
    q_emb = kaiming_normal(ks[0], (n_question + 1, key_embedding_dim),
                           key_embedding_dim)
    qa_emb = kaiming_normal(ks[1], (2 * n_question + 1, value_embedding_dim),
                            value_embedding_dim)
    params["q_embed"] = q_emb.at[0].set(0.0)
    params["qa_embed"] = qa_emb.at[0].set(0.0)
    # memories
    params["init_key_memory"] = kaiming_normal(
        ks[2], (memory_size, key_memory_state_dim), key_memory_state_dim)
    params["init_value_memory"] = kaiming_normal(
        ks[3], (memory_size, value_memory_state_dim), value_memory_state_dim)
    # write-head linears
    params["W_erase"] = kaiming_normal(
        ks[4], (value_memory_state_dim, value_memory_state_dim),
        value_memory_state_dim)
    params["b_erase"] = jnp.zeros((value_memory_state_dim,), jnp.float32)
    params["W_add"] = kaiming_normal(
        ks[5], (value_memory_state_dim, value_memory_state_dim),
        value_memory_state_dim)
    params["b_add"] = jnp.zeros((value_memory_state_dim,), jnp.float32)
    # prediction head
    in_dim = value_memory_state_dim + final_fc_dim
    params["W_read_embed"] = kaiming_normal(ks[6], (final_fc_dim, in_dim), in_dim)
    params["b1"] = jnp.zeros((final_fc_dim,), jnp.float32)
    params["W_predict"] = kaiming_normal(ks[7], (1, final_fc_dim), final_fc_dim)
    params["b2"] = jnp.zeros((1,), jnp.float32)
    return params


def net_forward(params, q_data, qa_data, target):
    """Mirrors Net.forward: returns (loss, sigmoid(filtered_pred), filtered_target)."""
    B, S = q_data.shape
    # embedding lookup (glue, plain JAX)
    q_embed_data = params["q_embed"][q_data]          # (B, S, Dk)
    qa_embed_data = params["qa_embed"][qa_data]       # (B, S, Dv)
    # time-major for the kernel grid
    q_sbd = jnp.transpose(q_embed_data, (1, 0, 2))    # (S, B, Dk)
    qa_sbd = jnp.transpose(qa_embed_data, (1, 0, 2))  # (S, B, Dv)

    logits_sb = dkvmn_forward_pallas(
        q_sbd, qa_sbd, params["init_key_memory"],
        params["init_value_memory"], params)           # (S, B)

    # back to PyTorch's (B*S, 1) ordering
    pred_1d = jnp.transpose(logits_sb, (1, 0)).reshape(-1, 1)

    # masked BCE-with-logits (masked_select needs dynamic shapes -> done eagerly)
    mask = target >= 0
    filtered_pred = pred_1d[mask]
    filtered_target = target[mask]
    x, z = filtered_pred, filtered_target
    loss = jnp.mean(jnp.maximum(x, 0.0) - x * z + jnp.log1p(jnp.exp(-jnp.abs(x))))
    return loss, jax.nn.sigmoid(filtered_pred), filtered_target


# ------------------------------------ main -----------------------------------
if __name__ == "__main__":
    # Small shapes consistent with the module. Note key_embedding_dim must equal
    # final_fc_dim (and key_memory_state_dim) for the original forward to typecheck.
    n_question = 10
    B, S = 4, 8
    memory_size = 16
    key_embedding_dim = key_memory_state_dim = final_fc_dim = 32
    value_embedding_dim = value_memory_state_dim = 32

    root = jax.random.PRNGKey(0)
    kp, kq, ka, kt = jax.random.split(root, 4)

    params = make_params(kp, n_question, key_embedding_dim, value_embedding_dim,
                         memory_size, key_memory_state_dim,
                         value_memory_state_dim, final_fc_dim)

    q_data = jax.random.randint(kq, (B, S), 1, n_question + 1, dtype=jnp.int32)
    ans = jax.random.randint(ka, (B, S), 0, 2, dtype=jnp.int32)
    qa_data = q_data + n_question * ans                      # in [1, 2*n_question]
    # target in {-1 (masked), 0, 1}, shape (B*S, 1) like the PyTorch usage
    target = jax.random.randint(kt, (B * S, 1), -1, 2).astype(jnp.float32)

    loss, probs, tgt = net_forward(params, q_data, qa_data, target)
    jax.block_until_ready((loss, probs, tgt))
    print("KERNEL_OK")
</pallas_src>

<mosaic_0001>
module attributes {stable_mosaic.version = 11 : i64} {
  func.func @dkvmn_chunk_kernel(%arg0: i32, %arg1: i32, %arg2: memref<8x8x32xf32, #tpu.memory_space<vmem>>, %arg3: memref<8x8x32xf32, #tpu.memory_space<vmem>>, %arg4: memref<32x16xf32, #tpu.memory_space<vmem>>, %arg5: memref<16x32xf32, #tpu.memory_space<vmem>>, %arg6: memref<32x32xf32, #tpu.memory_space<vmem>>, %arg7: memref<1x32xf32, #tpu.memory_space<vmem>>, %arg8: memref<32x32xf32, #tpu.memory_space<vmem>>, %arg9: memref<1x32xf32, #tpu.memory_space<vmem>>, %arg10: memref<32x32xf32, #tpu.memory_space<vmem>>, %arg11: memref<32x32xf32, #tpu.memory_space<vmem>>, %arg12: memref<1x32xf32, #tpu.memory_space<vmem>>, %arg13: memref<1x32xf32, #tpu.memory_space<vmem>>, %arg14: memref<1x1xf32, #tpu.memory_space<vmem>>, %arg15: memref<8x8xf32, #tpu.memory_space<vmem>>, %arg16: memref<8x16x32xf32, #tpu.memory_space<vmem>>, %arg17: memref<8x8x32xf32, #tpu.memory_space<vmem>>) attributes {dimension_semantics = [#tpu.dimension_semantics<parallel>, #tpu.dimension_semantics<arbitrary>], iteration_bounds = array<i64: 1, 1>, scalar_prefetch = 0 : i64, scratch_operands = 2 : i64, tpu.core_type = #tpu.core_type<tc>, window_params = [{transform_indices = @transform_0, window_bounds = array<i64: 8, 8, 32>}, {transform_indices = @transform_1, window_bounds = array<i64: 8, 8, 32>}, {pipeline_mode = #tpu.pipeline_mode<synchronous>, transform_indices = @transform_2, window_bounds = array<i64: 32, 16>}, {pipeline_mode = #tpu.pipeline_mode<synchronous>, transform_indices = @transform_3, window_bounds = array<i64: 16, 32>}, {pipeline_mode = #tpu.pipeline_mode<synchronous>, transform_indices = @transform_4, window_bounds = array<i64: 32, 32>}, {pipeline_mode = #tpu.pipeline_mode<synchronous>, transform_indices = @transform_5, window_bounds = array<i64: 1, 32>}, {pipeline_mode = #tpu.pipeline_mode<synchronous>, transform_indices = @transform_6, window_bounds = array<i64: 32, 32>}, {pipeline_mode = #tpu.pipeline_mode<synchronous>, transform_indices = @transform_7, window_bounds = array<i64: 1, 32>}, {pipeline_mode = #tpu.pipeline_mode<synchronous>, transform_indices = @transform_8, window_bounds = array<i64: 32, 32>}, {pipeline_mode = #tpu.pipeline_mode<synchronous>, transform_indices = @transform_9, window_bounds = array<i64: 32, 32>}, {pipeline_mode = #tpu.pipeline_mode<synchronous>, transform_indices = @transform_10, window_bounds = array<i64: 1, 32>}, {pipeline_mode = #tpu.pipeline_mode<synchronous>, transform_indices = @transform_11, window_bounds = array<i64: 1, 32>}, {pipeline_mode = #tpu.pipeline_mode<synchronous>, transform_indices = @transform_12, window_bounds = array<i64: 1, 1>}, {transform_indices = @transform_13, window_bounds = array<i64: 8, 8>}]} {
    %c0_i32 = arith.constant 0 : i32
    %0 = arith.cmpi eq, %arg1, %c0_i32 : i32
    %1 = arith.extui %0 : i1 to i32
    %c0_i32_0 = arith.constant 0 : i32
    %2 = arith.cmpi ne, %1, %c0_i32_0 : i32
    scf.if %2 {
      %c0_78 = arith.constant 0 : index
      %c0_79 = arith.constant 0 : index
      %261 = vector.load %arg5[%c0_78, %c0_79] : memref<16x32xf32, #tpu.memory_space<vmem>>, vector<16x32xf32>
      %262 = vector.shape_cast %261 : vector<16x32xf32> to vector<1x16x32xf32>
      %263 = vector.shape_cast %262 : vector<1x16x32xf32> to vector<1x16x32xf32>
      %264 = vector.broadcast %263 : vector<1x16x32xf32> to vector<8x16x32xf32>
      %c0_80 = arith.constant 0 : index
      %c0_81 = arith.constant 0 : index
      %c0_82 = arith.constant 0 : index
      %265 = vector.load %arg16[%c0_80, %c0_81, %c0_82] : memref<8x16x32xf32, #tpu.memory_space<vmem>>, vector<8x16x32xf32>
      tpu.vector_store %arg16[%c0_80, %c0_81, %c0_82], %264 {strides = array<i32>} : memref<8x16x32xf32, #tpu.memory_space<vmem>>, vector<8x16x32xf32>,
    } else {
    }
    %c0 = arith.constant 0 : index
    %c0_1 = arith.constant 0 : index
    %c0_2 = arith.constant 0 : index
    %3 = vector.load %arg2[%c0, %c0_1, %c0_2] : memref<8x8x32xf32, #tpu.memory_space<vmem>>, vector<8x8x32xf32>
    %4 = vector.shape_cast %3 : vector<8x8x32xf32> to vector<64x32xf32>
    %c0_3 = arith.constant 0 : index
    %c0_4 = arith.constant 0 : index
    %c0_5 = arith.constant 0 : index
    %5 = vector.load %arg3[%c0_3, %c0_4, %c0_5] : memref<8x8x32xf32, #tpu.memory_space<vmem>>, vector<8x8x32xf32>
    %6 = vector.shape_cast %5 : vector<8x8x32xf32> to vector<64x32xf32>
    %c0_6 = arith.constant 0 : index
    %c0_7 = arith.constant 0 : index
    %7 = vector.load %arg4[%c0_6, %c0_7] : memref<32x16xf32, #tpu.memory_space<vmem>>, vector<32x16xf32>
    %cst = arith.constant dense<0.000000e+00> : vector<64x16xf32>
    %8 = tpu.matmul %4, %7, %cst {dimension_numbers = #tpu.dot_dimension_numbers<[1], [0], [0], [1], [0, 0, 1, 1], [], []>} : vector<64x32xf32>, vector<32x16xf32>, vector<64x16xf32> -> vector<64x16xf32>
    %cst_8 = arith.constant dense<0xFF800000> : vector<64xf32>
    %9 = vector.multi_reduction <maximumf>, %8, %cst_8 [1] : vector<64x16xf32> to vector<64xf32>
    %10 = vector.shape_cast %9 : vector<64xf32> to vector<64x1xf32>
    %11 = vector.broadcast %10 : vector<64x1xf32> to vector<64x16xf32>
    %12 = arith.subf %8, %11 : vector<64x16xf32>
    %13 = math.exp %12 : vector<64x16xf32>
    %cst_9 = arith.constant dense<0.000000e+00> : vector<64xf32>
    %14 = vector.multi_reduction <add>, %13, %cst_9 [1] : vector<64x16xf32> to vector<64xf32>
    %15 = vector.shape_cast %14 : vector<64xf32> to vector<64x1xf32>
    %16 = tpu.reciprocal %15 {approx = true} : vector<64x1xf32> -> vector<64x1xf32>
    %17 = vector.broadcast %16 : vector<64x1xf32> to vector<64x16xf32>
    %18 = arith.mulf %13, %17 : vector<64x16xf32>
    %19 = vector.shape_cast %18 : vector<64x16xf32> to vector<8x8x16xf32>
    %c0_10 = arith.constant 0 : index
    %c0_11 = arith.constant 0 : index
    %20 = vector.load %arg6[%c0_10, %c0_11] : memref<32x32xf32, #tpu.memory_space<vmem>>, vector<32x32xf32>
    %cst_12 = arith.constant dense<0.000000e+00> : vector<64x32xf32>
    %21 = tpu.matmul %6, %20, %cst_12 {dimension_numbers = #tpu.dot_dimension_numbers<[1], [0], [0], [1], [0, 0, 1, 1], [], []>} : vector<64x32xf32>, vector<32x32xf32>, vector<64x32xf32> -> vector<64x32xf32>
    %c0_13 = arith.constant 0 : index
    %c0_14 = arith.constant 0 : index
    %22 = vector.load %arg7[%c0_13, %c0_14] : memref<1x32xf32, #tpu.memory_space<vmem>>, vector<1x32xf32>
    %23 = vector.broadcast %22 : vector<1x32xf32> to vector<64x32xf32>
    %24 = arith.addf %21, %23 : vector<64x32xf32>
    %25 = arith.negf %24 : vector<64x32xf32>
    %26 = math.exp %25 : vector<64x32xf32>
    %cst_15 = arith.constant 1.000000e+00 : f32
    %27 = vector.broadcast %cst_15 : f32 to vector<64x32xf32>
    %28 = arith.addf %27, %26 : vector<64x32xf32>
    %29 = arith.divf %27, %28 : vector<64x32xf32>
    %30 = vector.shape_cast %29 : vector<64x32xf32> to vector<8x8x32xf32>
    %c0_16 = arith.constant 0 : index
    %c0_17 = arith.constant 0 : index
    %31 = vector.load %arg8[%c0_16, %c0_17] : memref<32x32xf32, #tpu.memory_space<vmem>>, vector<32x32xf32>
    %cst_18 = arith.constant dense<0.000000e+00> : vector<64x32xf32>
    %32 = tpu.matmul %6, %31, %cst_18 {dimension_numbers = #tpu.dot_dimension_numbers<[1], [0], [0], [1], [0, 0, 1, 1], [], []>} : vector<64x32xf32>, vector<32x32xf32>, vector<64x32xf32> -> vector<64x32xf32>
    %c0_19 = arith.constant 0 : index
    %c0_20 = arith.constant 0 : index
    %33 = vector.load %arg9[%c0_19, %c0_20] : memref<1x32xf32, #tpu.memory_space<vmem>>, vector<1x32xf32>
    %34 = vector.broadcast %33 : vector<1x32xf32> to vector<64x32xf32>
    %35 = arith.addf %32, %34 : vector<64x32xf32>
    %36 = math.tanh %35 : vector<64x32xf32>
    %37 = vector.shape_cast %36 : vector<64x32xf32> to vector<8x8x32xf32>
    %c0_21 = arith.constant 0 : index
    %c0_22 = arith.constant 0 : index
    %38 = vector.load %arg11[%c0_21, %c0_22] : memref<32x32xf32, #tpu.memory_space<vmem>>, vector<32x32xf32>
    %cst_23 = arith.constant dense<0.000000e+00> : vector<64x32xf32>
    %39 = tpu.matmul %4, %38, %cst_23 {dimension_numbers = #tpu.dot_dimension_numbers<[1], [0], [0], [1], [0, 0, 1, 1], [], []>} : vector<64x32xf32>, vector<32x32xf32>, vector<64x32xf32> -> vector<64x32xf32>
    %c0_24 = arith.constant 0 : index
    %c0_25 = arith.constant 0 : index
    %40 = vector.load %arg12[%c0_24, %c0_25] : memref<1x32xf32, #tpu.memory_space<vmem>>, vector<1x32xf32>
    %41 = vector.broadcast %40 : vector<1x32xf32> to vector<64x32xf32>
    %42 = arith.addf %39, %41 : vector<64x32xf32>
    %c0_26 = arith.constant 0 : index
    %c0_27 = arith.constant 0 : index
    %c0_28 = arith.constant 0 : index
    %43 = vector.load %arg16[%c0_26, %c0_27, %c0_28] : memref<8x16x32xf32, #tpu.memory_space<vmem>>, vector<8x16x32xf32>
    %44 = vector.extract_strided_slice %19 {offsets = [0, 0, 0], sizes = [1, 8, 16], strides = [1, 1, 1]} : vector<8x8x16xf32> to vector<1x8x16xf32>
    %45 = vector.shape_cast %44 : vector<1x8x16xf32> to vector<8x16xf32>
    %46 = vector.shape_cast %45 : vector<8x16xf32> to vector<8x16x1xf32>
    %47 = vector.broadcast %46 : vector<8x16x1xf32> to vector<8x16x32xf32>
    %48 = arith.mulf %47, %43 : vector<8x16x32xf32>
    %cst_29 = arith.constant dense<0.000000e+00> : vector<8x32xf32>
    %49 = vector.multi_reduction <add>, %48, %cst_29 [1] : vector<8x16x32xf32> to vector<8x32xf32>
    %c0_30 = arith.constant 0 : index
    %c0_31 = arith.constant 0 : index
    %c0_32 = arith.constant 0 : index
    %50 = vector.load %arg17[%c0_30, %c0_31, %c0_32] : memref<8x8x32xf32, #tpu.memory_space<vmem>>, vector<1x8x32xf32>
    %51 = vector.shape_cast %50 : vector<1x8x32xf32> to vector<8x32xf32>
    %52 = vector.shape_cast %49 : vector<8x32xf32> to vector<1x8x32xf32>
    tpu.vector_store %arg17[%c0_30, %c0_31, %c0_32], %52 {strides = array<i32>} : memref<8x8x32xf32, #tpu.memory_space<vmem>>, vector<1x8x32xf32>,
    %53 = vector.extract_strided_slice %30 {offsets = [0, 0, 0], sizes = [1, 8, 32], strides = [1, 1, 1]} : vector<8x8x32xf32> to vector<1x8x32xf32>
    %54 = vector.shape_cast %53 : vector<1x8x32xf32> to vector<8x32xf32>
    %55 = vector.shape_cast %54 : vector<8x32xf32> to vector<8x1x32xf32>
    %56 = vector.broadcast %46 : vector<8x16x1xf32> to vector<8x16x32xf32>
    %57 = vector.broadcast %55 : vector<8x1x32xf32> to vector<8x16x32xf32>
    %58 = arith.mulf %56, %57 : vector<8x16x32xf32>
    %cst_33 = arith.constant 1.000000e+00 : f32
    %59 = vector.broadcast %cst_33 : f32 to vector<8x16x32xf32>
    %60 = arith.subf %59, %58 : vector<8x16x32xf32>
    %61 = arith.mulf %43, %60 : vector<8x16x32xf32>
    %62 = vector.extract_strided_slice %37 {offsets = [0, 0, 0], sizes = [1, 8, 32], strides = [1, 1, 1]} : vector<8x8x32xf32> to vector<1x8x32xf32>
    %63 = vector.shape_cast %62 : vector<1x8x32xf32> to vector<8x32xf32>
    %64 = vector.shape_cast %63 : vector<8x32xf32> to vector<8x1x32xf32>
    %65 = vector.broadcast %46 : vector<8x16x1xf32> to vector<8x16x32xf32>
    %66 = vector.broadcast %64 : vector<8x1x32xf32> to vector<8x16x32xf32>
    %67 = arith.mulf %65, %66 : vector<8x16x32xf32>
    %68 = arith.addf %61, %67 : vector<8x16x32xf32>
    %69 = vector.extract_strided_slice %19 {offsets = [1, 0, 0], sizes = [1, 8, 16], strides = [1, 1, 1]} : vector<8x8x16xf32> to vector<1x8x16xf32>
    %70 = vector.shape_cast %69 : vector<1x8x16xf32> to vector<8x16xf32>
    %71 = vector.shape_cast %70 : vector<8x16xf32> to vector<8x16x1xf32>
    %72 = vector.broadcast %71 : vector<8x16x1xf32> to vector<8x16x32xf32>
    %73 = arith.mulf %72, %68 : vector<8x16x32xf32>
    %cst_34 = arith.constant dense<0.000000e+00> : vector<8x32xf32>
    %74 = vector.multi_reduction <add>, %73, %cst_34 [1] : vector<8x16x32xf32> to vector<8x32xf32>
    %c1 = arith.constant 1 : index
    %c0_35 = arith.constant 0 : index
    %c0_36 = arith.constant 0 : index
    %75 = vector.load %arg17[%c1, %c0_35, %c0_36] : memref<8x8x32xf32, #tpu.memory_space<vmem>>, vector<1x8x32xf32>
    %76 = vector.shape_cast %75 : vector<1x8x32xf32> to vector<8x32xf32>
    %77 = vector.shape_cast %74 : vector<8x32xf32> to vector<1x8x32xf32>
    tpu.vector_store %arg17[%c1, %c0_35, %c0_36], %77 {strides = array<i32>} : memref<8x8x32xf32, #tpu.memory_space<vmem>>, vector<1x8x32xf32>,
    %78 = vector.extract_strided_slice %30 {offsets = [1, 0, 0], sizes = [1, 8, 32], strides = [1, 1, 1]} : vector<8x8x32xf32> to vector<1x8x32xf32>
    %79 = vector.shape_cast %78 : vector<1x8x32xf32> to vector<8x32xf32>
    %80 = vector.shape_cast %79 : vector<8x32xf32> to vector<8x1x32xf32>
    %81 = vector.broadcast %71 : vector<8x16x1xf32> to vector<8x16x32xf32>
    %82 = vector.broadcast %80 : vector<8x1x32xf32> to vector<8x16x32xf32>
    %83 = arith.mulf %81, %82 : vector<8x16x32xf32>
    %cst_37 = arith.constant 1.000000e+00 : f32
    %84 = vector.broadcast %cst_37 : f32 to vector<8x16x32xf32>
    %85 = arith.subf %84, %83 : vector<8x16x32xf32>
    %86 = arith.mulf %68, %85 : vector<8x16x32xf32>
    %87 = vector.extract_strided_slice %37 {offsets = [1, 0, 0], sizes = [1, 8, 32], strides = [1, 1, 1]} : vector<8x8x32xf32> to vector<1x8x32xf32>
    %88 = vector.shape_cast %87 : vector<1x8x32xf32> to vector<8x32xf32>
    %89 = vector.shape_cast %88 : vector<8x32xf32> to vector<8x1x32xf32>
    %90 = vector.broadcast %71 : vector<8x16x1xf32> to vector<8x16x32xf32>
    %91 = vector.broadcast %89 : vector<8x1x32xf32> to vector<8x16x32xf32>
    %92 = arith.mulf %90, %91 : vector<8x16x32xf32>
    %93 = arith.addf %86, %92 : vector<8x16x32xf32>
    %94 = vector.extract_strided_slice %19 {offsets = [2, 0, 0], sizes = [1, 8, 16], strides = [1, 1, 1]} : vector<8x8x16xf32> to vector<1x8x16xf32>
    %95 = vector.shape_cast %94 : vector<1x8x16xf32> to vector<8x16xf32>
    %96 = vector.shape_cast %95 : vector<8x16xf32> to vector<8x16x1xf32>
    %97 = vector.broadcast %96 : vector<8x16x1xf32> to vector<8x16x32xf32>
    %98 = arith.mulf %97, %93 : vector<8x16x32xf32>
    %cst_38 = arith.constant dense<0.000000e+00> : vector<8x32xf32>
    %99 = vector.multi_reduction <add>, %98, %cst_38 [1] : vector<8x16x32xf32> to vector<8x32xf32>
    %c2 = arith.constant 2 : index
    %c0_39 = arith.constant 0 : index
    %c0_40 = arith.constant 0 : index
    %100 = vector.load %arg17[%c2, %c0_39, %c0_40] : memref<8x8x32xf32, #tpu.memory_space<vmem>>, vector<1x8x32xf32>
    %101 = vector.shape_cast %100 : vector<1x8x32xf32> to vector<8x32xf32>
    %102 = vector.shape_cast %99 : vector<8x32xf32> to vector<1x8x32xf32>
    tpu.vector_store %arg17[%c2, %c0_39, %c0_40], %102 {strides = array<i32>} : memref<8x8x32xf32, #tpu.memory_space<vmem>>, vector<1x8x32xf32>,
    %103 = vector.extract_strided_slice %30 {offsets = [2, 0, 0], sizes = [1, 8, 32], strides = [1, 1, 1]} : vector<8x8x32xf32> to vector<1x8x32xf32>
    %104 = vector.shape_cast %103 : vector<1x8x32xf32> to vector<8x32xf32>
    %105 = vector.shape_cast %104 : vector<8x32xf32> to vector<8x1x32xf32>
    %106 = vector.broadcast %96 : vector<8x16x1xf32> to vector<8x16x32xf32>
    %107 = vector.broadcast %105 : vector<8x1x32xf32> to vector<8x16x32xf32>
    %108 = arith.mulf %106, %107 : vector<8x16x32xf32>
    %cst_41 = arith.constant 1.000000e+00 : f32
    %109 = vector.broadcast %cst_41 : f32 to vector<8x16x32xf32>
    %110 = arith.subf %109, %108 : vector<8x16x32xf32>
    %111 = arith.mulf %93, %110 : vector<8x16x32xf32>
    %112 = vector.extract_strided_slice %37 {offsets = [2, 0, 0], sizes = [1, 8, 32], strides = [1, 1, 1]} : vector<8x8x32xf32> to vector<1x8x32xf32>
    %113 = vector.shape_cast %112 : vector<1x8x32xf32> to vector<8x32xf32>
    %114 = vector.shape_cast %113 : vector<8x32xf32> to vector<8x1x32xf32>
    %115 = vector.broadcast %96 : vector<8x16x1xf32> to vector<8x16x32xf32>
    %116 = vector.broadcast %114 : vector<8x1x32xf32> to vector<8x16x32xf32>
    %117 = arith.mulf %115, %116 : vector<8x16x32xf32>
    %118 = arith.addf %111, %117 : vector<8x16x32xf32>
    %119 = vector.extract_strided_slice %19 {offsets = [3, 0, 0], sizes = [1, 8, 16], strides = [1, 1, 1]} : vector<8x8x16xf32> to vector<1x8x16xf32>
    %120 = vector.shape_cast %119 : vector<1x8x16xf32> to vector<8x16xf32>
    %121 = vector.shape_cast %120 : vector<8x16xf32> to vector<8x16x1xf32>
    %122 = vector.broadcast %121 : vector<8x16x1xf32> to vector<8x16x32xf32>
    %123 = arith.mulf %122, %118 : vector<8x16x32xf32>
    %cst_42 = arith.constant dense<0.000000e+00> : vector<8x32xf32>
    %124 = vector.multi_reduction <add>, %123, %cst_42 [1] : vector<8x16x32xf32> to vector<8x32xf32>
    %c3 = arith.constant 3 : index
    %c0_43 = arith.constant 0 : index
    %c0_44 = arith.constant 0 : index
    %125 = vector.load %arg17[%c3, %c0_43, %c0_44] : memref<8x8x32xf32, #tpu.memory_space<vmem>>, vector<1x8x32xf32>
    %126 = vector.shape_cast %125 : vector<1x8x32xf32> to vector<8x32xf32>
    %127 = vector.shape_cast %124 : vector<8x32xf32> to vector<1x8x32xf32>
    tpu.vector_store %arg17[%c3, %c0_43, %c0_44], %127 {strides = array<i32>} : memref<8x8x32xf32, #tpu.memory_space<vmem>>, vector<1x8x32xf32>,
    %128 = vector.extract_strided_slice %30 {offsets = [3, 0, 0], sizes = [1, 8, 32], strides = [1, 1, 1]} : vector<8x8x32xf32> to vector<1x8x32xf32>
    %129 = vector.shape_cast %128 : vector<1x8x32xf32> to vector<8x32xf32>
    %130 = vector.shape_cast %129 : vector<8x32xf32> to vector<8x1x32xf32>
    %131 = vector.broadcast %121 : vector<8x16x1xf32> to vector<8x16x32xf32>
    %132 = vector.broadcast %130 : vector<8x1x32xf32> to vector<8x16x32xf32>
    %133 = arith.mulf %131, %132 : vector<8x16x32xf32>
    %cst_45 = arith.constant 1.000000e+00 : f32
    %134 = vector.broadcast %cst_45 : f32 to vector<8x16x32xf32>
    %135 = arith.subf %134, %133 : vector<8x16x32xf32>
    %136 = arith.mulf %118, %135 : vector<8x16x32xf32>
    %137 = vector.extract_strided_slice %37 {offsets = [3, 0, 0], sizes = [1, 8, 32], strides = [1, 1, 1]} : vector<8x8x32xf32> to vector<1x8x32xf32>
    %138 = vector.shape_cast %137 : vector<1x8x32xf32> to vector<8x32xf32>
    %139 = vector.shape_cast %138 : vector<8x32xf32> to vector<8x1x32xf32>
    %140 = vector.broadcast %121 : vector<8x16x1xf32> to vector<8x16x32xf32>
    %141 = vector.broadcast %139 : vector<8x1x32xf32> to vector<8x16x32xf32>
    %142 = arith.mulf %140, %141 : vector<8x16x32xf32>
    %143 = arith.addf %136, %142 : vector<8x16x32xf32>
    %144 = vector.extract_strided_slice %19 {offsets = [4, 0, 0], sizes = [1, 8, 16], strides = [1, 1, 1]} : vector<8x8x16xf32> to vector<1x8x16xf32>
    %145 = vector.shape_cast %144 : vector<1x8x16xf32> to vector<8x16xf32>
    %146 = vector.shape_cast %145 : vector<8x16xf32> to vector<8x16x1xf32>
    %147 = vector.broadcast %146 : vector<8x16x1xf32> to vector<8x16x32xf32>
    %148 = arith.mulf %147, %143 : vector<8x16x32xf32>
    %cst_46 = arith.constant dense<0.000000e+00> : vector<8x32xf32>
    %149 = vector.multi_reduction <add>, %148, %cst_46 [1] : vector<8x16x32xf32> to vector<8x32xf32>
    %c4 = arith.constant 4 : index
    %c0_47 = arith.constant 0 : index
    %c0_48 = arith.constant 0 : index
    %150 = vector.load %arg17[%c4, %c0_47, %c0_48] : memref<8x8x32xf32, #tpu.memory_space<vmem>>, vector<1x8x32xf32>
    %151 = vector.shape_cast %150 : vector<1x8x32xf32> to vector<8x32xf32>
    %152 = vector.shape_cast %149 : vector<8x32xf32> to vector<1x8x32xf32>
    tpu.vector_store %arg17[%c4, %c0_47, %c0_48], %152 {strides = array<i32>} : memref<8x8x32xf32, #tpu.memory_space<vmem>>, vector<1x8x32xf32>,
    %153 = vector.extract_strided_slice %30 {offsets = [4, 0, 0], sizes = [1, 8, 32], strides = [1, 1, 1]} : vector<8x8x32xf32> to vector<1x8x32xf32>
    %154 = vector.shape_cast %153 : vector<1x8x32xf32> to vector<8x32xf32>
    %155 = vector.shape_cast %154 : vector<8x32xf32> to vector<8x1x32xf32>
    %156 = vector.broadcast %146 : vector<8x16x1xf32> to vector<8x16x32xf32>
    %157 = vector.broadcast %155 : vector<8x1x32xf32> to vector<8x16x32xf32>
    %158 = arith.mulf %156, %157 : vector<8x16x32xf32>
    %cst_49 = arith.constant 1.000000e+00 : f32
    %159 = vector.broadcast %cst_49 : f32 to vector<8x16x32xf32>
    %160 = arith.subf %159, %158 : vector<8x16x32xf32>
    %161 = arith.mulf %143, %160 : vector<8x16x32xf32>
    %162 = vector.extract_strided_slice %37 {offsets = [4, 0, 0], sizes = [1, 8, 32], strides = [1, 1, 1]} : vector<8x8x32xf32> to vector<1x8x32xf32>
    %163 = vector.shape_cast %162 : vector<1x8x32xf32> to vector<8x32xf32>
    %164 = vector.shape_cast %163 : vector<8x32xf32> to vector<8x1x32xf32>
    %165 = vector.broadcast %146 : vector<8x16x1xf32> to vector<8x16x32xf32>
    %166 = vector.broadcast %164 : vector<8x1x32xf32> to vector<8x16x32xf32>
    %167 = arith.mulf %165, %166 : vector<8x16x32xf32>
    %168 = arith.addf %161, %167 : vector<8x16x32xf32>
    %169 = vector.extract_strided_slice %19 {offsets = [5, 0, 0], sizes = [1, 8, 16], strides = [1, 1, 1]} : vector<8x8x16xf32> to vector<1x8x16xf32>
    %170 = vector.shape_cast %169 : vector<1x8x16xf32> to vector<8x16xf32>
    %171 = vector.shape_cast %170 : vector<8x16xf32> to vector<8x16x1xf32>
    %172 = vector.broadcast %171 : vector<8x16x1xf32> to vector<8x16x32xf32>
    %173 = arith.mulf %172, %168 : vector<8x16x32xf32>
    %cst_50 = arith.constant dense<0.000000e+00> : vector<8x32xf32>
    %174 = vector.multi_reduction <add>, %173, %cst_50 [1] : vector<8x16x32xf32> to vector<8x32xf32>
    %c5 = arith.constant 5 : index
    %c0_51 = arith.constant 0 : index
    %c0_52 = arith.constant 0 : index
    %175 = vector.load %arg17[%c5, %c0_51, %c0_52] : memref<8x8x32xf32, #tpu.memory_space<vmem>>, vector<1x8x32xf32>
    %176 = vector.shape_cast %175 : vector<1x8x32xf32> to vector<8x32xf32>
    %177 = vector.shape_cast %174 : vector<8x32xf32> to vector<1x8x32xf32>
    tpu.vector_store %arg17[%c5, %c0_51, %c0_52], %177 {strides = array<i32>} : memref<8x8x32xf32, #tpu.memory_space<vmem>>, vector<1x8x32xf32>,
    %178 = vector.extract_strided_slice %30 {offsets = [5, 0, 0], sizes = [1, 8, 32], strides = [1, 1, 1]} : vector<8x8x32xf32> to vector<1x8x32xf32>
    %179 = vector.shape_cast %178 : vector<1x8x32xf32> to vector<8x32xf32>
    %180 = vector.shape_cast %179 : vector<8x32xf32> to vector<8x1x32xf32>
    %181 = vector.broadcast %171 : vector<8x16x1xf32> to vector<8x16x32xf32>
    %182 = vector.broadcast %180 : vector<8x1x32xf32> to vector<8x16x32xf32>
    %183 = arith.mulf %181, %182 : vector<8x16x32xf32>
    %cst_53 = arith.constant 1.000000e+00 : f32
    %184 = vector.broadcast %cst_53 : f32 to vector<8x16x32xf32>
    %185 = arith.subf %184, %183 : vector<8x16x32xf32>
    %186 = arith.mulf %168, %185 : vector<8x16x32xf32>
    %187 = vector.extract_strided_slice %37 {offsets = [5, 0, 0], sizes = [1, 8, 32], strides = [1, 1, 1]} : vector<8x8x32xf32> to vector<1x8x32xf32>
    %188 = vector.shape_cast %187 : vector<1x8x32xf32> to vector<8x32xf32>
    %189 = vector.shape_cast %188 : vector<8x32xf32> to vector<8x1x32xf32>
    %190 = vector.broadcast %171 : vector<8x16x1xf32> to vector<8x16x32xf32>
    %191 = vector.broadcast %189 : vector<8x1x32xf32> to vector<8x16x32xf32>
    %192 = arith.mulf %190, %191 : vector<8x16x32xf32>
    %193 = arith.addf %186, %192 : vector<8x16x32xf32>
    %194 = vector.extract_strided_slice %19 {offsets = [6, 0, 0], sizes = [1, 8, 16], strides = [1, 1, 1]} : vector<8x8x16xf32> to vector<1x8x16xf32>
    %195 = vector.shape_cast %194 : vector<1x8x16xf32> to vector<8x16xf32>
    %196 = vector.shape_cast %195 : vector<8x16xf32> to vector<8x16x1xf32>
    %197 = vector.broadcast %196 : vector<8x16x1xf32> to vector<8x16x32xf32>
    %198 = arith.mulf %197, %193 : vector<8x16x32xf32>
    %cst_54 = arith.constant dense<0.000000e+00> : vector<8x32xf32>
    %199 = vector.multi_reduction <add>, %198, %cst_54 [1] : vector<8x16x32xf32> to vector<8x32xf32>
    %c6 = arith.constant 6 : index
    %c0_55 = arith.constant 0 : index
    %c0_56 = arith.constant 0 : index
    %200 = vector.load %arg17[%c6, %c0_55, %c0_56] : memref<8x8x32xf32, #tpu.memory_space<vmem>>, vector<1x8x32xf32>
    %201 = vector.shape_cast %200 : vector<1x8x32xf32> to vector<8x32xf32>
    %202 = vector.shape_cast %199 : vector<8x32xf32> to vector<1x8x32xf32>
    tpu.vector_store %arg17[%c6, %c0_55, %c0_56], %202 {strides = array<i32>} : memref<8x8x32xf32, #tpu.memory_space<vmem>>, vector<1x8x32xf32>,
    %203 = vector.extract_strided_slice %30 {offsets = [6, 0, 0], sizes = [1, 8, 32], strides = [1, 1, 1]} : vector<8x8x32xf32> to vector<1x8x32xf32>
    %204 = vector.shape_cast %203 : vector<1x8x32xf32> to vector<8x32xf32>
    %205 = vector.shape_cast %204 : vector<8x32xf32> to vector<8x1x32xf32>
    %206 = vector.broadcast %196 : vector<8x16x1xf32> to vector<8x16x32xf32>
    %207 = vector.broadcast %205 : vector<8x1x32xf32> to vector<8x16x32xf32>
    %208 = arith.mulf %206, %207 : vector<8x16x32xf32>
    %cst_57 = arith.constant 1.000000e+00 : f32
    %209 = vector.broadcast %cst_57 : f32 to vector<8x16x32xf32>
    %210 = arith.subf %209, %208 : vector<8x16x32xf32>
    %211 = arith.mulf %193, %210 : vector<8x16x32xf32>
    %212 = vector.extract_strided_slice %37 {offsets = [6, 0, 0], sizes = [1, 8, 32], strides = [1, 1, 1]} : vector<8x8x32xf32> to vector<1x8x32xf32>
    %213 = vector.shape_cast %212 : vector<1x8x32xf32> to vector<8x32xf32>
    %214 = vector.shape_cast %213 : vector<8x32xf32> to vector<8x1x32xf32>
    %215 = vector.broadcast %196 : vector<8x16x1xf32> to vector<8x16x32xf32>
    %216 = vector.broadcast %214 : vector<8x1x32xf32> to vector<8x16x32xf32>
    %217 = arith.mulf %215, %216 : vector<8x16x32xf32>
    %218 = arith.addf %211, %217 : vector<8x16x32xf32>
    %219 = vector.extract_strided_slice %19 {offsets = [7, 0, 0], sizes = [1, 8, 16], strides = [1, 1, 1]} : vector<8x8x16xf32> to vector<1x8x16xf32>
    %220 = vector.shape_cast %219 : vector<1x8x16xf32> to vector<8x16xf32>
    %221 = vector.shape_cast %220 : vector<8x16xf32> to vector<8x16x1xf32>
    %222 = vector.broadcast %221 : vector<8x16x1xf32> to vector<8x16x32xf32>
    %223 = arith.mulf %222, %218 : vector<8x16x32xf32>
    %cst_58 = arith.constant dense<0.000000e+00> : vector<8x32xf32>
    %224 = vector.multi_reduction <add>, %223, %cst_58 [1] : vector<8x16x32xf32> to vector<8x32xf32>
    %c7 = arith.constant 7 : index
    %c0_59 = arith.constant 0 : index
    %c0_60 = arith.constant 0 : index
    %225 = vector.load %arg17[%c7, %c0_59, %c0_60] : memref<8x8x32xf32, #tpu.memory_space<vmem>>, vector<1x8x32xf32>
    %226 = vector.shape_cast %225 : vector<1x8x32xf32> to vector<8x32xf32>
    %227 = vector.shape_cast %224 : vector<8x32xf32> to vector<1x8x32xf32>
    tpu.vector_store %arg17[%c7, %c0_59, %c0_60], %227 {strides = array<i32>} : memref<8x8x32xf32, #tpu.memory_space<vmem>>, vector<1x8x32xf32>,
    %228 = vector.extract_strided_slice %30 {offsets = [7, 0, 0], sizes = [1, 8, 32], strides = [1, 1, 1]} : vector<8x8x32xf32> to vector<1x8x32xf32>
    %229 = vector.shape_cast %228 : vector<1x8x32xf32> to vector<8x32xf32>
    %230 = vector.shape_cast %229 : vector<8x32xf32> to vector<8x1x32xf32>
    %231 = vector.broadcast %221 : vector<8x16x1xf32> to vector<8x16x32xf32>
    %232 = vector.broadcast %230 : vector<8x1x32xf32> to vector<8x16x32xf32>
    %233 = arith.mulf %231, %232 : vector<8x16x32xf32>
    %cst_61 = arith.constant 1.000000e+00 : f32
    %234 = vector.broadcast %cst_61 : f32 to vector<8x16x32xf32>
    %235 = arith.subf %234, %233 : vector<8x16x32xf32>
    %236 = arith.mulf %218, %235 : vector<8x16x32xf32>
    %237 = vector.extract_strided_slice %37 {offsets = [7, 0, 0], sizes = [1, 8, 32], strides = [1, 1, 1]} : vector<8x8x32xf32> to vector<1x8x32xf32>
    %238 = vector.shape_cast %237 : vector<1x8x32xf32> to vector<8x32xf32>
    %239 = vector.shape_cast %238 : vector<8x32xf32> to vector<8x1x32xf32>
    %240 = vector.broadcast %221 : vector<8x16x1xf32> to vector<8x16x32xf32>
    %241 = vector.broadcast %239 : vector<8x1x32xf32> to vector<8x16x32xf32>
    %242 = arith.mulf %240, %241 : vector<8x16x32xf32>
    %243 = arith.addf %236, %242 : vector<8x16x32xf32>
    %c0_62 = arith.constant 0 : index
    %c0_63 = arith.constant 0 : index
    %c0_64 = arith.constant 0 : index
    %244 = vector.load %arg16[%c0_62, %c0_63, %c0_64] : memref<8x16x32xf32, #tpu.memory_space<vmem>>, vector<8x16x32xf32>
    tpu.vector_store %arg16[%c0_62, %c0_63, %c0_64], %243 {strides = array<i32>} : memref<8x16x32xf32, #tpu.memory_space<vmem>>, vector<8x16x32xf32>,
    %c0_65 = arith.constant 0 : index
    %c0_66 = arith.constant 0 : index
    %c0_67 = arith.constant 0 : index
    %245 = vector.load %arg17[%c0_65, %c0_66, %c0_67] : memref<8x8x32xf32, #tpu.memory_space<vmem>>, vector<8x8x32xf32>
    %246 = vector.shape_cast %245 : vector<8x8x32xf32> to vector<64x32xf32>
    %c0_68 = arith.constant 0 : index
    %c0_69 = arith.constant 0 : index
    %247 = vector.load %arg10[%c0_68, %c0_69] : memref<32x32xf32, #tpu.memory_space<vmem>>, vector<32x32xf32>
    %cst_70 = arith.constant dense<0.000000e+00> : vector<64x32xf32>
    %248 = tpu.matmul %246, %247, %cst_70 {dimension_numbers = #tpu.dot_dimension_numbers<[1], [0], [0], [1], [0, 0, 1, 1], [], []>} : vector<64x32xf32>, vector<32x32xf32>, vector<64x32xf32> -> vector<64x32xf32>
    %249 = arith.addf %248, %42 : vector<64x32xf32>
    %250 = math.tanh %249 : vector<64x32xf32>
    %251 = vector.shape_cast %250 : vector<64x32xf32> to vector<8x8x32xf32>
    %c0_71 = arith.constant 0 : index
    %c0_72 = arith.constant 0 : index
    %252 = vector.load %arg13[%c0_71, %c0_72] : memref<1x32xf32, #tpu.memory_space<vmem>>, vector<1x32xf32>
    %253 = vector.shape_cast %252 : vector<1x32xf32> to vector<1x1x32xf32>
    %254 = vector.broadcast %253 : vector<1x1x32xf32> to vector<8x8x32xf32>
    %255 = arith.mulf %251, %254 : vector<8x8x32xf32>
    %cst_73 = arith.constant dense<0.000000e+00> : vector<8x8xf32>
    %256 = vector.multi_reduction <add>, %255, %cst_73 [2] : vector<8x8x32xf32> to vector<8x8xf32>
    %c0_74 = arith.constant 0 : index
    %c0_75 = arith.constant 0 : index
    %257 = vector.load %arg14[%c0_74, %c0_75] : memref<1x1xf32, #tpu.memory_space<vmem>>, vector<1x1xf32>
    %258 = vector.broadcast %257 : vector<1x1xf32> to vector<8x8xf32>
    %259 = arith.addf %256, %258 : vector<8x8xf32>
    %c0_76 = arith.constant 0 : index
    %c0_77 = arith.constant 0 : index
    %260 = vector.load %arg15[%c0_76, %c0_77] : memref<8x8xf32, #tpu.memory_space<vmem>>, vector<8x8xf32>
    tpu.vector_store %arg15[%c0_76, %c0_77], %259 {strides = array<i32>} : memref<8x8xf32, #tpu.memory_space<vmem>>, vector<8x8xf32>,
    return
  }
  func.func @transform_0(%arg0: i32, %arg1: i32) -> (i32, i32, i32) {
    %c0_i32 = arith.constant 0 : i32
    %c0_i32_0 = arith.constant 0 : i32
    return %arg1, %arg0, %c0_i32 : i32, i32, i32
  }
  func.func @transform_1(%arg0: i32, %arg1: i32) -> (i32, i32, i32) {
    %c0_i32 = arith.constant 0 : i32
    %c0_i32_0 = arith.constant 0 : i32
    return %arg1, %arg0, %c0_i32 : i32, i32, i32
  }
  func.func @transform_2(%arg0: i32, %arg1: i32) -> (i32, i32) {
    %c0_i32 = arith.constant 0 : i32
    %c0_i32_0 = arith.constant 0 : i32
    %c0_i32_1 = arith.constant 0 : i32
    return %c0_i32, %c0_i32_0 : i32, i32
  }
  func.func @transform_3(%arg0: i32, %arg1: i32) -> (i32, i32) {
    %c0_i32 = arith.constant 0 : i32
    %c0_i32_0 = arith.constant 0 : i32
    %c0_i32_1 = arith.constant 0 : i32
    return %c0_i32, %c0_i32_0 : i32, i32
  }
  func.func @transform_4(%arg0: i32, %arg1: i32) -> (i32, i32) {
    %c0_i32 = arith.constant 0 : i32
    %c0_i32_0 = arith.constant 0 : i32
    %c0_i32_1 = arith.constant 0 : i32
    return %c0_i32, %c0_i32_0 : i32, i32
  }
  func.func @transform_5(%arg0: i32, %arg1: i32) -> (i32, i32) {
    %c0_i32 = arith.constant 0 : i32
    %c0_i32_0 = arith.constant 0 : i32
    %c0_i32_1 = arith.constant 0 : i32
    return %c0_i32, %c0_i32_0 : i32, i32
  }
  func.func @transform_6(%arg0: i32, %arg1: i32) -> (i32, i32) {
    %c0_i32 = arith.constant 0 : i32
    %c0_i32_0 = arith.constant 0 : i32
    %c0_i32_1 = arith.constant 0 : i32
    return %c0_i32, %c0_i32_0 : i32, i32
  }
  func.func @transform_7(%arg0: i32, %arg1: i32) -> (i32, i32) {
    %c0_i32 = arith.constant 0 : i32
    %c0_i32_0 = arith.constant 0 : i32
    %c0_i32_1 = arith.constant 0 : i32
    return %c0_i32, %c0_i32_0 : i32, i32
  }
  func.func @transform_8(%arg0: i32, %arg1: i32) -> (i32, i32) {
    %c0_i32 = arith.constant 0 : i32
    %c0_i32_0 = arith.constant 0 : i32
    %c0_i32_1 = arith.constant 0 : i32
    return %c0_i32, %c0_i32_0 : i32, i32
  }
  func.func @transform_9(%arg0: i32, %arg1: i32) -> (i32, i32) {
    %c0_i32 = arith.constant 0 : i32
    %c0_i32_0 = arith.constant 0 : i32
    %c0_i32_1 = arith.constant 0 : i32
    return %c0_i32, %c0_i32_0 : i32, i32
  }
  func.func @transform_10(%arg0: i32, %arg1: i32) -> (i32, i32) {
    %c0_i32 = arith.constant 0 : i32
    %c0_i32_0 = arith.constant 0 : i32
    %c0_i32_1 = arith.constant 0 : i32
    return %c0_i32, %c0_i32_0 : i32, i32
  }
  func.func @transform_11(%arg0: i32, %arg1: i32) -> (i32, i32) {
    %c0_i32 = arith.constant 0 : i32
    %c0_i32_0 = arith.constant 0 : i32
    %c0_i32_1 = arith.constant 0 : i32
    return %c0_i32, %c0_i32_0 : i32, i32
  }
  func.func @transform_12(%arg0: i32, %arg1: i32) -> (i32, i32) {
    %c0_i32 = arith.constant 0 : i32
    %c0_i32_0 = arith.constant 0 : i32
    %c0_i32_1 = arith.constant 0 : i32
    return %c0_i32, %c0_i32_0 : i32, i32
  }
  func.func @transform_13(%arg0: i32, %arg1: i32) -> (i32, i32) {
    %c0_i32 = arith.constant 0 : i32
    return %arg1, %arg0 : i32, i32
  }
}

</mosaic_0001>

<bundles_post_ra>
// kernel: tpu_custom_call.1
= control target key start
LH: loop header
LB: loop body
LE: loop exit
PB: predicated region body
PF: predicated region fallthrough
CT: control target
= control target key end

     0   :  { %s7026_s0 = inlined_call_operand.hbm [shape: f32[8,8,32], index: 0, kind: input, shape index: {}]   ;;  %s7027_s1 = inlined_call_operand.hbm [shape: f32[8,8,32], index: 1, kind: input, shape index: {}]   ;;  %s7028_s2 = inlined_call_operand.vmem [shape: f32[32,16], index: 2, kind: input, shape index: {}]   ;;  %s7029_s3 = inlined_call_operand.vmem [shape: f32[16,32], index: 3, kind: input, shape index: {}]   ;;  %s7030_s4 = inlined_call_operand.vmem [shape: f32[32,32], index: 4, kind: input, shape index: {}]   ;;  %s7031_s5 = inlined_call_operand.vmem [shape: f32[1,32], index: 5, kind: input, shape index: {}]   ;;  %s7032_s6 = inlined_call_operand.hbm [shape: f32[32,32], index: 6, kind: input, shape index: {}]   ;;  %s7033_s7 = inlined_call_operand.vmem [shape: f32[1,32], index: 7, kind: input, shape index: {}]   ;;  %s7034_s8 = inlined_call_operand.hbm [shape: f32[32,32], index: 8, kind: input, shape index: {}]   ;;  %s7035_s9 = inlined_call_operand.hbm [shape: f32[32,32], index: 9, kind: input, shape index: {}]   ;;  %s7036_s10 = inlined_call_operand.vmem [shape: f32[1,32], index: 10, kind: input, shape index: {}]   ;;  %s7037_s11 = inlined_call_operand.vmem [shape: f32[1,32], index: 11, kind: input, shape index: {}]   ;;  %s7038_s12 = inlined_call_operand.<no memory space> [shape: f32[1,1], index: 12, kind: input, shape index: {}]   ;;  %s7039_s13 = inlined_call_operand.hbm [shape: f32[8,8], index: 13, kind: output, shape index: {}]  }
   0x1   :  { %v18_v0 = vstv %s7038_s12 }
   0x2   :  { %19 = vst [vmem:[#allocation4] sm:$0x1] %v18_v0 }
   0x3   :  { %20 = vsyncpa [#allocation6], 0 }
   0x4   :  { %21 = vsyncpa [#allocation9], 0 }
   0x5   :  { %22 = vsyncpa [#allocation12], 0 }
   0x6   :  { %23 = vsyncpa [#allocation7], 0  ;;  %s41_s29 = sshll.u32 %s7027_s1, 4  ;;  %s3970_s30 = smov [#allocation8]   ;;  %s42_s29 = int_to_ptr.hbm [resolvable:$true] %s41_s29 }
   0x7   :  { %s43_s14 = sshll.u32 %s3970_s30, 4  ;;  %s77_s17 = sshll.u32 %s7034_s8, 4  ;;  %s44_s14 = int_to_ptr.vmem [resolvable:$true] %s43_s14  ;;  %s78_s17 = int_to_ptr.hbm [resolvable:$true] %s77_s17 }
   0x8   :  { %s3971_s18 = smov 128   ;;  %s3972_s19 = smov 8  }
   0x9   :  { %49 = dma.hbm_to_vmem [thread:$0]  %s42_s29, 1024, %s44_s14, [#allocation9], %s3971_s18, %s3971_s18, %s3972_s19  }
   0xa   :  { %s3973_s12 = smov [#allocation11]   ;;  %s28_s23 = sshll.u32 %s7026_s0, 4  ;;  %s29_s23 = int_to_ptr.hbm [resolvable:$true] %s28_s23 }
   0xb   :  { %s79_s20 = sshll.u32 %s3973_s12, 4  ;;  %s62_s25 = sshll.u32 %s7032_s6, 4  ;;  %s80_s20 = int_to_ptr.vmem [resolvable:$true] %s79_s20  ;;  %s63_s25 = int_to_ptr.hbm [resolvable:$true] %s62_s25 }
   0xc   :  { %85 = dma.hbm_to_vmem [thread:$0]  %s78_s17, 512, %s80_s20, [#allocation12], %s3971_s18, %s3971_s18, %s3972_s19  }
   0xd   :  { %s3974_s26 = smov [#allocation5]   ;;  %s3975_s8 = smov [#allocation10]  }
   0xe   :  { %s30_s27 = sshll.u32 %s3974_s26, 4  ;;  %s64_s28 = sshll.u32 %s3975_s8, 4  ;;  %s31_s27 = int_to_ptr.vmem [resolvable:$true] %s30_s27  ;;  %s65_s28 = int_to_ptr.vmem [resolvable:$true] %s64_s28 }
   0xf   :  { %36 = dma.hbm_to_vmem [thread:$0]  %s29_s23, 1024, %s31_s27, [#allocation6], %s3971_s18, %s3971_s18, %s3972_s19  }
  0x10   :  { %s90_s14 = sshll.u32 %s7035_s9, 4  ;;  %s3976_s0 = smov [#allocation13]   ;;  %s91_s14 = int_to_ptr.hbm [resolvable:$true] %s90_s14 }
  0x11   :  { %70 = dma.hbm_to_vmem [thread:$0]  %s63_s25, 512, %s65_s28, [#allocation9], %s3971_s18, %s3971_s18, %s3972_s19  }
  0x12   :  { %s92_s15 = sshll.u32 %s3976_s0, 4  ;;  %s93_s15 = int_to_ptr.vmem [resolvable:$true] %s92_s15 }
  0x13   :  { %98 = dma.hbm_to_vmem [thread:$0]  %s91_s14, 512, %s93_s15, [#allocation12], %s3971_s18, %s3971_s18, %s3972_s19  }
  0x14   :  { %3962 = dma.done.wait [#allocation6], 1024  }
  0x15   :  { %3963 = vsyncadd [#allocation6], 4294966272 }
  0x16   :  { %3964 = dma.done.wait [#allocation9], 1536  }
  0x17   :  { %3965 = vsyncadd [#allocation9], 4294965760 }
  0x18   :  { %3966 = dma.done.wait [#allocation12], 1024  }
  0x19   :  { %3967 = vsyncadd [#allocation12], 4294966272  ;;  %v167_v1 = vld [vmem:[%s7028_s2 + $0x18] sm:$0xff]  ;;  %v166_v2 = vld [vmem:[%s7028_s2 + $0x10] sm:$0xff]  ;;  %vm131_vm0 = vcmask 261120   ;;  %vm234_vm1 = vcmask 130048  }
  0x1a   :  { %205 = vmatpush.msra.mxu0 %v167_v1  ;;  %3627 = vmatpush.msra.mxu1 %v167_v1  ;;  %v165_v3 = vld [vmem:[%s7028_s2 + $0x8] sm:$0xff]  ;;  %v164_v4 = vld [vmem:[%s7028_s2] sm:$0xff]  ;;  %v4081_v6 = vld [vmem:[#allocation5 + $0x10] sm:$0xff]  ;;  %vm870_vm2 = vcmask 1041409   ;;  %vm872_vm3 = vcmask 1042434   ;;  %vm874_vm4 = vcmask 1043459  }
  0x1b   :  { %3628 = vmatpush.msra.mxu2 %v167_v1  ;;  %3629 = vmatpush.msra.mxu3 %v167_v1  ;;  %v4079_v5 = vld [vmem:[#allocation5] sm:$0xff]  ;;  %v4087_v8 = vld [vmem:[#allocation5 + $0x30] sm:$0xff]  ;;  %v4095_v9 = vld [vmem:[#allocation5 + $0x8] sm:$0xff]  ;;  %vm876_vm5 = vcmask 1044484   ;;  %vm878_vm6 = vcmask 1045509   ;;  %vm880_vm7 = vcmask 1046534  }
  0x1c   :  { %206 = vmatpush.msra.mxu0 %v166_v2  ;;  %3630 = vmatpush.msra.mxu1 %v166_v2  ;;  %v4083_v7 = vld [vmem:[#allocation5 + $0x20] sm:$0xff]  ;;  %v4097_v10 = vld [vmem:[#allocation5 + $0x18] sm:$0xff]  ;;  %v4099_v11 = vld [vmem:[#allocation5 + $0x28] sm:$0xff]  ;;  %vm882_vm8 = vcmask 1047559   ;;  %s3567_s2 = sshll.u32 %s7039_s13, 4  ;;  %s3568_s2 = int_to_ptr.hbm [resolvable:$true] %s3567_s2 }
  0x1d   :  { %3631 = vmatpush.msra.mxu2 %v166_v2  ;;  %3632 = vmatpush.msra.mxu3 %v166_v2  ;;  %v4103_v12 = vld [vmem:[#allocation5 + $0x38] sm:$0xff]  ;;  %v325_v36 = vld [vmem:[%s7030_s4 + $0x10] sm:$0xff]  ;;  %v324_v40 = vld [vmem:[%s7030_s4 + $0x8] sm:$0xff] }
  0x1e   :  { %207 = vmatpush.msra.mxu0 %v165_v3  ;;  %3633 = vmatpush.msra.mxu1 %v165_v3  ;;  %v326_v35 = vld [vmem:[%s7030_s4 + $0x18] sm:$0xff]  ;;  %v549_v44 = vld [vmem:[#allocation10 + $0x8] sm:$0xff]  ;;  %v323_v47 = vld [vmem:[%s7030_s4] sm:$0xff] }
  0x1f   :  { %3634 = vmatpush.msra.mxu2 %v165_v3  ;;  %3635 = vmatpush.msra.mxu3 %v165_v3  ;;  %v551_v38 = vld [vmem:[#allocation10 + $0x18] sm:$0xff]  ;;  %v550_v41 = vld [vmem:[#allocation10 + $0x10] sm:$0xff]  ;;  %v156_v49 = vld [vmem:[#allocation8] sm:$0xff] }
  0x20   :  { %208 = vmatpush.msra.mxu0 %v164_v4  ;;  %3636 = vmatpush.msra.mxu1 %v164_v4  ;;  %v548_v53 = vld [vmem:[#allocation10] sm:$0xff]  ;;  %v157_v2 = vld [vmem:[#allocation8 + $0x8] sm:$0xff] }
  0x21   :  { %3637 = vmatpush.msra.mxu2 %v164_v4  ;;  %3579 = vmatmul.msk.f32.vlgmr.msra.gmra.mxu0 %vm131_vm0, %v4079_v5 }
  0x22   :  { %3581 = vmatmul.msk.f32.vlgmr.msra.gmra.mxu1 %vm131_vm0, %v4081_v6  ;;  %3583 = vmatmul.msk.f32.vlgmr.msra.gmra.mxu2 %vm131_vm0, %v4083_v7 }
  0x23   :  { %3638 = vmatpush.msra.mxu3 %v164_v4  ;;  %367 = vmatpush.msrb.mxu1 %v326_v35 }
  0x24   :  { %3585 = vmatmul.msk.f32.vlgmr.msra.gmra.mxu3 %vm131_vm0, %v4087_v8  ;;  %568 = vmatpush.msrb.mxu2 %v551_v38 }
  0x25   :  { %368 = vmatpush.msrb.mxu1 %v325_v36 }
  0x26   :  { %569 = vmatpush.msrb.mxu2 %v550_v41 }
  0x27   :  { %369 = vmatpush.msrb.mxu1 %v324_v40 }
  0x28   :  { %570 = vmatpush.msrb.mxu2 %v549_v44  ;;  %v161_v44 = vld [vmem:[#allocation8 + $0x28] sm:$0xff] }
  0x29   :  { %3580 = vmatmul.msk.f32.gmra.mxu0 %vm131_vm0, %v4095_v9  ;;  %370 = vmatpush.msrb.mxu1 %v323_v47 }
  0x2a   :  { %3582 = vmatmul.msk.f32.gmra.mxu1 %vm131_vm0, %v4097_v10  ;;  %3584 = vmatmul.msk.f32.gmra.mxu2 %vm131_vm0, %v4099_v11 }
  0x2b   :  { %571 = vmatpush.msrb.mxu2 %v548_v53 }
  0x2c   :  { %3586 = vmatmul.msk.f32.gmra.mxu3 %vm131_vm0, %v4103_v12 }
  0x32   :  { %3587 = vmatmul.msk.f32.vlgmr.msrb.gmra.mxu1 %vm131_vm0, %v156_v49  ;;  %3603 = vmatmul.msk.f32.vlgmr.msrb.gmra.mxu2 %vm131_vm0, %v156_v49 }
  0x3a   :  { %3588 = vmatmul.msk.f32.gmra.mxu1 %vm131_vm0, %v157_v2  ;;  %3604 = vmatmul.msk.f32.gmra.mxu2 %vm131_vm0, %v157_v2 }
  0x9e   :  { %v210_v13 = vpop.f32.mrf.mxu0 }
  0x9f   :  { %v216_v14 = vpop.f32.mrf.mxu1  ;;  %v235_v15 = vsel %vm234_vm1, %v210_v13, -inf }
  0xa0   :  { %v241_v16 = vsel %vm234_vm1, %v216_v14, -inf  ;;  %236 = vmax.xlane.f32.xlu0 %v235_v15 }
  0xa1   :  { %242 = vmax.xlane.f32.xlu1 %v241_v16 }
  0xa5   :  { %v222_v17 = vpop.f32.mrf.mxu2 }
  0xa6   :  { %v247_v18 = vsel %vm234_vm1, %v222_v17, -inf  ;;  %v4116_v23 = vpop.f32.mrf.mxu0 }
  0xa7   :  { %v228_v19 = vpop.f32.mrf.mxu3  ;;  %248 = vmax.xlane.f32.xlu2 %v247_v18  ;;  %v219_v20 = vpop.f32.mrf.mxu1  ;;  %v238_v26 = vsel %vm234_vm1, %v4116_v23, -inf }
  0xa8   :  { %v244_v21 = vsel %vm234_vm1, %v219_v20, -inf  ;;  %v253_v22 = vsel %vm234_vm1, %v228_v19, -inf }
  0xa9   :  { %245 = vmax.xlane.f32.xlu1 %v244_v21  ;;  %254 = vmax.xlane.f32.xlu0 %v253_v22 }
  0xad   :  { %v225_v24 = vpop.f32.mrf.mxu2 }
  0xae   :  { %v250_v25 = vsel %vm234_vm1, %v225_v24, -inf }
  0xaf   :  { %251 = vmax.xlane.f32.xlu2 %v250_v25  ;;  %v4121_v27 = vpop.f32.mrf.mxu3 }
  0xb0   :  { %v256_v28 = vsel %vm234_vm1, %v4121_v27, -inf }
  0xb1   :  { %239 = vmax.xlane.f32.xlu0 %v238_v26  ;;  %257 = vmax.xlane.f32.xlu1 %v256_v28  ;;  %v158_v26 = vld [vmem:[#allocation8 + $0x10] sm:$0xff]  ;;  %v159_v28 = vld [vmem:[#allocation8 + $0x18] sm:$0xff] }
  0xb2   :  { %3589 = vmatmul.msk.f32.gmra.mxu1 %vm131_vm0, %v158_v26  ;;  %3605 = vmatmul.msk.f32.gmra.mxu2 %vm131_vm0, %v158_v26 }
  0xba   :  { %3590 = vmatmul.msk.f32.gmra.mxu1 %vm131_vm0, %v159_v28  ;;  %3606 = vmatmul.msk.f32.gmra.mxu2 %vm131_vm0, %v159_v28 }
 0x113   :  { %v237_v29 = vpop.xlane.xlu0 %236 }
 0x114   :  { %v243_v30 = vpop.xlane.xlu1 %242  ;;  %v259_v31 = vsub.f32 %v210_v13, %v237_v29 }
 0x115   :  { %v261_v32 = vsub.f32 %v216_v14, %v243_v30 }
 0x116   :  { %v267_v33 = vmul.f32 1.442695, %v259_v31 }
 0x117   :  { %v271_v34 = vmul.f32 1.442695, %v261_v32 }
 0x118   :  { %3718 = vpow2.f32 %v267_v33  ;;  %v160_v33 = vld [vmem:[#allocation8 + $0x20] sm:$0xff] }
 0x119   :  { %3720 = vpow2.f32 %v271_v34  ;;  %3591 = vmatmul.msk.f32.gmra.mxu1 %vm131_vm0, %v160_v33  ;;  %3607 = vmatmul.msk.f32.gmra.mxu2 %vm131_vm0, %v160_v33 }
 0x11a   :  { %v249_v37 = vpop.xlane.xlu2 %248 }
 0x11b   :  { %v263_v39 = vsub.f32 %v222_v17, %v249_v37 }
 0x11c   :  { %v246_v42 = vpop.xlane.xlu1 %245  ;;  %v255_v43 = vpop.xlane.xlu0 %254 }
 0x11d   :  { %v275_v45 = vmul.f32 1.442695, %v263_v39  ;;  %v265_v46 = vsub.f32 %v228_v19, %v255_v43  ;;  %v262_v54 = vsub.f32 %v219_v20, %v246_v42 }
 0x11e   :  { %v4137_v48 = vpop.eup %3718 }
 0x11f   :  { %v4139_v50 = vpop.eup %3720  ;;  %3722 = vpow2.f32 %v275_v45  ;;  %v279_v51 = vmul.f32 1.442695, %v265_v46  ;;  %v283_v52 = vsel %vm234_vm1, %v4137_v48, 0.0  ;;  %v273_v58 = vmul.f32 1.442695, %v262_v54  ;;  %v130_v45 = vld [vmem:[%s7029_s3 + $0x8] sm:$0xff] }
 0x120   :  { %v289_v55 = vsel %vm234_vm1, %v4139_v50, 0.0  ;;  %284 = vadd.xlane.f32.xlu2 %v283_v52  ;;  %133 = vst.msk [vmem:[#allocation2 + $0x8] sm:$0xff] %vm131_vm0, %v130_v45  ;;  %v129_v54 = vld [vmem:[%s7029_s3] sm:$0xff] }
 0x121   :  { %290 = vadd.xlane.f32.xlu1 %v289_v55  ;;  %3724 = vpow2.f32 %v279_v51  ;;  %3592 = vmatmul.msk.f32.gmra.mxu1 %vm131_vm0, %v161_v44  ;;  %135 = vst.msk [vmem:[#allocation2 + $0x18] sm:$0xff] %vm131_vm0, %v130_v45 }
 0x122   :  { %v252_v56 = vpop.xlane.xlu2 %251  ;;  %3608 = vmatmul.msk.f32.gmra.mxu2 %vm131_vm0, %v161_v44  ;;  %137 = vst.msk [vmem:[#allocation2 + $0x28] sm:$0xff] %vm131_vm0, %v130_v45 }
 0x123   :  { %v264_v57 = vsub.f32 %v225_v24, %v252_v56  ;;  %139 = vst.msk [vmem:[#allocation2 + $0x38] sm:$0xff] %vm131_vm0, %v130_v45 }
 0x124   :  { %v240_v59 = vpop.xlane.xlu0 %239  ;;  %v258_v60 = vpop.xlane.xlu1 %257  ;;  %141 = vst.msk [vmem:[#allocation2 + $0x48] sm:$0xff] %vm131_vm0, %v130_v45 }
 0x125   :  { %v4147_v61 = vpop.eup %3722  ;;  %v277_v62 = vmul.f32 1.442695, %v264_v57  ;;  %v260_v63 = vsub.f32 %v4116_v23, %v240_v59  ;;  %v266_v0 = vsub.f32 %v4121_v27, %v258_v60  ;;  %v7040_v23 = vlaneseq  ;;  %143 = vst.msk [vmem:[#allocation2 + $0x58] sm:$0xff] %vm131_vm0, %v130_v45 }
 0x126   :  { %v295_v1 = vsel %vm234_vm1, %v4147_v61, 0.0  ;;  %145 = vst.msk [vmem:[#allocation2 + $0x68] sm:$0xff] %vm131_vm0, %v130_v45 }
 0x127   :  { %3726 = vpow2.f32 %v277_v62  ;;  %v269_v3 = vmul.f32 1.442695, %v260_v63  ;;  %296 = vadd.xlane.f32.xlu0 %v295_v1  ;;  %v4153_v4 = vpop.eup %3724  ;;  %v281_v14 = vmul.f32 1.442695, %v266_v0  ;;  %v4176_v24 = vshrl.u32 %v7040_v23, 7  ;;  %147 = vst.msk [vmem:[#allocation2 + $0x78] sm:$0xff] %vm131_vm0, %v130_v45 }
 0x128   :  { %3728 = vpow2.f32 %v273_v58  ;;  %v301_v13 = vsel %vm234_vm1, %v4153_v4, 0.0  ;;  %132 = vst.msk [vmem:[#allocation2] sm:$0xff] %vm131_vm0, %v129_v54 }
 0x129   :  { %3730 = vpow2.f32 %v269_v3  ;;  %302 = vadd.xlane.f32.xlu2 %v301_v13  ;;  %3650 = vset.pattern.permute.xlu0 %v4176_v24  ;;  %v4181_v25 = vadd.s32 8, %v4176_v24  ;;  %134 = vst.msk [vmem:[#allocation2 + $0x10] sm:$0xff] %vm131_vm0, %v129_v54 }
 0x12a   :  { %3732 = vpow2.f32 %v281_v14  ;;  %3648 = vset.pattern.permute.xlu1 %v4176_v24  ;;  %136 = vst.msk [vmem:[#allocation2 + $0x20] sm:$0xff] %vm131_vm0, %v129_v54 }
 0x12b   :  { %3649 = vset.pattern.permute.xlu2 %v4181_v25  ;;  %138 = vst.msk [vmem:[#allocation2 + $0x30] sm:$0xff] %vm131_vm0, %v129_v54 }
 0x12c   :  { %140 = vst.msk [vmem:[#allocation2 + $0x40] sm:$0xff] %vm131_vm0, %v129_v54 }
 0x12d   :  { %v4159_v15 = vpop.eup %3726  ;;  %142 = vst.msk [vmem:[#allocation2 + $0x50] sm:$0xff] %vm131_vm0, %v129_v54 }
 0x12e   :  { %v4161_v16 = vpop.eup %3728  ;;  %v298_v17 = vsel %vm234_vm1, %v4159_v15, 0.0  ;;  %144 = vst.msk [vmem:[#allocation2 + $0x60] sm:$0xff] %vm131_vm0, %v129_v54 }
 0x12f   :  { %v4165_v18 = vpop.eup %3730  ;;  %299 = vadd.xlane.f32.xlu1 %v298_v17  ;;  %v292_v20 = vsel %vm234_vm1, %v4161_v16, 0.0  ;;  %146 = vst.msk [vmem:[#allocation2 + $0x70] sm:$0xff] %vm131_vm0, %v129_v54 }
 0x130   :  { %v286_v19 = vsel %vm234_vm1, %v4165_v18, 0.0  ;;  %v4171_v21 = vpop.eup %3732  ;;  %v4295_v33 = vld [vmem:[#allocation2 + $0x10] sm:$0xff] }
 0x131   :  { %287 = vadd.xlane.f32.xlu0 %v286_v19  ;;  %293 = vadd.xlane.f32.xlu2 %v292_v20  ;;  %v304_v22 = vsel %vm234_vm1, %v4171_v21, 0.0 }
 0x139   :  { %305 = vadd.xlane.f32.xlu0 %v304_v22 }
 0x193   :  { %v285_v27 = vpop.xlane.xlu2 %284 }
 0x194   :  { %3734 = vrcp.f32 %v285_v27  ;;  %v291_v37 = vpop.xlane.xlu1 %290 }
 0x195   :  { %3736 = vrcp.f32 %v291_v37  ;;  %v4307_v37 = vld [vmem:[#allocation2 + $0x28] sm:$0xff] }
 0x19a   :  { %v3735_v29 = vpop.eup %3734  ;;  %v297_v49 = vpop.xlane.xlu0 %296 }
 0x19b   :  { %v315_v30 = vmul.f32 %v3735_v29, %v4137_v48  ;;  %v3737_v39 = vpop.eup %3736  ;;  %v162_v48 = vld [vmem:[#allocation8 + $0x30] sm:$0xff]  ;;  %3738 = vrcp.f32 %v297_v49  ;;  %v4329_v49 = vld [vmem:[#allocation2 + $0x48] sm:$0xff] }
 0x19c   :  { %v4196_v40 = vmul.f32 %v3737_v39, %v4139_v50  ;;  %3593 = vmatmul.msk.f32.gmra.mxu1 %vm131_vm0, %v162_v48  ;;  %3609 = vmatmul.msk.f32.gmra.mxu2 %vm131_vm0, %v162_v48  ;;  %v303_v56 = vpop.xlane.xlu2 %302  ;;  %7267 = vst [vmem:[#allocation22_spill] sm:$0xff] %v4329_v49 }
 0x19d   :  { %v670_v31 = vperm.slane %v315_v30, 0  ;;  %v683_v32 = vperm.slane %v315_v30, 1  ;;  %v696_v34 = vperm.slane %v315_v30, 2  ;;  %v709_v35 = vperm.slane %v315_v30, 3 }
 0x19e   :  { %v722_v36 = vperm.slane %v315_v30, 4  ;;  %v761_v38 = vperm.slane %v315_v30, 7  ;;  %v735_v41 = vperm.slane %v315_v30, 5  ;;  %v1365_v42 = vperm.slane %v4196_v40, 1 }
 0x19f   :  { %675 = vperm.xlu1 %3648, %v670_v31   ;;  %681 = vperm.xlu2 %3649, %v670_v31   ;;  %v748_v43 = vperm.slane %v315_v30, 6  ;;  %v1352_v46 = vperm.slane %v4196_v40, 0  ;;  %v1391_v47 = vperm.slane %v4196_v40, 3  ;;  %v1378_v50 = vperm.slane %v4196_v40, 2 }
 0x1a0   :  { %688 = vperm.xlu0 %3650, %v683_v32   ;;  %v1430_v51 = vperm.slane %v4196_v40, 6  ;;  %v1404_v58 = vperm.slane %v4196_v40, 4  ;;  %v7047_v13 = vperm.slane %v4196_v40, 7  ;;  %3740 = vrcp.f32 %v303_v56 }
 0x1a1   :  { %v3739_v52 = vpop.eup %3738 }
 0x1a2   :  { %v4226_v53 = vmul.f32 %v3739_v52, %v4147_v61  ;;  %v1417_v61 = vperm.slane %v4196_v40, 5  ;;  %v4253_v62 = vpop.xlane.xlu1 %299 }
 0x1a4   :  { %v7045_v55 = vperm.slane %v4226_v53, 0  ;;  %v4245_v57 = vpop.xlane.xlu2 %293  ;;  %v2054_v59 = vperm.slane %v4226_v53, 2  ;;  %v7041_v0 = vperm.slane %v4226_v53, 5  ;;  %v288_v2 = vpop.xlane.xlu0 %287  ;;  %v7044_v19 = vperm.slane %v4226_v53, 1 }
 0x1a5   :  { %v7043_v20 = vperm.slane %v4226_v53, 7  ;;  %3742 = vrcp.f32 %v288_v2 }
 0x1a6   :  { %v3741_v22 = vpop.eup %3740  ;;  %3744 = vrcp.f32 %v4245_v57  ;;  %v7279_v57 = vperm.slane %v4226_v53, 7 }
 0x1a7   :  { %701 = vperm.xlu1 %3648, %v696_v34   ;;  %694 = vperm.xlu2 %3649, %v683_v32   ;;  %v4285_v28 = vmul.f32 %v3741_v22, %v4153_v4  ;;  %v4293_v32 = vld [vmem:[#allocation2] sm:$0xff]  ;;  %v4301_v4 = vld [vmem:[#allocation2 + $0x8] sm:$0xff] }
 0x1a8   :  { %3651 = vset.pattern.permute.xlu0 %v4181_v25 }
 0x1a9   :  { %v7042_v30 = vperm.slane %v4285_v28, 1  ;;  %v7046_v56 = vperm.slane %v4285_v28, 6 }
 0x1ac   :  { %v4272_v17 = vpop.xlane.xlu0 %305 }
 0x1af   :  { %714 = vperm.xlu1 %3648, %v709_v35   ;;  %707 = vperm.xlu2 %3649, %v696_v34   ;;  %v4299_v34 = vld [vmem:[#allocation2 + $0x20] sm:$0xff] }
 0x1b0   :  { %733 = vperm.xlu0 %3651, %v722_v36  }
 0x1b7   :  { %727 = vperm.xlu1 %3648, %v722_v36   ;;  %720 = vperm.xlu2 %3649, %v709_v35   ;;  %v4303_v35 = vld [vmem:[#allocation2 + $0x18] sm:$0xff]  ;;  %v4305_v36 = vld [vmem:[#allocation2 + $0x30] sm:$0xff] }
 0x1b8   :  { %3654 = vset.pattern.permute.xlu0 %v4176_v24  ;;  %7265 = vst [vmem:[#allocation20_spill] sm:$0xff] %v4305_v36 }
 0x1bf   :  { %3653 = vset.pattern.permute.xlu1 %v4181_v25  ;;  %3652 = vset.pattern.permute.xlu2 %v4176_v24 }
 0x1c0   :  { %766 = vperm.xlu0 %3654, %v761_v38  }
 0x1c7   :  { %746 = vperm.xlu1 %3653, %v735_v41   ;;  %740 = vperm.xlu2 %3652, %v735_v41  }
 0x1c8   :  { %1370 = vperm.xlu0 %3654, %v1365_v42  }
 0x1cf   :  { %759 = vperm.xlu1 %3653, %v748_v43   ;;  %753 = vperm.xlu2 %3652, %v748_v43   ;;  %v4317_v43 = vld [vmem:[#allocation2 + $0x38] sm:$0xff] }
 0x1d0   :  { %3659 = vset.pattern.permute.xlu0 %v4181_v25 }
 0x1d7   :  { %1363 = vperm.xlu1 %3653, %v1352_v46   ;;  %3655 = vset.pattern.permute.xlu2 %v4181_v25 }
 0x1d8   :  { %1402 = vperm.xlu0 %3659, %v1391_v47  }
 0x1df   :  { %3658 = vset.pattern.permute.xlu1 %v4176_v24  ;;  %772 = vperm.xlu2 %3655, %v761_v38  }
 0x1e0   :  { %3662 = vset.pattern.permute.xlu0 %v4176_v24 }
 0x1e7   :  { %1383 = vperm.xlu1 %3658, %v1378_v50   ;;  %3656 = vset.pattern.permute.xlu2 %v4176_v24 }
 0x1e8   :  { %1435 = vperm.xlu0 %3662, %v1430_v51  }
 0x1ef   :  { %1396 = vperm.xlu1 %3658, %v1391_v47   ;;  %1357 = vperm.xlu2 %3656, %v1352_v46  }
 0x1f0   :  { %2033 = vperm.xlu0 %3662, %v7045_v55   ;;  %v608_v55 = vld [vmem:[#allocation13 + $0x18] sm:$0xff] }
 0x1f1   :  { %625 = vmatpush.msrb.mxu3 %v608_v55 }
 0x1f7   :  { %3661 = vset.pattern.permute.xlu1 %v4181_v25  ;;  %3657 = vset.pattern.permute.xlu2 %v4181_v25 }
 0x1f8   :  { %3665 = vset.pattern.permute.xlu0 %v4181_v25 }
 0x1f9   :  { %v4249_v60 = vpop.permute.xlu2 %681 }
 0x1fa   :  { %v775_v45 = vmul.f32 %v4249_v60, %v4301_v4 }
 0x1fc   :  { %v791_v23 = vsel %vm131_vm0, %v775_v45, 0.0 }
 0x1ff   :  { %1415 = vperm.xlu1 %3661, %v1404_v58   ;;  %1376 = vperm.xlu2 %3657, %v1365_v42   ;;  %v4315_v42 = vld [vmem:[#allocation2 + $0x40] sm:$0xff] }
 0x200   :  { %2065 = vperm.xlu0 %3665, %v2054_v59   ;;  %7266 = vst [vmem:[#allocation21_spill] sm:$0xff] %v4315_v42 }
 0x201   :  { %v4255_v63 = vpop.permute.xlu2 %694 }
 0x202   :  { %v777_v46 = vmul.f32 %v4255_v63, %v4303_v35 }
 0x207   :  { %1428 = vperm.xlu1 %3661, %v1417_v61   ;;  %1389 = vperm.xlu2 %3657, %v1378_v50   ;;  %v3743_v50 = vpop.eup %3742 }
 0x208   :  { %3668 = vset.pattern.permute.xlu0 %v4176_v24 }
 0x209   :  { %v4264_v3 = vpop.permute.xlu2 %707 }
 0x20a   :  { %v779_v52 = vmul.f32 %v4264_v3, %v4307_v37 }
 0x20f   :  { %3664 = vset.pattern.permute.xlu1 %v4176_v24  ;;  %3660 = vset.pattern.permute.xlu2 %v4176_v24 }
 0x210   :  { %2098 = vperm.xlu0 %3668, %v7041_v0  }
 0x211   :  { %v4262_v1 = vpop.permute.xlu1 %675  ;;  %v4276_v26 = vpop.permute.xlu2 %720 }
 0x212   :  { %v4287_v29 = vpop.permute.xlu0 %688  ;;  %v774_v38 = vmul.f32 %v4262_v1, %v4293_v32 }
 0x213   :  { %v776_v39 = vmul.f32 %v4287_v29, %v4295_v33 }
 0x217   :  { %1448 = vperm.xlu1 %3664, %v7047_v13   ;;  %1409 = vperm.xlu2 %3660, %v1404_v58   ;;  %v790_v58 = vsel %vm131_vm0, %v774_v38, 0.0  ;;  %v4349_v38 = vmul.f32 %v3743_v50, %v4165_v18  ;;  %v4359_v50 = vld [vmem:[#allocation2 + $0x50] sm:$0xff] }
 0x218   :  { %3671 = vset.pattern.permute.xlu0 %v4181_v25  ;;  %7268 = vst [vmem:[#allocation23_spill] sm:$0xff] %v4359_v50 }
 0x219   :  { %v4270_v14 = vpop.permute.xlu1 %701  ;;  %v7056_v55 = vperm.slane %v4349_v38, 1 }
 0x21a   :  { %v778_v44 = vmul.f32 %v4270_v14, %v4299_v34 }
 0x21c   :  { %v808_v2 = vsel %vm131_vm0, %v778_v44, 0.0  ;;  %v792_v44 = vadd.f32 %v791_v23, %v790_v58  ;;  %v7050_v23 = vperm.slane %v4226_v53, 3 }
 0x21e   :  { %v793_v58 = vrot.slane %v792_v44, 4 }
 0x21f   :  { %1422 = vperm.xlu2 %3660, %v1417_v61   ;;  %2046 = vperm.xlu1 %3664, %v7044_v19   ;;  %v799_v61 = vsel %vm131_vm0, %v776_v39, 0.0  ;;  %v800_v39 = vsel %vm131_vm0, %v777_v46, 0.0  ;;  %v607_v46 = vld [vmem:[#allocation13 + $0x10] sm:$0xff] }
 0x220   :  { %2130 = vperm.xlu0 %3671, %v7043_v20   ;;  %v801_v20 = vadd.f32 %v800_v39, %v799_v61  ;;  %626 = vmatpush.msrb.mxu3 %v607_v46  ;;  %v669_v61 = vld [vmem:[#allocation2 + $0x78] sm:$0xff] }
 0x221   :  { %v4282_v27 = vpop.permute.xlu1 %714  ;;  %v4290_v31 = vpop.permute.xlu2 %740 }
 0x222   :  { %7264 = vst [vmem:[#allocation19_spill] sm:$0xff] %v4290_v31  ;;  %v780_v47 = vmul.f32 %v4282_v27, %v4305_v36  ;;  %v4327_v48 = vpop.permute.xlu0 %733 }
 0x223   :  { %v783_v22 = vmul.f32 %v4327_v48, %v4329_v49 }
 0x224   :  { %v817_v0 = vsel %vm131_vm0, %v780_v47, 0.0 }
 0x225   :  { %v827_v45 = vsel %vm131_vm0, %v783_v22, 0.0 }
 0x227   :  { %3663 = vset.pattern.permute.xlu2 %v4181_v25  ;;  %2059 = vperm.xlu1 %3664, %v2054_v59   ;;  %v781_v59 = vmul.f32 %v4276_v26, %v4317_v43 }
 0x228   :  { %2728 = vperm.xlu0 %3671, %v7042_v30   ;;  %v809_v30 = vsel %vm131_vm0, %v779_v52, 0.0  ;;  %v606_v52 = vld [vmem:[#allocation13 + $0x8] sm:$0xff] }
 0x229   :  { %v4313_v41 = vpop.permute.xlu1 %727  ;;  %v810_v13 = vadd.f32 %v809_v30, %v808_v2  ;;  %v784_v30 = vmul.f32 %v4290_v31, %v4359_v50  ;;  %v605_v2 = vld [vmem:[#allocation13] sm:$0xff]  ;;  %627 = vmatpush.msrb.mxu3 %v606_v52 }
 0x22a   :  { %v782_v54 = vmul.f32 %v4313_v41, %v4315_v42  ;;  %v4364_v42 = vld [vmem:[#allocation2 + $0x70] sm:$0xff] }
 0x22b   :  { %7270 = vst [vmem:[#allocation25_spill] sm:$0xff] %v4364_v42  ;;  %628 = vmatpush.msrb.mxu3 %v605_v2 }
 0x22c   :  { %v826_v19 = vsel %vm131_vm0, %v782_v54, 0.0  ;;  %v3407_v54 = vld [vmem:[#allocation11 + $0x18] sm:$0xff]  ;;  %3611 = vmatmul.msk.f32.vlgmr.msrb.gmra.mxu3 %vm131_vm0, %v4079_v5 }
 0x22d   :  { %v828_v47 = vadd.f32 %v827_v45, %v826_v19  ;;  %3444 = vmatpush.msrb.mxu0 %v3407_v54  ;;  %v7271_v19 = vperm.slane %v4196_v40, 7  ;;  %v3406_v45 = vld [vmem:[#allocation11 + $0x10] sm:$0xff] }
 0x22f   :  { %1441 = vperm.xlu2 %3663, %v1430_v51   ;;  %3667 = vset.pattern.permute.xlu1 %v4181_v25  ;;  %v4354_v51 = vpop.permute.xlu2 %753  ;;  %v829_v46 = vrot.slane %v828_v47, 4 }
 0x230   :  { %2793 = vperm.xlu0 %3671, %v7046_v56   ;;  %v818_v56 = vsel %vm131_vm0, %v781_v59, 0.0  ;;  %v802_v59 = vrot.slane %v801_v20, 4  ;;  %3445 = vmatpush.msrb.mxu0 %v3406_v45 }
 0x231   :  { %v819_v18 = vadd.f32 %v818_v56, %v817_v0  ;;  %v811_v0 = vrot.slane %v810_v13, 4  ;;  %v4374_v56 = vld [vmem:[#allocation2 + $0x58] sm:$0xff] }
 0x232   :  { %v4362_v36 = vpop.permute.xlu0 %766  ;;  %7272 = vst [vmem:[#allocation26_spill] sm:$0xff] %v4374_v56 }
 0x233   :  { %7269 = vst [vmem:[#allocation24_spill] sm:$0xff] %v4362_v36  ;;  %v820_v22 = vrot.slane %v819_v18, 4  ;;  %v788_v39 = vmul.f32 %v4362_v36, %v4364_v42  ;;  %v812_v42 = vadd.f32 %v811_v0, %v810_v13  ;;  %v835_v36 = vsel %vm131_vm0, %v784_v30, 0.0  ;;  %v3405_v13 = vld [vmem:[#allocation11 + $0x8] sm:$0xff]  ;;  %v3404_v0 = vld [vmem:[#allocation11] sm:$0xff] }
 0x234   :  { %3446 = vmatpush.msrb.mxu0 %v3405_v13  ;;  %3612 = vmatmul.msk.f32.gmra.mxu3 %vm131_vm0, %v4095_v9 }
 0x235   :  { %v821_v52 = vadd.f32 %v820_v22, %v819_v18  ;;  %v813_v5 = vrot.slane %v812_v42, 2 }
 0x236   :  { %3447 = vmatpush.msrb.mxu0 %v3404_v0 }
 0x237   :  { %1454 = vperm.xlu2 %3663, %v7271_v19   ;;  %2078 = vperm.xlu1 %3667, %v7050_v23   ;;  %v794_v19 = vadd.f32 %v793_v58, %v792_v44  ;;  %v803_v23 = vadd.f32 %v802_v59, %v801_v20  ;;  %v830_v20 = vadd.f32 %v829_v46, %v828_v47  ;;  %v4393_v58 = vld [vmem:[#allocation2 + $0x60] sm:$0xff] }
 0x238   :  { %1038 = vperm.xlu0 %3671, %v7056_v55   ;;  %v853_v55 = vsel %vm131_vm0, %v788_v39, 0.0  ;;  %7275 = vst [vmem:[#allocation29_spill] sm:$0xff] %v4393_v58 }
 0x239   :  { %v4380_v54 = vpop.permute.xlu1 %746  ;;  %v4382_v40 = vpop.permute.xlu2 %772  ;;  %v795_v30 = vrot.slane %v794_v19, 2  ;;  %v804_v2 = vrot.slane %v803_v23, 2  ;;  %v831_v47 = vrot.slane %v830_v20, 2 }
 0x23a   :  { %7273 = vst [vmem:[#allocation27_spill] sm:$0xff] %v4380_v54  ;;  %v785_v50 = vmul.f32 %v4380_v54, %v4374_v56  ;;  %v789_v49 = vmul.f32 %v4382_v40, %v669_v61  ;;  %v7059_v61 = vperm.slane %v4226_v53, 4 }
 0x23b   :  { %7274 = vst [vmem:[#allocation28_spill] sm:$0xff] %v4382_v40  ;;  %v796_v46 = vadd.f32 %v795_v30, %v794_v19  ;;  %v832_v54 = vadd.f32 %v831_v47, %v830_v20 }
 0x23c   :  { %v836_v31 = vsel %vm131_vm0, %v785_v50, 0.0  ;;  %v854_v44 = vsel %vm131_vm0, %v789_v49, 0.0  ;;  %v7276_v49 = vperm.slane %v4226_v53, 0  ;;  %v4400_v50 = vld [vmem:[#allocation2 + $0x68] sm:$0xff]  ;;  %3613 = vmatmul.msk.f32.gmra.mxu3 %vm131_vm0, %v4081_v6 }
 0x23d   :  { %v837_v59 = vadd.f32 %v836_v31, %v835_v36  ;;  %v855_v45 = vadd.f32 %v854_v44, %v853_v55  ;;  %7277 = vst [vmem:[#allocation30_spill] sm:$0xff] %v4400_v50  ;;  %v822_v31 = vrot.slane %v821_v52, 2  ;;  %v786_v36 = vmul.f32 %v4354_v51, %v4393_v58 }
 0x23e   :  { %v805_v44 = vadd.f32 %v804_v2, %v803_v23  ;;  %v797_v19 = vrot.slane %v796_v46, 1 }
 0x23f   :  { %v838_v18 = vrot.slane %v837_v59, 4  ;;  %v856_v22 = vrot.slane %v855_v45, 4  ;;  %2091 = vperm.xlu1 %3667, %v7059_v61   ;;  %2039 = vperm.xlu2 %3663, %v7276_v49   ;;  %v814_v49 = vadd.f32 %v813_v5, %v812_v42  ;;  %v823_v40 = vadd.f32 %v822_v31, %v821_v52 }
 0x240   :  { %3682 = vset.pattern.permute.xlu0 %v4176_v24  ;;  %v844_v58 = vsel %vm131_vm0, %v786_v36, 0.0  ;;  %v806_v23 = vrot.slane %v805_v44, 1  ;;  %v7278_v42 = vperm.slane %v4226_v53, 1  ;;  %v833_v52 = vrot.slane %v832_v54, 1 }
 0x241   :  { %v839_v55 = vadd.f32 %v838_v18, %v837_v59  ;;  %v4405_v39 = vpop.permute.xlu1 %759  ;;  %v857_v13 = vadd.f32 %v856_v22, %v855_v45  ;;  %v7066_v18 = vperm.slane %v4349_v38, 4  ;;  %v815_v2 = vrot.slane %v814_v49, 1 }
 0x242   :  { %v787_v61 = vmul.f32 %v4405_v39, %v4400_v50  ;;  %v824_v9 = vrot.slane %v823_v40, 1 }
 0x243   :  { %v840_v56 = vrot.slane %v839_v55, 2  ;;  %v858_v30 = vrot.slane %v857_v13, 2 }
 0x244   :  { %v845_v0 = vsel %vm131_vm0, %v787_v61, 0.0  ;;  %v807_v61 = vadd.f32 %v806_v23, %v805_v44  ;;  %v825_v47 = vadd.f32 %v824_v9, %v823_v40  ;;  %3614 = vmatmul.msk.f32.gmra.mxu3 %vm131_vm0, %v4097_v10  ;;  %v163_v9 = vld [vmem:[#allocation8 + $0x38] sm:$0xff] }
 0x245   :  { %v846_v59 = vadd.f32 %v845_v0, %v844_v58  ;;  %v841_v45 = vadd.f32 %v840_v56, %v839_v55  ;;  %v798_v58 = vadd.f32 %v797_v19, %v796_v46  ;;  %v859_v31 = vadd.f32 %v858_v30, %v857_v13  ;;  %v3745_v30 = vpop.eup %3744  ;;  %3594 = vmatmul.msk.f32.gmra.mxu1 %vm131_vm0, %v163_v9 }
 0x246   :  { %v816_v56 = vadd.f32 %v815_v2, %v814_v49  ;;  %v834_v55 = vadd.f32 %v833_v52, %v832_v54  ;;  %v7280_v2 = vperm.slane %v4226_v53, 3  ;;  %v2704_v52 = vperm.slane %v4285_v28, 0  ;;  %3610 = vmatmul.msk.f32.gmra.mxu2 %vm131_vm0, %v163_v9 }
 0x247   :  { %v847_v22 = vrot.slane %v846_v59, 4  ;;  %3670 = vset.pattern.permute.xlu1 %v4176_v24  ;;  %2052 = vperm.xlu2 %3663, %v7278_v42   ;;  %v842_v5 = vrot.slane %v841_v45, 1  ;;  %v2106_v42 = vperm.slane %v4226_v53, 6  ;;  %v860_v44 = vrot.slane %v859_v31, 1 }
 0x248   :  { %1071 = vperm.xlu0 %3682, %v7066_v18   ;;  %v871_v18 = vsel %vm870_vm2, %v807_v61, %v798_v58  ;;  %v7282_v58 = vperm.slane %v4226_v53, 4  ;;  %v7284_v61 = vperm.slane %v4226_v53, 5 }
 0x249   :  { %v848_v20 = vadd.f32 %v847_v22, %v846_v59  ;;  %v843_v46 = vadd.f32 %v842_v5, %v841_v45  ;;  %v873_v13 = vsel %vm872_vm3, %v816_v56, %v871_v18  ;;  %v861_v19 = vadd.f32 %v860_v44, %v859_v31  ;;  %v372_v5 = vpop.f32.mrf.mxu1  ;;  %v4480_v56 = vpop.permute.xlu1 %1363 }
 0x24a   :  { %v875_v6 = vsel %vm874_vm4, %v825_v47, %v873_v13  ;;  %v7073_v45 = vperm.slane %v4349_v38, 6  ;;  %v4443_v22 = vmul.f32 %v3745_v30, %v4161_v16  ;;  %v2730_v31 = vperm.slane %v4285_v28, 2  ;;  %7285 = vst [vmem:[#allocation32_spill] sm:$0xff] %v4480_v56 }
 0x24b   :  { %v849_v36 = vrot.slane %v848_v20, 2  ;;  %v877_v54 = vsel %vm876_vm5, %v834_v55, %v875_v6  ;;  %v2743_v47 = vperm.slane %v4285_v28, 3 }
 0x24c   :  { %v879_v59 = vsel %vm878_vm6, %v843_v46, %v877_v54  ;;  %7281 = vst [vmem:[#allocation31_spill] sm:$0xff] %v4443_v22  ;;  %3615 = vmatmul.msk.f32.gmra.mxu3 %vm131_vm0, %v4083_v7  ;;  %v7283_v7 = vperm.slane %v4285_v28, 1  ;;  %v7071_v16 = vperm.slane %v4443_v22, 3  ;;  %v7070_v55 = vperm.slane %v4443_v22, 5 }
 0x24d   :  { %v850_v0 = vadd.f32 %v849_v36, %v848_v20  ;;  %v7072_v20 = vperm.slane %v4443_v22, 0  ;;  %v4482_v36 = vpop.permute.xlu2 %1357 }
 0x24e   :  { %7286 = vst [vmem:[#allocation33_spill] sm:$0xff] %v4482_v36  ;;  %v7325_v36 = vperm.slane %v4285_v28, 4 }
 0x24f   :  { %v851_v49 = vrot.slane %v850_v0, 1  ;;  %2111 = vperm.xlu1 %3670, %v2106_v42   ;;  %3666 = vset.pattern.permute.xlu2 %v4176_v24 }
 0x250   :  { %3685 = vset.pattern.permute.xlu0 %v4181_v25 }
 0x251   :  { %v852_v40 = vadd.f32 %v851_v49, %v850_v0  ;;  %v375_v0 = vpop.f32.mrf.mxu1 }
 0x253   :  { %v881_v18 = vsel %vm880_vm7, %v852_v40, %v879_v59 }
 0x254   :  { %v883_v23 = vsel %vm882_vm8, %v861_v19, %v881_v18  ;;  %3616 = vmatmul.msk.f32.gmra.mxu3 %vm131_vm0, %v4099_v11  ;;  %v4471_v11 = vld [vmem:[%s7031_s5] ss:$0 sm:$0xff] }
 0x255   :  { %885 = vst.msk [vmem:[#allocation3] sm:$0xff] %vm131_vm0, %v883_v23  ;;  %v376_v59 = vadd.f32 %v4471_v11, %v375_v0 }
 0x257   :  { %2124 = vperm.xlu1 %3670, %v7279_v57   ;;  %2072 = vperm.xlu2 %3666, %v7280_v2   ;;  %v3596_v30 = vmul.f32 -1.442695, %v376_v59 }
 0x258   :  { %1103 = vperm.xlu0 %3685, %v7073_v45  }
 0x259   :  { %v4489_v46 = vpop.permute.xlu1 %1383  ;;  %v4491_v44 = vpop.permute.xlu2 %1376 }
 0x25a   :  { %7287 = vst [vmem:[#allocation34_spill] sm:$0xff] %v4489_v46  ;;  %v378_v6 = vpop.f32.mrf.mxu1 }
 0x25b   :  { %7288 = vst [vmem:[#allocation35_spill] sm:$0xff] %v4491_v44 }
 0x25c   :  { %v3396_v10 = vld [vmem:[#allocation3] sm:$0xff]  ;;  %3617 = vmatmul.msk.f32.gmra.mxu3 %vm131_vm0, %v4087_v8  ;;  %v373_v8 = vadd.f32 %v4471_v11, %v372_v5 }
 0x25d   :  { %3619 = vmatmul.msk.f32.vlgmr.msrb.gmra.mxu0 %vm131_vm0, %v3396_v10 }
 0x25e   :  { %v3595_v53 = vmul.f32 -1.442695, %v373_v8 }
 0x25f   :  { %2709 = vperm.xlu1 %3670, %v2704_v52   ;;  %2085 = vperm.xlu2 %3666, %v7282_v58  }
 0x260   :  { %1701 = vperm.xlu0 %3685, %v7072_v20   ;;  %3746 = vpow2.f32 %v3595_v53 }
 0x261   :  { %3748 = vrcp.f32 %v4253_v62  ;;  %v7076_v62 = vperm.slane %v4285_v28, 5  ;;  %v4502_v19 = vpop.permute.xlu1 %1396  ;;  %v4504_v18 = vpop.permute.xlu2 %1389 }
 0x262   :  { %7290 = vst [vmem:[#allocation37_spill] sm:$0xff] %v4502_v19 }
 0x263   :  { %7291 = vst [vmem:[#allocation38_spill] sm:$0xff] %v4504_v18 }
 0x264   :  { %3618 = vmatmul.msk.f32.gmra.mxu3 %vm131_vm0, %v4103_v12 }
 0x266   :  { %v3747_v12 = vpop.eup %3746 }
 0x267   :  { %2722 = vperm.xlu1 %3670, %v7283_v7   ;;  %3669 = vset.pattern.permute.xlu2 %v4181_v25  ;;  %v3749_v13 = vpop.eup %3748  ;;  %v4519_v7 = vpop.permute.xlu0 %1370 }
 0x268   :  { %3690 = vset.pattern.permute.xlu0 %v4176_v24  ;;  %v4497_v49 = vmul.f32 %v3749_v13, %v4159_v15  ;;  %v379_v15 = vadd.f32 %v4471_v11, %v378_v6  ;;  %7295 = vst [vmem:[#allocation41_spill] sm:$0xff] %v4519_v7  ;;  %v573_v13 = vpop.f32.mrf.mxu2 }
 0x26a   :  { %7289 = vst [vmem:[#allocation36_spill] sm:$0xff] %v4497_v49  ;;  %v7068_v54 = vperm.slane %v4497_v49, 2  ;;  %v3597_v57 = vmul.f32 -1.442695, %v379_v15 }
 0x26f   :  { %3673 = vset.pattern.permute.xlu1 %v4181_v25  ;;  %2104 = vperm.xlu2 %3669, %v7284_v61  }
 0x270   :  { %1734 = vperm.xlu0 %3690, %v7071_v16   ;;  %v4584_v45 = vpop.f32.mrf.mxu2 }
 0x271   :  { %v4511_v10 = vpop.permute.xlu1 %1415  ;;  %v4513_v9 = vpop.permute.xlu2 %1409 }
 0x272   :  { %7292 = vst [vmem:[#allocation39_spill] sm:$0xff] %v4511_v10 }
 0x273   :  { %7293 = vst [vmem:[#allocation40_spill] sm:$0xff] %v4513_v9 }
 0x277   :  { %2741 = vperm.xlu1 %3673, %v2730_v31   ;;  %2117 = vperm.xlu2 %3669, %v2106_v42   ;;  %v420_v42 = vadd.f32 1.0, %v3747_v12  ;;  %v7067_v12 = vperm.slane %v4497_v49, 4 }
 0x278   :  { %3693 = vset.pattern.permute.xlu0 %v4181_v25 }
 0x279   :  { %3750 = vrcp.f32 %v420_v42  ;;  %vm433_vm9 = vweird.f32 %v420_v42  ;;  %v439_v5 = vand.u32 2147483648, %v420_v42  ;;  %v437_v53 = vand.u32 2147483647, %v420_v42  ;;  %v4537_v15 = vpop.permute.xlu1 %1428 }
 0x27a   :  { %3752 = vpow2.f32 %v3596_v30  ;;  %7298 = vst [vmem:[#allocation42_spill] sm:$0xff] %v4537_v15 }
 0x27b   :  { %3754 = vrcp.f32 %v4272_v17  ;;  %v4531_v17 = vld [vmem:[%s7033_s7] ss:$0 sm:$0xff]  ;;  %v440_v59 = vor.u32 1.1754944e-38, %v439_v5  ;;  %vm438_vm12 = vcmp.eq.f32.partialorder %v437_v53, 8.507059e+37  ;;  %v7075_v5 = vperm.slane %v4285_v28, 7 }
 0x27c   :  { %3756 = vpow2.f32 %v3597_v57 }
 0x27f   :  { %2754 = vperm.xlu1 %3673, %v2743_v47   ;;  %2715 = vperm.xlu2 %3669, %v2704_v52   ;;  %v3751_v40 = vpop.eup %3750  ;;  %v7294_v52 = vperm.slane %v4285_v28, 6 }
 0x280   :  { %1766 = vperm.xlu0 %3693, %v7070_v55   ;;  %v429_v23 = vmul.f32 %v3751_v40, %v420_v42  ;;  %vm434_vm10 = vweird.f32 %v3751_v40  ;;  %v3753_v61 = vpop.eup %3752  ;;  %v381_v42 = vpop.f32.mrf.mxu1 }
 0x281   :  { %v3755_v8 = vpop.eup %3754  ;;  %vm4522_vm11 = vmor %vm433_vm9, %vm434_vm10  ;;  %v4533_v6 = vadd.f32 1.0, %v3753_v61  ;;  %v382_v53 = vadd.f32 %v4471_v11, %v381_v42 }
 0x282   :  { %v430_v2 = vsub.f32 1.0, %v429_v23  ;;  %v3757_v0 = vpop.eup %3756  ;;  %v4539_v23 = vpop.permute.xlu2 %1422  ;;  %v4542_v30 = vmul.f32 %v3755_v8, %v4171_v21 }
 0x283   :  { %7299 = vst [vmem:[#allocation43_spill] sm:$0xff] %v4539_v23  ;;  %3758 = vrcp.f32 %v4533_v6  ;;  %vm448_vm13 = vweird.f32 %v4533_v6 }
 0x284   :  { %v431_v58 = vmul.f32 %v3751_v40, %v430_v2  ;;  %7300 = vst [vmem:[#allocation44_spill] sm:$0xff] %v4542_v30  ;;  %v4546_v2 = vadd.f32 1.0, %v3757_v0  ;;  %v7069_v21 = vperm.slane %v4542_v30, 3 }
 0x286   :  { %3760 = vrcp.f32 %v4546_v2  ;;  %vm463_vm1 = vweird.f32 %v4546_v2 }
 0x287   :  { %3675 = vset.pattern.permute.xlu1 %v4176_v24  ;;  %3672 = vset.pattern.permute.xlu2 %v4176_v24 }
 0x288   :  { %3696 = vset.pattern.permute.xlu0 %v4176_v24 }
 0x289   :  { %v4568_v0 = vpop.permute.xlu1 %1448 }
 0x28a   :  { %7302 = vst [vmem:[#allocation46_spill] sm:$0xff] %v4568_v0 }
 0x28f   :  { %2774 = vperm.xlu1 %3675, %v7076_v62   ;;  %2735 = vperm.xlu2 %3672, %v2730_v31   ;;  %v432_v31 = vadd.f32 %v3751_v40, %v431_v58  ;;  %v574_v58 = vadd.f32 %v4531_v17, %v573_v13 }
 0x290   :  { %2397 = vperm.xlu0 %3696, %v7068_v54   ;;  %v384_v54 = vpop.f32.mrf.mxu1 }
 0x291   :  { %v436_v57 = vsel %vm4522_vm11, %v3751_v40, %v432_v31  ;;  %3762 = vtanh.f32 %v574_v58  ;;  %v4575_v58 = vpop.eup %3758  ;;  %v4630_v18 = vpop.permute.xlu1 %2046 }
 0x292   :  { %v4552_v61 = vsel %vm438_vm12, %v440_v59, %v436_v57  ;;  %v444_v8 = vmul.f32 %v4575_v58, %v4533_v6  ;;  %v3598_v59 = vmul.f32 -1.442695, %v382_v53  ;;  %v385_v57 = vadd.f32 %v4471_v11, %v384_v54  ;;  %7307 = vst [vmem:[#allocation50_spill] sm:$0xff] %v4630_v18 }
 0x293   :  { %v7077_v40 = vperm.slane %v4552_v61, 0  ;;  %v887_v20 = vrot.slane %v4552_v61, 1  ;;  %v888_v42 = vrot.slane %v4552_v61, 2  ;;  %v7305_v54 = vperm.slane %v4285_v28, 5 }
 0x294   :  { %v445_v16 = vsub.f32 1.0, %v444_v8  ;;  %3764 = vpow2.f32 %v3598_v59  ;;  %v3599_v23 = vmul.f32 -1.442695, %v385_v57  ;;  %v579_v8 = vpop.f32.mrf.mxu2  ;;  %vm449_vm15 = vweird.f32 %v4575_v58 }
 0x295   :  { %v911_v31 = vmul.f32 %v7077_v40, %v4249_v60  ;;  %v4607_v22 = vperm.slane %v887_v20, 0  ;;  %v4616_v40 = vperm.slane %v888_v42, 0  ;;  %v889_v20 = vrot.slane %v4552_v61, 3  ;;  %vm4676_vm10 = vmor %vm448_vm13, %vm449_vm15 }
 0x296   :  { %3766 = vpow2.f32 %v3599_v23 }
 0x297   :  { %2787 = vperm.xlu1 %3675, %v7294_v52   ;;  %2748 = vperm.xlu2 %3672, %v2743_v47   ;;  %v4548_v52 = vpop.permute.xlu0 %1402  ;;  %v4570_v47 = vpop.permute.xlu2 %1441  ;;  %v927_v62 = vsub.f32 1.0, %v911_v31  ;;  %v4636_v15 = vperm.slane %v889_v20, 0  ;;  %v913_v19 = vmul.f32 %v4607_v22, %v4255_v63  ;;  %v446_v31 = vmul.f32 %v4575_v58, %v445_v16 }
 0x298   :  { %3699 = vset.pattern.permute.xlu0 %v4181_v25  ;;  %7301 = vst [vmem:[#allocation45_spill] sm:$0xff] %v4548_v52 }
 0x299   :  { %7303 = vst [vmem:[#allocation47_spill] sm:$0xff] %v4570_v47  ;;  %v447_v46 = vadd.f32 %v4575_v58, %v446_v31 }
 0x29f   :  { %3677 = vset.pattern.permute.xlu1 %v4181_v25  ;;  %3674 = vset.pattern.permute.xlu2 %v4181_v25  ;;  %v4628_v10 = vpop.permute.xlu2 %1454 }
 0x2a0   :  { %2429 = vperm.xlu0 %3699, %v7067_v12   ;;  %v7074_v12 = vperm.slane %v4285_v28, 4  ;;  %7306 = vst [vmem:[#allocation49_spill] sm:$0xff] %v4628_v10  ;;  %v891_v10 = vrot.slane %v4552_v61, 5 }
 0x2a7   :  { %2806 = vperm.xlu1 %3677, %v7075_v5   ;;  %2767 = vperm.xlu2 %3674, %v7074_v12   ;;  %v4589_v5 = vpop.eup %3760  ;;  %v454_v12 = vand.u32 2147483648, %v4533_v6 }
 0x2a8   :  { %3092 = vperm.xlu0 %3699, %v7069_v21   ;;  %v4577_v21 = vpop.permute.xlu0 %1435  ;;  %v4601_v13 = vpop.eup %3762  ;;  %v459_v53 = vmul.f32 %v4589_v5, %v4546_v2  ;;  %vm464_vm9 = vweird.f32 %v4589_v5 }
 0x2a9   :  { %7304 = vst [vmem:[#allocation48_spill] sm:$0xff] %v4577_v21  ;;  %v959_v55 = vrot.slane %v4601_v13, 1  ;;  %v960_v47 = vrot.slane %v4601_v13, 2  ;;  %v961_v0 = vrot.slane %v4601_v13, 3  ;;  %v962_v23 = vrot.slane %v4601_v13, 4  ;;  %vm4695_vm11 = vmor %vm463_vm1, %vm464_vm9 }
 0x2aa   :  { %v460_v9 = vsub.f32 1.0, %v459_v53  ;;  %v915_v53 = vmul.f32 %v4616_v40, %v4264_v3 }
 0x2ab   :  { %v4626_v42 = vperm.slane %v959_v55, 0  ;;  %v4634_v57 = vperm.slane %v960_v47, 0  ;;  %v943_v55 = vmul.f32 %v927_v62, %v4301_v4  ;;  %v4646_v18 = vperm.slane %v961_v0, 0  ;;  %v3765_v62 = vpop.eup %3764 }
 0x2ac   :  { %v7309_v47 = vperm.slane %v4601_v13, 0  ;;  %v455_v4 = vor.u32 1.1754944e-38, %v454_v12  ;;  %v461_v16 = vmul.f32 %v4589_v5, %v460_v9  ;;  %v890_v0 = vrot.slane %v4552_v61, 4  ;;  %v387_v12 = vpop.f32.mrf.mxu1 }
 0x2ad   :  { %v931_v9 = vsub.f32 1.0, %v915_v53  ;;  %v985_v31 = vmul.f32 %v4626_v42, %v4255_v63  ;;  %v3767_v53 = vpop.eup %3766 }
 0x2ae   :  { %v983_v20 = vmul.f32 %v7309_v47, %v4249_v60  ;;  %v7312_v60 = vperm.slane %v4349_v38, 0  ;;  %v929_v47 = vsub.f32 1.0, %v913_v19  ;;  %v7323_v19 = vperm.slane %v4285_v28, 7 }
 0x2af   :  { %3678 = vset.pattern.permute.xlu1 %v4176_v24  ;;  %2780 = vperm.xlu2 %3674, %v7305_v54   ;;  %v452_v54 = vand.u32 2147483647, %v4533_v6  ;;  %v4688_v6 = vperm.slane %v962_v23, 0  ;;  %v4707_v23 = vpop.permute.xlu1 %2059  ;;  %v947_v56 = vmul.f32 %v931_v9, %v4307_v37  ;;  %v7324_v37 = vperm.slane %v4349_v38, 1 }
 0x2b0   :  { %3706 = vset.pattern.permute.xlu0 %v4176_v24  ;;  %v4640_v21 = vpop.permute.xlu0 %2033  ;;  %v4667_v44 = vadd.f32 %v983_v20, %v943_v55  ;;  %v963_v55 = vrot.slane %v4601_v13, 5  ;;  %v462_v20 = vadd.f32 %v4589_v5, %v461_v16  ;;  %v945_v16 = vmul.f32 %v929_v47, %v4303_v35  ;;  %7321 = vst [vmem:[#allocation54_spill] sm:$0xff] %v4707_v23 }
 0x2b1   :  { %7308 = vst [vmem:[#allocation51_spill] sm:$0xff] %v4640_v21  ;;  %vm4652_vm14 = vcmp.eq.f32.partialorder %v452_v54, 8.507059e+37  ;;  %v580_v54 = vadd.f32 %v4531_v17, %v579_v8  ;;  %v7313_v21 = vperm.slane %v4497_v49, 7  ;;  %v469_v8 = vand.u32 2147483648, %v4546_v2 }
 0x2b2   :  { %7314 = vst [vmem:[#allocation52_spill] sm:$0xff] %v4667_v44  ;;  %v898_v49 = vperm.slane %v890_v0, 0  ;;  %v7317_v44 = vperm.slane %v4552_v61, 0  ;;  %v892_v0 = vrot.slane %v4552_v61, 6  ;;  %v4715_v35 = vadd.f32 1.0, %v3767_v53 }
 0x2b3   :  { %3768 = vtanh.f32 %v580_v54  ;;  %v470_v50 = vor.u32 1.1754944e-38, %v469_v8  ;;  %v4713_v54 = vperm.slane %v891_v10, 0  ;;  %v4722_v47 = vperm.slane %v963_v55, 0 }
 0x2b4   :  { %v910_v52 = vmul.f32 %v7317_v44, %v4262_v1  ;;  %v964_v44 = vrot.slane %v4601_v13, 6  ;;  %v4738_v55 = vperm.slane %v892_v0, 0  ;;  %v577_v28 = vadd.f32 %v4531_v17, %v4584_v45 }
 0x2b5   :  { %v984_v45 = vmul.f32 %v4626_v42, %v4287_v29  ;;  %v388_v0 = vadd.f32 %v4471_v11, %v387_v12  ;;  %v916_v42 = vmul.f32 %v4636_v15, %v4282_v27  ;;  %vm493_vm9 = vweird.f32 %v4715_v35 }
 0x2b6   :  { %v926_v9 = vsub.f32 1.0, %v910_v52  ;;  %v4740_v53 = vperm.slane %v964_v44, 0  ;;  %v917_v52 = vmul.f32 %v4636_v15, %v4276_v26 }
 0x2b7   :  { %3676 = vset.pattern.permute.xlu2 %v4176_v24  ;;  %1019 = vperm.xlu1 %3678, %v7312_v60   ;;  %v467_v60 = vand.u32 2147483647, %v4546_v2  ;;  %v451_v2 = vsel %vm4676_vm10, %v4575_v58, %v447_v46  ;;  %v987_v46 = vmul.f32 %v4634_v57, %v4264_v3  ;;  %v466_v58 = vsel %vm4695_vm11, %v4589_v5, %v462_v20 }
 0x2b8   :  { %2462 = vperm.xlu0 %3706, %v7313_v21   ;;  %v4681_v21 = vadd.f32 1.0, %v3765_v62  ;;  %v912_v62 = vmul.f32 %v4607_v22, %v4287_v29  ;;  %v4699_v63 = vpop.permute.xlu0 %2065  ;;  %v4709_v22 = vpop.permute.xlu2 %2039  ;;  %v4730_v10 = vsel %vm4652_vm14, %v455_v4, %v451_v2  ;;  %v4732_v3 = vadd.f32 %v985_v31, %v945_v16 }
 0x2b9   :  { %7320 = vst [vmem:[#allocation53_spill] sm:$0xff] %v4699_v63  ;;  %vm468_vm12 = vcmp.eq.f32.partialorder %v467_v60, 8.507059e+37  ;;  %v914_v5 = vmul.f32 %v4616_v40, %v4270_v14  ;;  %v4742_v20 = vadd.f32 %v987_v46, %v947_v56  ;;  %v4744_v60 = vpop.eup %3768  ;;  %v390_v4 = vpop.f32.mrf.mxu1  ;;  %v7327_v40 = vperm.slane %v4601_v13, 0 }
 0x2ba   :  { %7322 = vst [vmem:[#allocation55_spill] sm:$0xff] %v4709_v22  ;;  %3770 = vrcp.f32 %v4681_v21  ;;  %v928_v8 = vsub.f32 1.0, %v912_v62  ;;  %v4748_v59 = vsel %vm468_vm12, %v470_v50, %v466_v58  ;;  %v4758_v56 = vmul.f32 %v4646_v18, %v4276_v26  ;;  %v4774_v58 = vpop.permute.xlu1 %2078 }
 0x2bb   :  { %7326 = vst [vmem:[#allocation56_spill] sm:$0xff] %v4742_v20  ;;  %3772 = vrcp.f32 %v4715_v35  ;;  %v982_v31 = vmul.f32 %v7327_v40, %v4262_v1  ;;  %v893_v62 = vrot.slane %v4552_v61, 7  ;;  %v965_v16 = vrot.slane %v4601_v13, 7 }
 0x2bc   :  { %v944_v2 = vmul.f32 %v928_v8, %v4295_v33  ;;  %v942_v1 = vmul.f32 %v926_v9, %v4293_v32  ;;  %v930_v46 = vsub.f32 1.0, %v914_v5  ;;  %v1563_v26 = vrot.slane %v4748_v59, 1  ;;  %7329 = vst [vmem:[#allocation58_spill] sm:$0xff] %v4774_v58  ;;  %v4786_v9 = vpop.f32.mrf.mxu2 }
 0x2bd   :  { %v1635_v61 = vrot.slane %v4744_v60, 1  ;;  %v391_v13 = vadd.f32 %v4471_v11, %v390_v4  ;;  %v919_v33 = vmul.f32 %v898_v49, %v4327_v48  ;;  %3774 = vtanh.f32 %v577_v28 }
 0x2be   :  { %v918_v29 = vmul.f32 %v898_v49, %v4313_v41  ;;  %v4780_v12 = vperm.slane %v893_v62, 0  ;;  %v4782_v32 = vperm.slane %v965_v16, 0  ;;  %v986_v49 = vmul.f32 %v4634_v57, %v4270_v14 }
 0x2bf   :  { %2800 = vperm.xlu2 %3676, %v7323_v19   ;;  %1032 = vperm.xlu1 %3678, %v7324_v37   ;;  %v933_v19 = vsub.f32 1.0, %v917_v52  ;;  %v3600_v15 = vmul.f32 -1.442695, %v388_v0  ;;  %v7331_v5 = vperm.slane %v4542_v30, 1  ;;  %v4798_v52 = vadd.f32 %v982_v31, %v942_v1  ;;  %v7334_v1 = vld [vmem:[#allocation19_spill] sm:$0xff] }
 0x2c0   :  { %2761 = vperm.xlu0 %3706, %v7325_v36   ;;  %v4762_v50 = vpop.eup %3770  ;;  %v4768_v44 = vpop.permute.xlu0 %2098  ;;  %v4800_v28 = vadd.f32 %v984_v45, %v944_v2  ;;  %v4802_v4 = vperm.slane %v1563_v26, 0  ;;  %v4804_v40 = vperm.slane %v1635_v61, 0  ;;  %v3601_v62 = vmul.f32 -1.442695, %v391_v13 }
 0x2c1   :  { %7328 = vst [vmem:[#allocation57_spill] sm:$0xff] %v4768_v44  ;;  %v474_v37 = vmul.f32 %v4762_v50, %v4681_v21  ;;  %v4788_v8 = vpop.permute.xlu2 %2052  ;;  %v4792_v36 = vpop.eup %3772  ;;  %v946_v16 = vmul.f32 %v930_v46, %v4299_v34  ;;  %v4809_v20 = vmul.f32 %v4646_v18, %v4282_v27  ;;  %v935_v14 = vsub.f32 1.0, %v919_v33 }
 0x2c2   :  { %7330 = vst [vmem:[#allocation59_spill] sm:$0xff] %v4788_v8  ;;  %v934_v57 = vsub.f32 1.0, %v918_v29  ;;  %v949_v0 = vmul.f32 %v933_v19, %v4317_v43  ;;  %v4814_v2 = vmul.f32 %v4713_v54, %v7334_v1  ;;  %v489_v45 = vmul.f32 %v4792_v36, %v4715_v35  ;;  %v7337_v19 = vld [vmem:[#allocation22_spill] sm:$0xff]  ;;  %v7338_v29 = vld [vmem:[#allocation21_spill] sm:$0xff]  ;;  %v4841_v58 = vpop.permute.xlu1 %2091 }
 0x2c3   :  { %7332 = vst [vmem:[#allocation60_spill] sm:$0xff] %v4798_v52  ;;  %v475_v31 = vsub.f32 1.0, %v474_v37  ;;  %v4818_v26 = vpop.eup %3774  ;;  %v991_v34 = vmul.f32 %v4688_v6, %v4327_v48  ;;  %v482_v27 = vand.u32 2147483647, %v4681_v21  ;;  %v484_v18 = vand.u32 2147483648, %v4681_v21 }
 0x2c4   :  { %7333 = vst [vmem:[#allocation61_spill] sm:$0xff] %v4800_v28  ;;  %3776 = vpow2.f32 %v3600_v15  ;;  %v4828_v46 = vmul.f32 %v4738_v55, %v4354_v51  ;;  %v1565_v61 = vrot.slane %v4748_v59, 3  ;;  %v4831_v13 = vadd.f32 %v986_v49, %v946_v16 }
 0x2c5   :  { %3778 = vpow2.f32 %v3601_v62  ;;  %v951_v33 = vmul.f32 %v935_v14, %v7337_v19  ;;  %vm478_vm13 = vweird.f32 %v4681_v21  ;;  %v1637_v48 = vrot.slane %v4744_v60, 3  ;;  %7339 = vst [vmem:[#allocation22_spill] sm:$0xff] %v4841_v58  ;;  %v7343_v14 = vld [vmem:[#allocation24_spill] sm:$0xff]  ;;  %v7349_v58 = vld [vmem:[#allocation27_spill] sm:$0xff] }
 0x2c6   :  { %7336 = vst [vmem:[#allocation62_spill] sm:$0xff] %v4831_v13  ;;  %v990_v37 = vmul.f32 %v4688_v6, %v4313_v41  ;;  %v476_v15 = vmul.f32 %v4762_v50, %v475_v31  ;;  %v490_v52 = vsub.f32 1.0, %v489_v45  ;;  %v7341_v62 = vperm.slane %v4349_v38, 0 }
 0x2c7   :  { %3679 = vset.pattern.permute.xlu2 %v4181_v25  ;;  %3681 = vset.pattern.permute.xlu1 %v4181_v25  ;;  %v7342_v16 = vperm.slane %v4349_v38, 2  ;;  %vm4851_vm14 = vcmp.eq.f32.partialorder %v482_v27, 8.507059e+37  ;;  %v485_v6 = vor.u32 1.1754944e-38, %v484_v18  ;;  %v7346_v45 = vperm.slane %v4542_v30, 6  ;;  %v7347_v18 = vld [vmem:[#allocation20_spill] sm:$0xff] }
 0x2c8   :  { %3060 = vperm.xlu0 %3706, %v7331_v5   ;;  %v932_v5 = vsub.f32 1.0, %v916_v42  ;;  %v4824_v43 = vpop.permute.xlu0 %2130  ;;  %v950_v42 = vmul.f32 %v934_v57, %v7338_v29  ;;  %v924_v57 = vmul.f32 %v4780_v12, %v7343_v14  ;;  %vm479_vm15 = vweird.f32 %v4762_v50 }
 0x2c9   :  { %7335 = vst [vmem:[#allocation19_spill] sm:$0xff] %v4824_v43  ;;  %v4843_v49 = vpop.permute.xlu2 %2072  ;;  %v4863_v27 = vperm.slane %v1637_v48, 0  ;;  %v4869_v31 = vadd.f32 %v4758_v56, %v949_v0  ;;  %v477_v30 = vadd.f32 %v4762_v50, %v476_v15  ;;  %v921_v19 = vmul.f32 %v4713_v54, %v7349_v58  ;;  %vm4881_vm1 = vmor %vm478_vm13, %vm479_vm15 }
 0x2ca   :  { %7340 = vst [vmem:[#allocation21_spill] sm:$0xff] %v4843_v49  ;;  %v3777_v28 = vpop.eup %3776  ;;  %v4865_v13 = vadd.f32 %v990_v37, %v950_v42  ;;  %v948_v49 = vmul.f32 %v932_v5, %v7347_v18  ;;  %v583_v29 = vadd.f32 %v4531_v17, %v4786_v9  ;;  %v940_v48 = vsub.f32 1.0, %v924_v57  ;;  %v4909_v57 = vpop.permute.xlu1 %2111 }
 0x2cb   :  { %7348 = vst [vmem:[#allocation24_spill] sm:$0xff] %v4869_v31  ;;  %v497_v56 = vand.u32 2147483647, %v4715_v35  ;;  %v4887_v42 = vadd.f32 %v991_v34, %v951_v33  ;;  %v996_v54 = vmul.f32 %v4782_v32, %v7343_v14  ;;  %vm494_vm10 = vweird.f32 %v4792_v36 }
 0x2cc   :  { %v4893_v9 = vadd.f32 1.0, %v3777_v28  ;;  %v499_v21 = vand.u32 2147483648, %v4715_v35  ;;  %v4903_v34 = vadd.f32 %v4809_v20, %v948_v49  ;;  %v481_v33 = vsel %vm4881_vm1, %v4762_v50, %v477_v30  ;;  %7355 = vst [vmem:[#allocation64_spill] sm:$0xff] %v4909_v57  ;;  %vm4919_vm11 = vmor %vm493_vm9, %vm494_vm10  ;;  %v7362_v49 = vld [vmem:[#allocation28_spill] sm:$0xff] }
 0x2cd   :  { %7352 = vst [vmem:[#allocation20_spill] sm:$0xff] %v4887_v42  ;;  %v937_v14 = vsub.f32 1.0, %v921_v19  ;;  %3780 = vtanh.f32 %v583_v29  ;;  %vm4923_vm12 = vcmp.eq.f32.partialorder %v497_v56, 8.507059e+37  ;;  %v1564_v50 = vrot.slane %v4748_v59, 2  ;;  %v7365_v56 = vld [vmem:[#allocation26_spill] sm:$0xff] }
 0x2ce   :  { %7354 = vst [vmem:[#allocation63_spill] sm:$0xff] %v4903_v34  ;;  %v925_v19 = vmul.f32 %v4780_v12, %v7362_v49  ;;  %v4932_v29 = vmul.f32 %v4802_v4, %v4519_v7  ;;  %v1636_v35 = vrot.slane %v4744_v60, 2  ;;  %v993_v42 = vmul.f32 %v4722_v47, %v7349_v58 }
 0x2cf   :  { %1025 = vperm.xlu2 %3679, %v7341_v62   ;;  %1051 = vperm.xlu1 %3681, %v7342_v16   ;;  %v4861_v62 = vperm.slane %v1565_v61, 0  ;;  %v585_v16 = vpop.f32.mrf.mxu2  ;;  %v491_v61 = vmul.f32 %v4792_v36, %v490_v52  ;;  %v923_v52 = vmul.f32 %v4738_v55, %v4405_v39  ;;  %v7356_v55 = vperm.slane %v4349_v38, 3 }
 0x2d0   :  { %3125 = vperm.xlu0 %3706, %v7346_v45   ;;  %v3779_v45 = vpop.eup %3778  ;;  %v586_v0 = vadd.f32 %v4531_v17, %v585_v16  ;;  %v4900_v15 = vpop.permute.xlu0 %2728  ;;  %v7357_v16 = vld [vmem:[#allocation25_spill] sm:$0xff]  ;;  %v953_v12 = vmul.f32 %v937_v14, %v7365_v56  ;;  %v997_v41 = vmul.f32 %v4782_v32, %v7362_v49  ;;  %v4963_v20 = vmul.f32 %v4804_v40, %v4519_v7  ;;  %v7369_v32 = vld [vmem:[#allocation30_spill] sm:$0xff] }
 0x2d1   :  { %v4898_v37 = vadd.f32 1.0, %v3779_v45  ;;  %7353 = vst [vmem:[#allocation27_spill] sm:$0xff] %v4900_v15  ;;  %v492_v28 = vadd.f32 %v4792_v36, %v491_v61  ;;  %v956_v18 = vmul.f32 %v940_v48, %v7357_v16  ;;  %v4936_v45 = vpop.permute.xlu2 %2085  ;;  %v4940_v61 = vsel %vm4851_vm14, %v485_v6, %v481_v33  ;;  %v7370_v49 = vld [vmem:[#allocation29_spill] sm:$0xff] }
 0x2d2   :  { %3782 = vtanh.f32 %v586_v0  ;;  %7363 = vst [vmem:[#allocation25_spill] sm:$0xff] %v4932_v29  ;;  %v500_v48 = vor.u32 1.1754944e-38, %v499_v21  ;;  %v939_v5 = vsub.f32 1.0, %v923_v52  ;;  %v1640_v16 = vrot.slane %v4744_v60, 6  ;;  %v7366_v21 = vld [vmem:[#allocation23_spill] sm:$0xff] }
 0x2d3   :  { %3784 = vrcp.f32 %v4893_v9  ;;  %7364 = vst [vmem:[#allocation28_spill] sm:$0xff] %v4936_v45  ;;  %v496_v0 = vsel %vm4919_vm11, %v4792_v36, %v492_v28  ;;  %v992_v6 = vmul.f32 %v4722_v47, %v7334_v1  ;;  %v7367_v52 = vsub.f32 1.0, %v4814_v2  ;;  %v4958_v14 = vpop.eup %3780 }
 0x2d4   :  { %3786 = vrcp.f32 %v4898_v37  ;;  %v941_v36 = vsub.f32 1.0, %v925_v19  ;;  %7368 = vst [vmem:[#allocation26_spill] sm:$0xff] %v4963_v20  ;;  %v4965_v58 = vperm.slane %v1564_v50, 0  ;;  %v4971_v47 = vsel %vm4923_vm12, %v500_v48, %v496_v0 }
 0x2d5   :  { %v952_v33 = vmul.f32 %v7367_v52, %v7366_v21  ;;  %v955_v1 = vmul.f32 %v939_v5, %v7369_v32  ;;  %v4974_v2 = vperm.slane %v1636_v35, 0  ;;  %v7371_v19 = vsub.f32 1.0, %v4828_v46  ;;  %v7374_v5 = vld [vmem:[#allocation32_spill] sm:$0xff] }
 0x2d6   :  { %v995_v50 = vmul.f32 %v4740_v53, %v4405_v39  ;;  %v4985_v20 = vperm.slane %v1640_v16, 0  ;;  %v7372_v48 = vperm.slane %v4349_v38, 2  ;;  %v4992_v35 = vadd.f32 %v993_v42, %v953_v12 }
 0x2d7   :  { %3680 = vset.pattern.permute.xlu2 %v4176_v24  ;;  %1064 = vperm.xlu1 %3681, %v7356_v55   ;;  %v1568_v55 = vrot.slane %v4748_v59, 6  ;;  %v954_v21 = vmul.f32 %v7371_v19, %v7370_v49  ;;  %v4987_v30 = vpop.f32.mrf.mxu2  ;;  %v7375_v0 = vperm.slane %v4748_v59, 0  ;;  %v994_v16 = vmul.f32 %v4740_v53, %v4354_v51  ;;  %v7380_v19 = vld [vmem:[#allocation33_spill] sm:$0xff] }
 0x2d8   :  { %v4967_v56 = vpop.eup %3782  ;;  %7373 = vst [vmem:[#allocation23_spill] sm:$0xff] %v4992_v35  ;;  %v5001_v39 = vpop.permute.xlu0 %2793  ;;  %v5007_v49 = vadd.f32 %v996_v54, %v956_v18  ;;  %v5026_v54 = vadd.f32 %v995_v50, %v955_v1  ;;  %v1638_v50 = vrot.slane %v4744_v60, 4  ;;  %v7396_v1 = vld [vmem:[#allocation35_spill] sm:$0xff]  ;;  %vm508_vm13 = vweird.f32 %v4893_v9 }
 0x2d9   :  { %v4979_v52 = vpop.eup %3784  ;;  %v4983_v28 = vperm.slane %v1568_v55, 0  ;;  %v4999_v32 = vmul.f32 %v7375_v0, %v7374_v5  ;;  %7377 = vst [vmem:[#allocation29_spill] sm:$0xff] %v5001_v39  ;;  %v5003_v55 = vadd.f32 %v992_v6, %v952_v33  ;;  %v7381_v42 = vmov %v7375_v0  ;;  %v5019_v35 = vpop.permute.xlu1 %2124  ;;  %v3814_v33 = vld [vmem:[#allocation2 + $0x78] sm:$0xff] }
 0x2da   :  { %v4994_v46 = vpop.eup %3786  ;;  %7379 = vst [vmem:[#allocation66_spill] sm:$0xff] %v5007_v49  ;;  %v5012_v12 = vmul.f32 %v7381_v42, %v7380_v19  ;;  %v5021_v6 = vpop.permute.xlu2 %2104  ;;  %v957_v39 = vmul.f32 %v3814_v33, %v941_v36  ;;  %v504_v53 = vmul.f32 %v4979_v52, %v4893_v9  ;;  %v5028_v18 = vadd.f32 %v994_v16, %v954_v21 }
 0x2db   :  { %7376 = vst [vmem:[#allocation30_spill] sm:$0xff] %v4999_v32  ;;  %v7388_v42 = vperm.slane %v4744_v60, 0  ;;  %v1566_v36 = vrot.slane %v4748_v59, 4  ;;  %v519_v33 = vmul.f32 %v4994_v46, %v4898_v37  ;;  %v2240_v16 = vrot.slane %v4971_v47, 2 }
 0x2dc   :  { %7378 = vst [vmem:[#allocation65_spill] sm:$0xff] %v5003_v55  ;;  %v2312_v51 = vrot.slane %v4967_v56, 2  ;;  %v505_v34 = vsub.f32 1.0, %v504_v53  ;;  %v5077_v32 = vperm.slane %v1638_v50, 0  ;;  %vm509_vm14 = vweird.f32 %v4979_v52 }
 0x2dd   :  { %7382 = vst [vmem:[#allocation67_spill] sm:$0xff] %v5012_v12  ;;  %v5033_v49 = vmul.f32 %v7388_v42, %v7374_v5  ;;  %v7390_v0 = vmov %v7388_v42  ;;  %v5067_v42 = vperm.slane %v1566_v36, 0  ;;  %v514_v12 = vand.u32 2147483648, %v4893_v9  ;;  %vm5142_vm10 = vmor %vm508_vm13, %vm509_vm14 }
 0x2de   :  { %7385 = vst [vmem:[#allocation69_spill] sm:$0xff] %v5019_v35  ;;  %v5038_v55 = vmul.f32 %v7390_v0, %v7380_v19  ;;  %v520_v0 = vsub.f32 1.0, %v519_v33  ;;  %v5079_v53 = vperm.slane %v2240_v16, 0  ;;  %v5087_v33 = vmul.f32 %v4804_v40, %v7396_v1 }
 0x2df   :  { %1045 = vperm.xlu2 %3680, %v7372_v48   ;;  %3684 = vset.pattern.permute.xlu1 %v4176_v24  ;;  %v7383_v48 = vld [vmem:[#allocation45_spill] sm:$0xff]  ;;  %7386 = vst [vmem:[#allocation70_spill] sm:$0xff] %v5021_v6  ;;  %v591_v7 = vpop.f32.mrf.mxu2  ;;  %vm523_vm1 = vweird.f32 %v4898_v37  ;;  %vm524_vm9 = vweird.f32 %v4994_v46  ;;  %v2311_v19 = vrot.slane %v4967_v56, 1 }
 0x2e0   :  { %v5016_v29 = vmul.f32 %v4861_v62, %v7383_v48  ;;  %7387 = vst [vmem:[#allocation71_spill] sm:$0xff] %v5028_v18  ;;  %v5046_v21 = vmul.f32 %v4863_v27, %v7383_v48  ;;  %v5053_v18 = vadd.f32 %v997_v41, %v957_v39  ;;  %v5061_v48 = vmul.f32 %v4802_v4, %v7396_v1  ;;  %vm5159_vm11 = vmor %vm523_vm1, %vm524_vm9 }
 0x2e1   :  { %7389 = vst [vmem:[#allocation72_spill] sm:$0xff] %v5033_v49  ;;  %v1639_v41 = vrot.slane %v4744_v60, 5  ;;  %v7399_v39 = vperm.slane %v4349_v38, 3  ;;  %v512_v4 = vand.u32 2147483647, %v4893_v9  ;;  %v521_v40 = vmul.f32 %v4994_v46, %v520_v0 }
 0x2e2   :  { %7384 = vst [vmem:[#allocation68_spill] sm:$0xff] %v5016_v29  ;;  %v1567_v29 = vrot.slane %v4748_v59, 5  ;;  %v592_v50 = vadd.f32 %v4531_v17, %v591_v7  ;;  %v2315_v0 = vrot.slane %v4967_v56, 5  ;;  %v529_v7 = vand.u32 2147483648, %v4898_v37 }
 0x2e3   :  { %7391 = vst [vmem:[#allocation73_spill] sm:$0xff] %v5038_v55  ;;  %v7394_v55 = vld [vmem:[#allocation34_spill] sm:$0xff]  ;;  %vm5112_vm15 = vcmp.eq.f32.partialorder %v512_v4, 8.507059e+37 }
 0x2e4   :  { %7392 = vst [vmem:[#allocation74_spill] sm:$0xff] %v5046_v21  ;;  %v5057_v31 = vmul.f32 %v4965_v58, %v7394_v55  ;;  %v7397_v21 = vld [vmem:[#allocation48_spill] sm:$0xff]  ;;  %v5083_v36 = vmul.f32 %v4974_v2, %v7394_v55  ;;  %v506_v55 = vmul.f32 %v4979_v52, %v505_v34  ;;  %v5103_v5 = vperm.slane %v1567_v29, 0 }
 0x2e5   :  { %7393 = vst [vmem:[#allocation75_spill] sm:$0xff] %v5053_v18  ;;  %v5065_v49 = vmul.f32 %v4983_v28, %v7397_v21  ;;  %v7400_v18 = vperm.slane %v4349_v38, 5  ;;  %v515_v34 = vor.u32 1.1754944e-38, %v514_v12  ;;  %v2243_v29 = vrot.slane %v4971_v47, 5 }
 0x2e6   :  { %7395 = vst [vmem:[#allocation76_spill] sm:$0xff] %v5057_v31  ;;  %v507_v12 = vadd.f32 %v4979_v52, %v506_v55  ;;  %v527_v55 = vand.u32 2147483647, %v4898_v37  ;;  %3788 = vtanh.f32 %v592_v50  ;;  %v1641_v37 = vrot.slane %v4744_v60, 7 }
 0x2e7   :  { %7398 = vst [vmem:[#allocation35_spill] sm:$0xff] %v5065_v49  ;;  %1058 = vperm.xlu2 %3680, %v7399_v39   ;;  %1084 = vperm.xlu1 %3684, %v7400_v18   ;;  %v5091_v39 = vmul.f32 %v4985_v20, %v7397_v21  ;;  %v5093_v18 = vperm.slane %v2312_v51, 0  ;;  %v5107_v51 = vpop.permute.xlu1 %2709  ;;  %v5109_v21 = vpop.permute.xlu2 %2117  ;;  %v7409_v49 = vld [vmem:[#allocation38_spill] sm:$0xff] }
 0x2e8   :  { %7401 = vst [vmem:[#allocation77_spill] sm:$0xff] %v5083_v36  ;;  %v5099_v36 = vpop.permute.xlu0 %1038  ;;  %v5127_v4 = vmul.f32 %v4965_v58, %v7409_v49  ;;  %v522_v58 = vadd.f32 %v4994_v46, %v521_v40  ;;  %v589_v40 = vadd.f32 %v4531_v17, %v4987_v30  ;;  %v511_v17 = vsel %vm5142_vm10, %v4979_v52, %v507_v12 }
 0x2e9   :  { %7402 = vst [vmem:[#allocation78_spill] sm:$0xff] %v5091_v39  ;;  %v5105_v39 = vperm.slane %v1639_v41, 0  ;;  %v7407_v41 = vld [vmem:[#allocation37_spill] sm:$0xff]  ;;  %vm528_vm12 = vcmp.eq.f32.partialorder %v527_v55, 8.507059e+37  ;;  %v5197_v52 = vmul.f32 %v5079_v53, %v4699_v63 }
 0x2ea   :  { %7403 = vst [vmem:[#allocation79_spill] sm:$0xff] %v5107_v51  ;;  %v5123_v16 = vmul.f32 %v4861_v62, %v7407_v41  ;;  %v5133_v31 = vmul.f32 %v4863_v27, %v7407_v41  ;;  %v7413_v51 = vperm.slane %v4971_v47, 0  ;;  %v7417_v27 = vperm.slane %v4349_v38, 6 }
 0x2eb   :  { %7404 = vst [vmem:[#allocation80_spill] sm:$0xff] %v5109_v21  ;;  %v7412_v21 = vld [vmem:[#allocation51_spill] sm:$0xff]  ;;  %v5153_v41 = vmul.f32 %v4974_v2, %v7409_v49  ;;  %v5171_v2 = vperm.slane %v2243_v29, 0  ;;  %v526_v60 = vsel %vm5159_vm11, %v4994_v46, %v522_v58  ;;  %3790 = vtanh.f32 %v589_v40 }
 0x2ec   :  { %7408 = vst [vmem:[#allocation81_spill] sm:$0xff] %v5123_v16  ;;  %v5138_v6 = vmul.f32 %v7413_v51, %v7412_v21  ;;  %v1569_v51 = vrot.slane %v4748_v59, 7  ;;  %v530_v59 = vor.u32 1.1754944e-38, %v529_v7  ;;  %v5201_v7 = vsel %vm5112_vm15, %v515_v34, %v511_v17  ;;  %v5214_v9 = vpop.eup %3788  ;;  %v393_v17 = vpop.f32.mrf.mxu1 }
 0x2ed   :  { %7410 = vst [vmem:[#allocation82_spill] sm:$0xff] %v5127_v4  ;;  %v5207_v46 = vperm.slane %v1641_v37, 0  ;;  %v2239_v58 = vrot.slane %v4971_v47, 1  ;;  %v2245_v34 = vrot.slane %v4971_v47, 7  ;;  %v5228_v49 = vmul.f32 %v5093_v18, %v4699_v63  ;;  %v7435_v37 = vld [vmem:[#allocation42_spill] sm:$0xff] }
 0x2ee   :  { %7411 = vst [vmem:[#allocation83_spill] sm:$0xff] %v5133_v31  ;;  %v1577_v12 = vperm.slane %v1569_v51, 0  ;;  %v5216_v40 = vsel %vm528_vm12, %v530_v59, %v526_v60  ;;  %v1225_v51 = vrot.slane %v4730_v10, 1  ;;  %v2317_v59 = vrot.slane %v4967_v56, 7 }
 0x2ef   :  { %7414 = vst [vmem:[#allocation84_spill] sm:$0xff] %v5138_v6  ;;  %3683 = vset.pattern.permute.xlu2 %v4181_v25  ;;  %1097 = vperm.xlu1 %3684, %v7417_v27   ;;  %v7421_v27 = vperm.slane %v4967_v56, 0  ;;  %v5212_v55 = vpop.permute.xlu2 %2715  ;;  %v7434_v60 = vperm.slane %v4349_v38, 4  ;;  %v2915_v63 = vrot.slane %v5216_v40, 1  ;;  %v5253_v6 = vmul.f32 %v5171_v2, %v4768_v44 }
 0x2f0   :  { %7418 = vst [vmem:[#allocation85_spill] sm:$0xff] %v5153_v41  ;;  %v5173_v41 = vperm.slane %v2315_v0, 0  ;;  %v5181_v30 = vpop.permute.xlu0 %1071  ;;  %v7425_v0 = vld [vmem:[#allocation40_spill] sm:$0xff]  ;;  %v2920_v16 = vrot.slane %v5216_v40, 6 }
 0x2f1   :  { %v5169_v31 = vmul.f32 %v7421_v27, %v7412_v21  ;;  %v7423_v27 = vld [vmem:[#allocation39_spill] sm:$0xff]  ;;  %v5193_v35 = vmul.f32 %v5067_v42, %v7425_v0  ;;  %7426 = vst [vmem:[#allocation40_spill] sm:$0xff] %v5197_v52  ;;  %v5224_v50 = vmul.f32 %v5077_v32, %v7425_v0  ;;  %v5238_v21 = vmul.f32 %v5103_v5, %v7435_v37  ;;  %v5249_v4 = vpop.eup %3790 }
 0x2f2   :  { %v5186_v29 = vmul.f32 %v5067_v42, %v7423_v27  ;;  %7427 = vst [vmem:[#allocation88_spill] sm:$0xff] %v5201_v7  ;;  %v5205_v62 = vmul.f32 %v5077_v32, %v7423_v27  ;;  %v5210_v42 = vpop.permute.xlu1 %2722  ;;  %v7437_v32 = vld [vmem:[#allocation43_spill] sm:$0xff]  ;;  %v5257_v52 = vperm.slane %v2245_v34, 0  ;;  %v5265_v27 = vmul.f32 %v5105_v39, %v7435_v37 }
 0x2f3   :  { %7422 = vst [vmem:[#allocation86_spill] sm:$0xff] %v5169_v31  ;;  %v5255_v31 = vperm.slane %v2311_v19, 0  ;;  %v5280_v37 = vmul.f32 %v5173_v41, %v4768_v44  ;;  %v2241_v34 = vrot.slane %v4971_v47, 3  ;;  %v7447_v44 = vld [vmem:[#allocation46_spill] sm:$0xff]  ;;  %v7451_v19 = vperm.slane %v4349_v38, 5 }
 0x2f4   :  { %7424 = vst [vmem:[#allocation87_spill] sm:$0xff] %v5186_v29  ;;  %v394_v29 = vadd.f32 %v4471_v11, %v393_v17  ;;  %v5269_v11 = vmul.f32 %v5105_v39, %v7437_v32  ;;  %v5271_v17 = vperm.slane %v2317_v59, 0 }
 0x2f5   :  { %7428 = vst [vmem:[#allocation89_spill] sm:$0xff] %v5205_v62  ;;  %v5242_v62 = vmul.f32 %v5103_v5, %v7437_v32  ;;  %v5259_v5 = vperm.slane %v1225_v51, 0  ;;  %v2992_v51 = vrot.slane %v5214_v9, 6 }
 0x2f6   :  { %7429 = vst [vmem:[#allocation90_spill] sm:$0xff] %v5210_v42  ;;  %v3602_v32 = vmul.f32 -1.442695, %v394_v29  ;;  %v1297_v29 = vrot.slane %v4818_v26, 1 }
 0x2f7   :  { %7430 = vst [vmem:[#allocation91_spill] sm:$0xff] %v5212_v55  ;;  %1077 = vperm.xlu2 %3683, %v7434_v60   ;;  %3687 = vset.pattern.permute.xlu1 %v4181_v25  ;;  %v2987_v60 = vrot.slane %v5214_v9, 1  ;;  %v7459_v55 = vld [vmem:[#allocation50_spill] sm:$0xff] }
 0x2f8   :  { %7431 = vst [vmem:[#allocation92_spill] sm:$0xff] %v5214_v9  ;;  %3792 = vpow2.f32 %v3602_v32  ;;  %v5346_v32 = vmul.f32 %v5255_v31, %v7459_v55 }
 0x2f9   :  { %7432 = vst [vmem:[#allocation93_spill] sm:$0xff] %v5216_v40  ;;  %v5284_v39 = vperm.slane %v2987_v60, 0 }
 0x2fa   :  { %7433 = vst [vmem:[#allocation94_spill] sm:$0xff] %v5228_v49  ;;  %v5244_v49 = vperm.slane %v2239_v58, 0  ;;  %v5261_v58 = vpop.permute.xlu0 %1103  ;;  %v5286_v59 = vpop.permute.xlu1 %2741 }
 0x2fb   :  { %7436 = vst [vmem:[#allocation95_spill] sm:$0xff] %v5238_v21  ;;  %v1251_v21 = vmul.f32 %v5259_v5, %v5099_v36 }
 0x2fc   :  { %7438 = vst [vmem:[#allocation96_spill] sm:$0xff] %v5242_v62  ;;  %v2313_v62 = vrot.slane %v4967_v56, 3 }
 0x2fd   :  { %7439 = vst [vmem:[#allocation97_spill] sm:$0xff] %v5249_v4  ;;  %v1228_v4 = vrot.slane %v4730_v10, 4 }
 0x2fe   :  { %7440 = vst [vmem:[#allocation98_spill] sm:$0xff] %v5253_v6  ;;  %v7452_v6 = vperm.slane %v4349_v38, 7 }
 0x2ff   :  { %7441 = vst [vmem:[#allocation99_spill] sm:$0xff] %v5259_v5  ;;  %1090 = vperm.xlu2 %3683, %v7451_v19   ;;  %v5311_v5 = vmul.f32 %v5207_v46, %v7447_v44  ;;  %v5326_v19 = vmul.f32 %v5244_v49, %v7459_v55  ;;  %v1300_v55 = vrot.slane %v4818_v26, 4 }
 0x300   :  { %7442 = vst [vmem:[#allocation100_spill] sm:$0xff] %v5265_v27  ;;  %v5282_v27 = vperm.slane %v2915_v63, 0  ;;  %v7449_v63 = vld [vmem:[#allocation47_spill] sm:$0xff]  ;;  %1116 = vperm.xlu1 %3687, %v7452_v6   ;;  %v5330_v6 = vmul.f32 %v5257_v52, %v4824_v43 }
 0x301   :  { %7443 = vst [vmem:[#allocation101_spill] sm:$0xff] %v5269_v11  ;;  %v5288_v11 = vpop.permute.xlu2 %2735  ;;  %v5300_v60 = vmul.f32 %v4983_v28, %v7449_v63  ;;  %v5317_v28 = vperm.slane %v2992_v51, 0  ;;  %v2242_v51 = vrot.slane %v4971_v47, 4 }
 0x302   :  { %7444 = vst [vmem:[#allocation102_spill] sm:$0xff] %v5280_v37  ;;  %v5296_v37 = vmul.f32 %v1577_v12, %v7447_v44  ;;  %v5332_v44 = vperm.slane %v2313_v62, 0  ;;  %v1230_v62 = vrot.slane %v4730_v10, 6 }
 0x303   :  { %7445 = vst [vmem:[#allocation103_spill] sm:$0xff] %v5286_v59  ;;  %v5302_v59 = vperm.slane %v2920_v16, 0  ;;  %v5319_v16 = vperm.slane %v1228_v4, 0 }
 0x304   :  { %7446 = vst [vmem:[#allocation104_spill] sm:$0xff] %v5288_v11  ;;  %v5315_v11 = vmul.f32 %v4985_v20, %v7449_v63  ;;  %v1267_v20 = vsub.f32 1.0, %v1251_v21 }
 0x305   :  { %7448 = vst [vmem:[#allocation105_spill] sm:$0xff] %v5296_v37  ;;  %v1256_v21 = vmul.f32 %v5319_v16, %v5181_v30  ;;  %v2250_v37 = vperm.slane %v2242_v51, 0 }
 0x306   :  { %7450 = vst [vmem:[#allocation47_spill] sm:$0xff] %v5302_v59  ;;  %v7457_v59 = vld [vmem:[#allocation49_spill] sm:$0xff] }
 0x307   :  { %7453 = vst [vmem:[#allocation106_spill] sm:$0xff] %v5311_v5  ;;  %v5322_v7 = vmul.f32 %v1577_v12, %v7457_v59  ;;  %v2249_v5 = vperm.slane %v2241_v34, 0  ;;  %v5342_v42 = vmul.f32 %v5207_v46, %v7457_v59  ;;  %v5351_v34 = vpop.permute.xlu0 %1701  ;;  %v5358_v46 = vmul.f32 %v5271_v17, %v4824_v43  ;;  %v3793_v59 = vpop.eup %3792  ;;  %3686 = vset.pattern.permute.xlu2 %v4176_v24 }
 0x308   :  { %7454 = vst [vmem:[#allocation107_spill] sm:$0xff] %v5315_v11  ;;  %v2314_v11 = vrot.slane %v4967_v56, 4  ;;  %v7467_v12 = vperm.slane %v4971_v47, 0  ;;  %3688 = vset.pattern.permute.xlu1 %v4176_v24  ;;  %v1272_v43 = vsub.f32 1.0, %v1256_v21  ;;  %v5409_v21 = vadd.f32 1.0, %v3793_v59 }
 0x309   :  { %7455 = vst [vmem:[#allocation108_spill] sm:$0xff] %v5317_v28  ;;  %v5337_v28 = vperm.slane %v1297_v29, 0  ;;  %v5368_v29 = vmul.f32 %v5093_v18, %v4707_v23  ;;  %v5384_v51 = vpop.permute.xlu2 %2748  ;;  %v5390_v18 = vmul.f32 %v5282_v27, %v4900_v15 }
 0x30a   :  { %7456 = vst [vmem:[#allocation109_spill] sm:$0xff] %v5319_v16  ;;  %v5373_v4 = vmul.f32 %v7467_v12, %v4709_v22  ;;  %v7475_v16 = vld [vmem:[#allocation58_spill] sm:$0xff]  ;;  %3794 = vrcp.f32 %v5409_v21  ;;  %vm538_vm13 = vweird.f32 %v5409_v21 }
 0x30b   :  { %7458 = vst [vmem:[#allocation110_spill] sm:$0xff] %v5322_v7  ;;  %v1323_v12 = vmul.f32 %v5337_v28, %v5099_v36  ;;  %v5402_v7 = vmul.f32 %v5244_v49, %v4788_v8  ;;  %v1121_v49 = vmul.f32 %v5099_v36, %v4732_v3 }
 0x30c   :  { %7460 = vst [vmem:[#allocation111_spill] sm:$0xff] %v5326_v19  ;;  %v7479_v19 = vld [vmem:[#allocation22_spill] sm:$0xff] }
 0x30d   :  { %7461 = vst [vmem:[#allocation112_spill] sm:$0xff] %v5330_v6  ;;  %v5380_v6 = vperm.slane %v2314_v11, 0  ;;  %v5398_v11 = vmul.f32 %v5284_v39, %v4900_v15  ;;  %v5413_v15 = vmul.f32 %v2249_v5, %v7475_v16 }
 0x30e   :  { %7462 = vst [vmem:[#allocation113_spill] sm:$0xff] %v5342_v42  ;;  %v5362_v42 = vmul.f32 %v5079_v53, %v4707_v23  ;;  %v2244_v23 = vrot.slane %v4971_v47, 6 }
 0x30f   :  { %7463 = vst [vmem:[#allocation114_spill] sm:$0xff] %v5346_v32  ;;  %v1283_v32 = vmul.f32 %v1267_v20, %v4732_v3  ;;  %v5382_v20 = vpop.permute.xlu1 %2754 }
 0x310   :  { %7464 = vst [vmem:[#allocation115_spill] sm:$0xff] %v5358_v46  ;;  %v7468_v46 = vperm.slane %v4967_v56, 0  ;;  %v5432_v3 = vperm.slane %v2244_v23, 0  ;;  %v5449_v23 = vsel %vm131_vm0, %v1121_v49, 0.0  ;;  %v7490_v49 = vsub.f32 1.0, %v5061_v48 }
 0x311   :  { %7465 = vst [vmem:[#allocation116_spill] sm:$0xff] %v5362_v42 }
 0x312   :  { %7466 = vst [vmem:[#allocation117_spill] sm:$0xff] %v5368_v29  ;;  %v5378_v53 = vmul.f32 %v7468_v46, %v4709_v22  ;;  %v5394_v46 = vperm.slane %v1230_v62, 0  ;;  %v2316_v29 = vrot.slane %v4967_v56, 6  ;;  %v5407_v22 = vperm.slane %v1300_v55, 0 }
 0x313   :  { %7470 = vst [vmem:[#allocation119_spill] sm:$0xff] %v5382_v20  ;;  %v5421_v56 = vmul.f32 %v5255_v31, %v4788_v8  ;;  %v1288_v55 = vmul.f32 %v1272_v43, %v4865_v13  ;;  %v5430_v62 = vmul.f32 %v2250_v37, %v7479_v19  ;;  %v7481_v31 = vld [vmem:[#allocation21_spill] sm:$0xff]  ;;  %v7487_v8 = vld [vmem:[#allocation31_spill] sm:$0xff] }
 0x314   :  { %7469 = vst [vmem:[#allocation118_spill] sm:$0xff] %v5378_v53  ;;  %v1339_v53 = vadd.f32 %v1323_v12, %v1283_v32  ;;  %v1261_v59 = vmul.f32 %v5394_v46, %v5261_v58  ;;  %v5426_v32 = vpop.permute.xlu0 %1734  ;;  %v5434_v36 = vperm.slane %v2316_v29, 0  ;;  %v1328_v43 = vmul.f32 %v5407_v22, %v5181_v30 }
 0x315   :  { %7471 = vst [vmem:[#allocation120_spill] sm:$0xff] %v5384_v51  ;;  %v5446_v12 = vmul.f32 %v5332_v44, %v7475_v16  ;;  %v7488_v42 = vperm.slane %v7487_v8, 0  ;;  %v5495_v16 = vmul.f32 %v5432_v3, %v4909_v57 }
 0x316   :  { %7472 = vst [vmem:[#allocation121_spill] sm:$0xff] %v5390_v18  ;;  %v1459_v47 = vmul.f32 %v7396_v1, %v1339_v53  ;;  %v5438_v18 = vmul.f32 %v2249_v5, %v7481_v31  ;;  %v5455_v5 = vpop.permute.xlu2 %2767 }
 0x317   :  { %7473 = vst [vmem:[#allocation122_spill] sm:$0xff] %v5398_v11  ;;  %v1302_v11 = vrot.slane %v4818_v26, 6  ;;  %v5453_v1 = vpop.permute.xlu1 %2774  ;;  %1695 = vperm.xlu1 %3688, %v7488_v42   ;;  %v3715_v42 = vld [vmem:[%s7036_s10] ss:$0 sm:$0xff] }
 0x318   :  { %7474 = vst [vmem:[#allocation123_spill] sm:$0xff] %v5402_v7  ;;  %v7486_v7 = vperm.slane %v4349_v38, 7  ;;  %v5473_v38 = vmul.f32 %v2250_v37, %v4936_v45 }
 0x319   :  { %7476 = vst [vmem:[#allocation124_spill] sm:$0xff] %v5413_v15  ;;  %v5451_v29 = vperm.slane %v1302_v11, 0  ;;  %v1277_v15 = vsub.f32 1.0, %v1261_v59  ;;  %v1621_v11 = vmul.f32 %v7490_v49, %v1339_v53  ;;  %v630_v59 = vpop.f32.mrf.mxu3  ;;  %v5490_v49 = vpop.eup %3794  ;;  %v5506_v53 = vmul.f32 %v5380_v6, %v4936_v45 }
 0x31a   :  { %7477 = vst [vmem:[#allocation125_spill] sm:$0xff] %v5421_v56  ;;  %1110 = vperm.xlu2 %3686, %v7486_v7   ;;  %v5463_v56 = vmul.f32 %v5380_v6, %v7479_v19  ;;  %v1126_v7 = vmul.f32 %v5181_v30, %v4865_v13  ;;  %v1903_v13 = vrot.slane %v4940_v61, 3  ;;  %v1975_v30 = vrot.slane %v4958_v14, 3 }
 0x31b   :  { %7478 = vst [vmem:[#allocation126_spill] sm:$0xff] %v5426_v32  ;;  %v1293_v48 = vmul.f32 %v1277_v15, %v5026_v54  ;;  %v5501_v37 = vadd.f32 %v5087_v33, %v1621_v11  ;;  %v2916_v15 = vrot.slane %v5216_v40, 2  ;;  %v7497_v33 = vsub.f32 1.0, %v5193_v35 }
 0x31c   :  { %7480 = vst [vmem:[#allocation127_spill] sm:$0xff] %v5430_v62  ;;  %v5509_v19 = vsel %vm131_vm0, %v1126_v7, 0.0  ;;  %v2988_v62 = vrot.slane %v5214_v9, 2  ;;  %v5521_v6 = vperm.slane %v1903_v13, 0  ;;  %v534_v7 = vmul.f32 %v5490_v49, %v5409_v21 }
 0x31d   :  { %7482 = vst [vmem:[#allocation128_spill] sm:$0xff] %v5438_v18  ;;  %v7512_v35 = vperm.slane %v5216_v40, 0  ;;  %vm539_vm14 = vweird.f32 %v5490_v49 }
 0x31e   :  { %7483 = vst [vmem:[#allocation129_spill] sm:$0xff] %v5446_v12  ;;  %v1344_v12 = vadd.f32 %v1328_v43, %v1288_v55  ;;  %v5481_v55 = vsel %vm131_vm0, %v1459_v47, 0.0  ;;  %v5519_v43 = vmul.f32 %v5434_v36, %v4909_v57  ;;  %v2989_v57 = vrot.slane %v5214_v9, 3  ;;  %v5548_v45 = vpop.permute.xlu2 %2780  ;;  %vm5664_vm15 = vmor %vm538_vm13, %vm539_vm14 }
 0x31f   :  { %7484 = vst [vmem:[#allocation130_spill] sm:$0xff] %v5453_v1  ;;  %v5470_v1 = vmul.f32 %v5332_v44, %v7481_v31  ;;  %v5498_v44 = vpop.permute.xlu0 %1766  ;;  %3689 = vset.pattern.permute.xlu1 %v4181_v25 }
 0x320   :  { %7485 = vst [vmem:[#allocation131_spill] sm:$0xff] %v5455_v5  ;;  %v1464_v47 = vmul.f32 %v7425_v0, %v1344_v12  ;;  %v631_v0 = vadd.f32 %v3715_v42, %v630_v59  ;;  %v1626_v11 = vmul.f32 %v7497_v33, %v1344_v12  ;;  %v7501_v42 = vperm.slane %v7487_v8, 1  ;;  %v7502_v12 = vld [vmem:[#allocation69_spill] sm:$0xff] }
 0x321   :  { %7489 = vst [vmem:[#allocation31_spill] sm:$0xff] %v5463_v56  ;;  %v1333_v56 = vmul.f32 %v5451_v29, %v5261_v58  ;;  %v5536_v33 = vmul.f32 %v5257_v52, %v7502_v12  ;;  %v5552_v52 = vmul.f32 %v5271_v17, %v7502_v12 }
 0x322   :  { %7491 = vst [vmem:[#allocation132_spill] sm:$0xff] %v5470_v1  ;;  %1708 = vperm.xlu2 %3686, %v7501_v42   ;;  %v5531_v59 = vsel %vm131_vm0, %v1464_v47, 0.0  ;;  %v2917_v42 = vrot.slane %v5216_v40, 3  ;;  %v5546_v47 = vpop.permute.xlu1 %2787 }
 0x323   :  { %7492 = vst [vmem:[#allocation133_spill] sm:$0xff] %v5473_v38  ;;  %v1349_v13 = vadd.f32 %v1333_v56, %v1293_v48  ;;  %v5554_v56 = vperm.slane %v2916_v15, 0  ;;  %v5556_v48 = vperm.slane %v2988_v62, 0  ;;  %v535_v15 = vsub.f32 1.0, %v534_v7 }
 0x324   :  { %7493 = vst [vmem:[#allocation134_spill] sm:$0xff] %v5495_v16  ;;  %v5590_v7 = vperm.slane %v2989_v57, 0  ;;  %v7527_v57 = vld [vmem:[#allocation91_spill] sm:$0xff] }
 0x325   :  { %7494 = vst [vmem:[#allocation135_spill] sm:$0xff] %v5498_v44  ;;  %v1469_v12 = vmul.f32 %v7449_v63, %v1349_v13  ;;  %v7517_v63 = vperm.slane %v5214_v9, 0 }
 0x326   :  { %7495 = vst [vmem:[#allocation136_spill] sm:$0xff] %v5501_v37 }
 0x327   :  { %7496 = vst [vmem:[#allocation137_spill] sm:$0xff] %v5506_v53  ;;  %v5523_v53 = vperm.slane %v1975_v30, 0  ;;  %v7504_v30 = vld [vmem:[#allocation70_spill] sm:$0xff] }
 0x328   :  { %7498 = vst [vmem:[#allocation138_spill] sm:$0xff] %v5519_v43  ;;  %v5540_v38 = vmul.f32 %v5171_v2, %v7504_v30  ;;  %v1131_v43 = vmul.f32 %v5261_v58, %v5026_v54  ;;  %v5559_v2 = vadd.f32 %v5224_v50, %v1626_v11  ;;  %v5563_v54 = vmul.f32 %v5173_v41, %v7504_v30  ;;  %v7511_v58 = vld [vmem:[#allocation79_spill] sm:$0xff] }
 0x329   :  { %7499 = vst [vmem:[#allocation139_spill] sm:$0xff] %v5521_v6  ;;  %v5568_v16 = vmul.f32 %v7512_v35, %v7511_v58  ;;  %v7516_v50 = vperm.slane %v4940_v61, 0  ;;  %v1905_v41 = vrot.slane %v4940_v61, 5  ;;  %v5595_v62 = vmul.f32 %v7517_v63, %v7511_v58 }
 0x32a   :  { %7500 = vst [vmem:[#allocation140_spill] sm:$0xff] %v5523_v53  ;;  %v7520_v35 = vsub.f32 1.0, %v5300_v60  ;;  %v536_v63 = vmul.f32 %v5490_v49, %v535_v15  ;;  %v5617_v60 = vsel %vm131_vm0, %v1469_v12, 0.0  ;;  %v7528_v15 = vperm.slane %v5216_v40, 0  ;;  %v5633_v12 = vpop.permute.xlu1 %2806 }
 0x32b   :  { %7503 = vst [vmem:[#allocation141_spill] sm:$0xff] %v5536_v33  ;;  %v5579_v11 = vmul.f32 %v7516_v50, %v5351_v34  ;;  %v3449_v33 = vpop.f32.mrf.mxu0  ;;  %v5734_v30 = vmul.f32 %v5590_v7, %v5382_v20 }
 0x32c   :  { %7505 = vst [vmem:[#allocation142_spill] sm:$0xff] %v5540_v38  ;;  %v7521_v38 = vperm.slane %v4958_v14, 0 }
 0x32d   :  { %7506 = vst [vmem:[#allocation143_spill] sm:$0xff] %v5546_v47 }
 0x32e   :  { %7507 = vst [vmem:[#allocation144_spill] sm:$0xff] %v5548_v45  ;;  %v7514_v45 = vld [vmem:[#allocation80_spill] sm:$0xff]  ;;  %v5609_v1 = vmul.f32 %v7521_v38, %v5351_v34  ;;  %v5624_v38 = vperm.slane %v1905_v41, 0  ;;  %v3815_v41 = vld [vmem:[%s7033_s7] ss:$0 sm:$0xff] }
 0x32f   :  { %7508 = vst [vmem:[#allocation145_spill] sm:$0xff] %v5552_v52  ;;  %v5572_v17 = vmul.f32 %v5432_v3, %v7514_v45  ;;  %v5582_v52 = vpop.permute.xlu0 %2397  ;;  %v5588_v3 = vperm.slane %v2917_v42, 0  ;;  %v5599_v50 = vmul.f32 %v5434_v36, %v7514_v45  ;;  %v7522_v36 = vperm.slane %v7487_v8, 2 }
 0x330   :  { %7509 = vst [vmem:[#allocation146_spill] sm:$0xff] %v5559_v2  ;;  %v5586_v2 = vsel %vm131_vm0, %v1131_v43, 0.0  ;;  %v1631_v43 = vmul.f32 %v7520_v35, %v1349_v13  ;;  %v7524_v35 = vld [vmem:[#allocation90_spill] sm:$0xff] }
 0x331   :  { %7510 = vst [vmem:[#allocation147_spill] sm:$0xff] %v5563_v54  ;;  %v1977_v54 = vrot.slane %v4958_v14, 5  ;;  %1721 = vperm.xlu2 %3686, %v7522_v36   ;;  %v5622_v42 = vmul.f32 %v5282_v27, %v7524_v35  ;;  %v3450_v36 = vadd.f32 %v3449_v33, %v631_v0  ;;  %v544_v27 = vand.u32 2147483648, %v5409_v21 }
 0x332   :  { %7513 = vst [vmem:[#allocation148_spill] sm:$0xff] %v5568_v16  ;;  %v5629_v16 = vmul.f32 %v7528_v15, %v7527_v57  ;;  %v7533_v15 = vld [vmem:[#allocation107_spill] sm:$0xff]  ;;  %v5648_v0 = vmul.f32 %v5284_v39, %v7524_v35  ;;  %v7536_v33 = vperm.slane %v5214_v9, 0  ;;  %v1020_v58 = vpop.permute.xlu1 %1019 }
 0x333   :  { %7515 = vst [vmem:[#allocation149_spill] sm:$0xff] %v5572_v17  ;;  %v5637_v13 = vperm.slane %v1977_v54, 0  ;;  %v5644_v45 = vadd.f32 %v7533_v15, %v1631_v43  ;;  %v537_v54 = vadd.f32 %v5490_v49, %v536_v63  ;;  %v2918_v43 = vrot.slane %v5216_v40, 4  ;;  %v7543_v35 = vld [vmem:[#allocation103_spill] sm:$0xff] }
 0x334   :  { %7518 = vst [vmem:[#allocation150_spill] sm:$0xff] %v5595_v62  ;;  %v594_v62 = vpop.f32.mrf.mxu2  ;;  %3796 = vtanh.f32 %v3450_v36  ;;  %v7545_v63 = vperm.slane %v7487_v8, 2 }
 0x335   :  { %7519 = vst [vmem:[#allocation151_spill] sm:$0xff] %v5599_v50  ;;  %v7523_v50 = vperm.slane %v7487_v8, 1  ;;  %v595_v17 = vadd.f32 %v3815_v41, %v594_v62  ;;  %v5660_v62 = vmul.f32 %v5521_v6, %v5426_v32  ;;  %v7540_v41 = vld [vmem:[#allocation88_spill] sm:$0xff]  ;;  %v541_v36 = vsel %vm5664_vm15, %v5490_v49, %v537_v54 }
 0x336   :  { %7525 = vst [vmem:[#allocation152_spill] sm:$0xff] %v5622_v42  ;;  %v2578_v15 = vrot.slane %v7540_v41, 2  ;;  %v1232_v42 = vperm.slane %v4730_v10, 0  ;;  %v5702_v49 = vmul.f32 %v5556_v48, %v7543_v35  ;;  %v2580_v39 = vrot.slane %v7540_v41, 4 }
 0x337   :  { %1714 = vperm.xlu1 %3689, %v7523_v50   ;;  %7526 = vst [vmem:[#allocation153_spill] sm:$0xff] %v5624_v38  ;;  %v5635_v50 = vpop.permute.xlu2 %2800  ;;  %3798 = vtanh.f32 %v595_v17 }
 0x338   :  { %7529 = vst [vmem:[#allocation154_spill] sm:$0xff] %v5629_v16  ;;  %v5696_v16 = vperm.slane %v2918_v43, 0  ;;  %v5698_v37 = vperm.slane %v2578_v15, 0 }
 0x339   :  { %7530 = vst [vmem:[#allocation155_spill] sm:$0xff] %v5633_v12  ;;  %v5653_v12 = vmul.f32 %v7536_v33, %v7527_v57  ;;  %v5670_v33 = vpop.permute.xlu0 %2429  ;;  %3691 = vset.pattern.permute.xlu2 %v4181_v25 }
 0x33a   :  { %7531 = vst [vmem:[#allocation156_spill] sm:$0xff] %v5635_v50  ;;  %v542_v50 = vand.u32 2147483647, %v5409_v21  ;;  %v5677_v21 = vmul.f32 %v5554_v56, %v7543_v35  ;;  %v3797_v9 = vpop.eup %3796  ;;  %v1033_v18 = vpop.permute.xlu1 %1032 }
 0x33b   :  { %7532 = vst [vmem:[#allocation157_spill] sm:$0xff] %v5637_v13 }
 0x33c   :  { %7534 = vst [vmem:[#allocation107_spill] sm:$0xff] %v5644_v45  ;;  %v5682_v45 = vmul.f32 %v5523_v53, %v5426_v32  ;;  %vm543_vm1 = vcmp.eq.f32.partialorder %v542_v50, 8.507059e+37 }
 0x33d   :  { %7535 = vst [vmem:[#allocation158_spill] sm:$0xff] %v5648_v0  ;;  %v545_v0 = vor.u32 1.1754944e-38, %v544_v27  ;;  %v7546_v27 = vld [vmem:[#allocation104_spill] sm:$0xff] }
 0x33e   :  { %7537 = vst [vmem:[#allocation159_spill] sm:$0xff] %v5653_v12  ;;  %v7542_v12 = vld [vmem:[#allocation97_spill] sm:$0xff]  ;;  %v5694_v40 = vmul.f32 %v5554_v56, %v7546_v27  ;;  %v5706_v50 = vmul.f32 %v5556_v48, %v7546_v27  ;;  %v5721_v48 = vmul.f32 %v5588_v3, %v5384_v51  ;;  %v5727_v56 = vpop.eup %3798  ;;  %v7558_v27 = vld [vmem:[#allocation60_spill] sm:$0xff] }
 0x33f   :  { %7541 = vst [vmem:[#allocation160_spill] sm:$0xff] %v5670_v33  ;;  %v2650_v57 = vrot.slane %v7542_v12, 2  ;;  %1727 = vperm.xlu1 %3689, %v7545_v63   ;;  %v1026_v63 = vpop.permute.xlu2 %1025  ;;  %v5712_v43 = vsel %vm543_vm1, %v545_v0, %v541_v36  ;;  %v2652_v15 = vrot.slane %v7542_v12, 4  ;;  %v7557_v36 = vld [vmem:[#allocation52_spill] sm:$0xff]  ;;  %v1118_v53 = vmul.f32 %v1020_v58, %v7558_v27 }
 0x340   :  { %7544 = vst [vmem:[#allocation161_spill] sm:$0xff] %v5677_v21  ;;  %v1249_v17 = vmul.f32 %v1232_v42, %v1026_v63  ;;  %v1119_v21 = vmul.f32 %v1026_v63, %v7557_v36  ;;  %v3255_v6 = vrot.slane %v5712_v43, 3  ;;  %v5744_v0 = vmul.f32 %v5590_v7, %v5384_v51 }
 0x341   :  { %7547 = vst [vmem:[#allocation162_spill] sm:$0xff] %v5694_v40  ;;  %v5708_v54 = vperm.slane %v2650_v57, 0  ;;  %v5725_v57 = vmul.f32 %v5624_v38, %v5498_v44  ;;  %v5750_v40 = vperm.slane %v2652_v15, 0  ;;  %v3327_v31 = vrot.slane %v5727_v56, 3 }
 0x342   :  { %7548 = vst [vmem:[#allocation163_spill] sm:$0xff] %v5698_v37  ;;  %v1265_v35 = vsub.f32 1.0, %v1249_v17  ;;  %v5748_v17 = vmul.f32 %v5637_v13, %v5498_v44  ;;  %v7565_v7 = vperm.slane %v7487_v8, 3  ;;  %v1135_v15 = vsel %vm131_vm0, %v1119_v21, 0.0 }
 0x343   :  { %7549 = vst [vmem:[#allocation164_spill] sm:$0xff] %v5702_v49  ;;  %v5717_v49 = vmul.f32 %v5588_v3, %v5382_v20  ;;  %v5736_v3 = vperm.slane %v2580_v39, 0  ;;  %v5752_v20 = vpop.permute.xlu0 %3092  ;;  %v1304_v39 = vperm.slane %v4818_v26, 0  ;;  %v1134_v51 = vsel %vm131_vm0, %v1118_v53, 0.0  ;;  %v7570_v53 = vld [vmem:[#allocation47_spill] sm:$0xff] }
 0x344   :  { %7550 = vst [vmem:[#allocation165_spill] sm:$0xff] %v5706_v50  ;;  %v1248_v50 = vmul.f32 %v1232_v42, %v1020_v58  ;;  %v3716_v42 = vld [vmem:[%s7037_s11] ss:$0 sm:$0xff]  ;;  %1740 = vperm.xlu2 %3691, %v7565_v7  }
 0x345   :  { %7551 = vst [vmem:[#allocation166_spill] sm:$0xff] %v5708_v54  ;;  %v3485_v7 = vmul.f32 %v3797_v9, %v3716_v42  ;;  %v1320_v44 = vmul.f32 %v1304_v39, %v1020_v58 }
 0x346   :  { %7552 = vst [vmem:[#allocation167_spill] sm:$0xff] %v5712_v43  ;;  %v1264_v38 = vsub.f32 1.0, %v1248_v50  ;;  %v5770_v50 = vperm.slane %v3255_v6, 0  ;;  %v2583_v6 = vrot.slane %v7540_v41, 7 }
 0x347   :  { %7553 = vst [vmem:[#allocation168_spill] sm:$0xff] %v5717_v49  ;;  %3692 = vset.pattern.permute.xlu1 %v4176_v24  ;;  %v1321_v49 = vmul.f32 %v1304_v39, %v1026_v63  ;;  %v5789_v63 = vmul.f32 %v5696_v16, %v5455_v5 }
 0x348   :  { %7554 = vst [vmem:[#allocation169_spill] sm:$0xff] %v5721_v48  ;;  %v1280_v13 = vmul.f32 %v1264_v38, %v7558_v27  ;;  %v1226_v48 = vrot.slane %v4730_v10, 2  ;;  %v5779_v38 = vperm.slane %v3327_v31, 0  ;;  %v1136_v27 = vadd.f32 %v1135_v15, %v1134_v51  ;;  %v7577_v15 = vld [vmem:[#allocation108_spill] sm:$0xff] }
 0x349   :  { %7555 = vst [vmem:[#allocation170_spill] sm:$0xff] %v5725_v57  ;;  %v7569_v57 = vld [vmem:[#allocation99_spill] sm:$0xff]  ;;  %v2655_v31 = vrot.slane %v7542_v12, 7  ;;  %v5797_v51 = vsel %vm131_vm0, %v3485_v7, 0.0 }
 0x34a   :  { %7556 = vst [vmem:[#allocation171_spill] sm:$0xff] %v5727_v56  ;;  %v5784_v32 = vadd.f32 %v1320_v44, %v1280_v13  ;;  %v5804_v42 = vperm.slane %v1226_v48, 0  ;;  %v1137_v48 = vrot.slane %v1136_v27, 4 }
 0x34b   :  { %7559 = vst [vmem:[#allocation52_spill] sm:$0xff] %v5734_v30  ;;  %v5768_v30 = vmul.f32 %v5698_v37, %v5582_v52  ;;  %v5800_v44 = vpop.permute.xlu0 %2462 }
 0x34c   :  { %7560 = vst [vmem:[#allocation60_spill] sm:$0xff] %v5736_v3 }
 0x34d   :  { %7561 = vst [vmem:[#allocation172_spill] sm:$0xff] %v5744_v0  ;;  %v1281_v0 = vmul.f32 %v1265_v35, %v7557_v36  ;;  %v1250_v35 = vmul.f32 %v7569_v57, %v1033_v18  ;;  %v5777_v36 = vmul.f32 %v7570_v53, %v5546_v47  ;;  %v5793_v57 = vmul.f32 %v5708_v54, %v5582_v52 }
 0x34e   :  { %7562 = vst [vmem:[#allocation173_spill] sm:$0xff] %v5748_v17  ;;  %v7568_v17 = vld [vmem:[#allocation61_spill] sm:$0xff] }
 0x34f   :  { %7563 = vst [vmem:[#allocation174_spill] sm:$0xff] %v5750_v40  ;;  %v1120_v21 = vmul.f32 %v1033_v18, %v7568_v17  ;;  %v5782_v37 = vadd.f32 %v1321_v49, %v1281_v0  ;;  %v1266_v58 = vsub.f32 1.0, %v1250_v35  ;;  %v1322_v0 = vmul.f32 %v5337_v28, %v1033_v18  ;;  %v7582_v28 = vld [vmem:[#allocation32_spill] sm:$0xff] }
 0x350   :  { %7564 = vst [vmem:[#allocation175_spill] sm:$0xff] %v5752_v20  ;;  %v5811_v35 = vperm.slane %v2583_v6, 0  ;;  %v7580_v49 = vperm.slane %v7487_v8, 4  ;;  %v5826_v6 = vmul.f32 %v5736_v3, %v5670_v33 }
 0x351   :  { %7566 = vst [vmem:[#allocation176_spill] sm:$0xff] %v5768_v30  ;;  %v1143_v9 = vsel %vm131_vm0, %v1120_v21, 0.0  ;;  %v1282_v13 = vmul.f32 %v1266_v58, %v7568_v17  ;;  %v5809_v21 = vmul.f32 %v7577_v15, %v5546_v47  ;;  %v1457_v18 = vmul.f32 %v7582_v28, %v5782_v37  ;;  %v7583_v17 = vld [vmem:[#allocation33_spill] sm:$0xff] }
 0x352   :  { %7567 = vst [vmem:[#allocation177_spill] sm:$0xff] %v5770_v50  ;;  %v1145_v7 = vadd.f32 %v5449_v23, %v1143_v9  ;;  %1753 = vperm.xlu2 %3691, %v7580_v49   ;;  %v7581_v53 = vmov %v7580_v49  ;;  %v1456_v58 = vmul.f32 %v7583_v17, %v5784_v32  ;;  %v5830_v23 = vmul.f32 %v5750_v40, %v5670_v33  ;;  %v1046_v49 = vpop.permute.xlu2 %1045  ;;  %v7588_v28 = vld [vmem:[#allocation41_spill] sm:$0xff] }
 0x353   :  { %7571 = vst [vmem:[#allocation61_spill] sm:$0xff] %v5777_v36  ;;  %1747 = vperm.xlu1 %3692, %v7581_v53   ;;  %v5822_v39 = vadd.f32 %v1322_v0, %v1282_v13  ;;  %v5834_v53 = vmul.f32 %v5770_v50, %v5752_v20  ;;  %v5836_v9 = vperm.slane %v2655_v31, 0  ;;  %v1298_v13 = vrot.slane %v4818_v26, 2 }
 0x354   :  { %7572 = vst [vmem:[#allocation99_spill] sm:$0xff] %v5779_v38  ;;  %v1252_v0 = vmul.f32 %v5804_v42, %v1046_v49  ;;  %v1227_v15 = vrot.slane %v4730_v10, 3  ;;  %v3325_v47 = vrot.slane %v5727_v56, 1  ;;  %v1299_v50 = vrot.slane %v4818_v26, 3 }
 0x355   :  { %7573 = vst [vmem:[#allocation178_spill] sm:$0xff] %v5789_v63  ;;  %v1458_v17 = vmul.f32 %v7588_v28, %v5822_v39  ;;  %v1146_v63 = vrot.slane %v1145_v7, 4  ;;  %v1473_v31 = vsel %vm131_vm0, %v1457_v18, 0.0  ;;  %v1138_v40 = vadd.f32 %v1137_v48, %v1136_v27 }
 0x356   :  { %7574 = vst [vmem:[#allocation179_spill] sm:$0xff] %v5793_v57  ;;  %v5852_v36 = vmul.f32 %v5811_v35, %v5800_v44  ;;  %v1268_v54 = vsub.f32 1.0, %v1252_v0  ;;  %v5858_v57 = vmul.f32 %v5779_v38, %v5752_v20  ;;  %v1235_v27 = vperm.slane %v1227_v15, 0  ;;  %v7597_v38 = vld [vmem:[#allocation30_spill] sm:$0xff] }
 0x357   :  { %7575 = vst [vmem:[#allocation180_spill] sm:$0xff] %v5797_v51  ;;  %v3253_v51 = vrot.slane %v5712_v43, 1  ;;  %v1481_v28 = vsel %vm131_vm0, %v1458_v17, 0.0  ;;  %v3258_v18 = vrot.slane %v5712_v43, 6  ;;  %v1306_v17 = vperm.slane %v1298_v13, 0 }
 0x358   :  { %7576 = vst [vmem:[#allocation181_spill] sm:$0xff] %v5800_v44  ;;  %v1483_v5 = vadd.f32 %v5481_v55, %v1481_v28  ;;  %v1139_v55 = vrot.slane %v1138_v40, 2  ;;  %v5868_v0 = vmul.f32 %v5836_v9, %v5800_v44  ;;  %v5870_v28 = vpop.permute.xlu0 %2761  ;;  %v5872_v15 = vperm.slane %v3325_v47, 0 }
 0x359   :  { %7578 = vst [vmem:[#allocation182_spill] sm:$0xff] %v5809_v21  ;;  %v1472_v21 = vsel %vm131_vm0, %v1456_v58, 0.0  ;;  %v1147_v58 = vadd.f32 %v1146_v63, %v1145_v7  ;;  %v5861_v3 = vperm.slane %v3253_v51, 0  ;;  %v5874_v33 = vperm.slane %v1299_v50, 0  ;;  %v7600_v63 = vld [vmem:[#allocation56_spill] sm:$0xff] }
 0x35a   :  { %7579 = vst [vmem:[#allocation183_spill] sm:$0xff] %v5811_v35  ;;  %v1474_v48 = vadd.f32 %v1473_v31, %v1472_v21  ;;  %3694 = vset.pattern.permute.xlu2 %v4176_v24  ;;  %v7592_v35 = vperm.slane %v7487_v8, 5  ;;  %v1484_v51 = vrot.slane %v1483_v5, 4  ;;  %v7596_v21 = vld [vmem:[#allocation62_spill] sm:$0xff]  ;;  %v1059_v31 = vpop.permute.xlu2 %1058  ;;  %v7598_v20 = vsub.f32 1.0, %v7597_v38 }
 0x35b   :  { %7584 = vst [vmem:[#allocation32_spill] sm:$0xff] %v5826_v6  ;;  %v1122_v7 = vmul.f32 %v1046_v49, %v7596_v21  ;;  %v1284_v13 = vmul.f32 %v1268_v54, %v7596_v21  ;;  %v3330_v47 = vrot.slane %v5727_v56, 6  ;;  %v1324_v44 = vmul.f32 %v1306_v17, %v1046_v49  ;;  %v7602_v56 = vld [vmem:[#allocation63_spill] sm:$0xff] }
 0x35c   :  { %7585 = vst [vmem:[#allocation33_spill] sm:$0xff] %v5830_v23  ;;  %1760 = vperm.xlu1 %3692, %v7592_v35   ;;  %v1052_v35 = vpop.permute.xlu1 %1051  ;;  %v1619_v43 = vmul.f32 %v7598_v20, %v5782_v37  ;;  %v1475_v50 = vrot.slane %v1474_v48, 4  ;;  %v5888_v54 = vmul.f32 %v5696_v16, %v5870_v28  ;;  %v1485_v38 = vadd.f32 %v1484_v51, %v1483_v5 }
 0x35d   :  { %7586 = vst [vmem:[#allocation184_spill] sm:$0xff] %v5834_v53  ;;  %v1148_v53 = vrot.slane %v1147_v58, 2  ;;  %v1253_v30 = vmul.f32 %v5804_v42, %v1052_v35  ;;  %v1152_v20 = vsel %vm131_vm0, %v1122_v7, 0.0  ;;  %v5892_v37 = vadd.f32 %v1324_v44, %v1284_v13  ;;  %v7606_v13 = vld [vmem:[#allocation34_spill] sm:$0xff] }
 0x35e   :  { %7587 = vst [vmem:[#allocation185_spill] sm:$0xff] %v5836_v9  ;;  %v1254_v9 = vmul.f32 %v1235_v27, %v1059_v31  ;;  %v1326_v49 = vmul.f32 %v5874_v33, %v1059_v31  ;;  %v1476_v16 = vadd.f32 %v1475_v50, %v1474_v48  ;;  %v7605_v5 = vperm.slane %v7487_v8, 6 }
 0x35f   :  { %7589 = vst [vmem:[#allocation41_spill] sm:$0xff] %v5852_v36  ;;  %v1140_v36 = vadd.f32 %v1139_v55, %v1138_v40  ;;  %v1269_v40 = vsub.f32 1.0, %v1253_v30  ;;  %v7603_v55 = vld [vmem:[#allocation72_spill] sm:$0xff]  ;;  %v1325_v51 = vmul.f32 %v1306_v17, %v1052_v35  ;;  %v1460_v30 = vmul.f32 %v7606_v13, %v5892_v37  ;;  %v7613_v13 = vld [vmem:[#allocation38_spill] sm:$0xff] }
 0x360   :  { %7590 = vst [vmem:[#allocation186_spill] sm:$0xff] %v5858_v57  ;;  %v5882_v57 = vperm.slane %v3258_v18, 0  ;;  %v1270_v21 = vsub.f32 1.0, %v1254_v9  ;;  %v1675_v23 = vadd.f32 %v7603_v55, %v1619_v43  ;;  %v5898_v9 = vperm.slane %v3330_v47, 0  ;;  %v7611_v17 = vld [vmem:[#allocation24_spill] sm:$0xff] }
 0x361   :  { %7591 = vst [vmem:[#allocation187_spill] sm:$0xff] %v5861_v3  ;;  %v1141_v7 = vrot.slane %v1140_v36, 1  ;;  %v1124_v43 = vmul.f32 %v1059_v31, %v7602_v56  ;;  %v1486_v50 = vrot.slane %v1485_v38, 2  ;;  %v1477_v55 = vrot.slane %v1476_v16, 2 }
 0x362   :  { %7593 = vst [vmem:[#allocation188_spill] sm:$0xff] %v5868_v0  ;;  %v1123_v0 = vmul.f32 %v1052_v35, %v7600_v63  ;;  %v1286_v12 = vmul.f32 %v1270_v21, %v7602_v56  ;;  %1773 = vperm.xlu2 %3694, %v7605_v5   ;;  %v7609_v21 = vld [vmem:[#allocation81_spill] sm:$0xff]  ;;  %v7612_v56 = vsub.f32 1.0, %v5579_v11 }
 0x363   :  { %7594 = vst [vmem:[#allocation189_spill] sm:$0xff] %v5870_v28  ;;  %v1149_v28 = vadd.f32 %v1148_v53, %v1147_v58  ;;  %v7607_v53 = vld [vmem:[#allocation67_spill] sm:$0xff] }
 0x364   :  { %7595 = vst [vmem:[#allocation190_spill] sm:$0xff] %v5872_v15  ;;  %v1153_v18 = vsel %vm131_vm0, %v1123_v0, 0.0  ;;  %3695 = vset.pattern.permute.xlu1 %v4181_v25  ;;  %v1342_v44 = vadd.f32 %v1326_v49, %v1286_v12  ;;  %v1285_v0 = vmul.f32 %v1269_v40, %v7600_v63  ;;  %v1065_v48 = vpop.permute.xlu1 %1064  ;;  %v7608_v58 = vsub.f32 1.0, %v7607_v53 }
 0x365   :  { %7599 = vst [vmem:[#allocation62_spill] sm:$0xff] %v5882_v57  ;;  %v1154_v41 = vadd.f32 %v1153_v18, %v1152_v20  ;;  %v7610_v20 = vsub.f32 1.0, %v7609_v21  ;;  %v1125_v63 = vmul.f32 %v1065_v48, %v7611_v17  ;;  %v1255_v35 = vmul.f32 %v1235_v27, %v1065_v48 }
 0x366   :  { %7601 = vst [vmem:[#allocation30_spill] sm:$0xff] %v5888_v54  ;;  %v5910_v47 = vmul.f32 %v7608_v58, %v5784_v32  ;;  %v5914_v49 = vadd.f32 %v1325_v51, %v1285_v0  ;;  %v5918_v40 = vmul.f32 %v5351_v34, %v1675_v23  ;;  %v5922_v31 = vmul.f32 %v7612_v56, %v1675_v23 }
 0x367   :  { %7604 = vst [vmem:[#allocation56_spill] sm:$0xff] %v5898_v9  ;;  %v1155_v42 = vrot.slane %v1154_v41, 4  ;;  %v1624_v12 = vmul.f32 %v7610_v20, %v1342_v44  ;;  %v1150_v32 = vrot.slane %v1149_v28, 1  ;;  %v1162_v27 = vsel %vm131_vm0, %v1125_v63, 0.0 }
 0x368   :  { %v1461_v53 = vmul.f32 %v7613_v13, %v5914_v49  ;;  %v1271_v51 = vsub.f32 1.0, %v1255_v35  ;;  %v1487_v34 = vadd.f32 %v1486_v50, %v1485_v38  ;;  %v1490_v58 = vsel %vm131_vm0, %v1460_v30, 0.0  ;;  %v7617_v35 = vld [vmem:[#allocation37_spill] sm:$0xff] }
 0x369   :  { %v1156_v18 = vadd.f32 %v1155_v42, %v1154_v41  ;;  %v1161_v41 = vsel %vm131_vm0, %v1124_v43, 0.0  ;;  %v7614_v42 = vld [vmem:[#allocation83_spill] sm:$0xff]  ;;  %v1327_v13 = vmul.f32 %v5874_v33, %v1065_v48  ;;  %v7615_v43 = vperm.slane %v7487_v8, 7 }
 0x36a   :  { %v5928_v0 = vadd.f32 %v7614_v42, %v1624_v12  ;;  %v1491_v11 = vsel %vm131_vm0, %v1461_v53, 0.0  ;;  %v1163_v23 = vadd.f32 %v1162_v27, %v1161_v41  ;;  %v1287_v56 = vmul.f32 %v1271_v51, %v7611_v17  ;;  %v1078_v27 = vpop.permute.xlu2 %1077 }
 0x36b   :  { %v1157_v5 = vrot.slane %v1156_v18, 2  ;;  %v1492_v20 = vadd.f32 %v1491_v11, %v1490_v58  ;;  %1786 = vperm.xlu2 %3694, %v7615_v43   ;;  %v7616_v12 = vperm.slane %v7487_v8, 6  ;;  %v1142_v63 = vadd.f32 %v1141_v7, %v1140_v36  ;;  %v7619_v58 = vld [vmem:[#allocation20_spill] sm:$0xff]  ;;  %v7620_v43 = vld [vmem:[#allocation109_spill] sm:$0xff] }
 0x36c   :  { %v5940_v38 = vadd.f32 %v1477_v55, %v1476_v16  ;;  %v1164_v50 = vrot.slane %v1163_v23, 4  ;;  %v1462_v53 = vmul.f32 %v7617_v35, %v1342_v44  ;;  %v5943_v42 = vadd.f32 %v1327_v13, %v1287_v56 }
 0x36d   :  { %1779 = vperm.xlu1 %3695, %v7616_v12   ;;  %v1158_v30 = vadd.f32 %v1157_v5, %v1156_v18  ;;  %v1493_v41 = vrot.slane %v1492_v20, 4  ;;  %v7618_v33 = vsub.f32 1.0, %v5660_v62  ;;  %v1151_v17 = vadd.f32 %v1150_v32, %v1149_v28  ;;  %v7621_v18 = vld [vmem:[#allocation45_spill] sm:$0xff] }
 0x36e   :  { %v1165_v51 = vadd.f32 %v1164_v50, %v1163_v23  ;;  %v1127_v11 = vmul.f32 %v1078_v27, %v7619_v58  ;;  %v1257_v36 = vmul.f32 %v7620_v43, %v1078_v27  ;;  %v1488_v16 = vrot.slane %v1487_v34, 1  ;;  %v7622_v43 = vld [vmem:[#allocation36_spill] sm:$0xff] }
 0x36f   :  { %v1962_v48 = vmul.f32 %v7618_v33, %v5928_v0  ;;  %v1494_v7 = vadd.f32 %v1493_v41, %v1492_v20  ;;  %v1463_v55 = vmul.f32 %v7621_v18, %v5943_v42  ;;  %v1229_v44 = vrot.slane %v4730_v10, 5 }
 0x370   :  { %v1159_v5 = vrot.slane %v1158_v30, 1  ;;  %v1166_v56 = vrot.slane %v1165_v51, 2  ;;  %v1171_v13 = vsel %vm131_vm0, %v1127_v11, 0.0  ;;  %v1273_v12 = vsub.f32 1.0, %v1257_v36 }
 0x371   :  { %v1499_v62 = vsel %vm131_vm0, %v1462_v53, 0.0  ;;  %v1495_v28 = vrot.slane %v1494_v7, 2  ;;  %v1500_v32 = vsel %vm131_vm0, %v1463_v55, 0.0  ;;  %v1172_v23 = vadd.f32 %v1171_v13, %v5509_v19 }
 0x372   :  { %v1167_v50 = vadd.f32 %v1166_v56, %v1165_v51  ;;  %v1501_v35 = vadd.f32 %v1500_v32, %v1499_v62  ;;  %v1289_v20 = vmul.f32 %v1273_v12, %v7619_v58  ;;  %v1329_v41 = vmul.f32 %v5407_v22, %v1078_v27  ;;  %v1091_v12 = vpop.permute.xlu2 %1090  ;;  %v1085_v62 = vpop.permute.xlu1 %1084 }
 0x373   :  { %v1173_v33 = vrot.slane %v1172_v23, 4  ;;  %v7623_v18 = vperm.slane %v7622_v43, 0  ;;  %v7624_v11 = vperm.slane %v7487_v8, 7  ;;  %v1237_v36 = vperm.slane %v1229_v44, 0  ;;  %v7625_v8 = vld [vmem:[#allocation73_spill] sm:$0xff] }
 0x374   :  { %v1301_v53 = vrot.slane %v4818_v26, 5  ;;  %v5965_v55 = vadd.f32 %v5682_v45, %v1962_v48  ;;  %v1160_v19 = vadd.f32 %v1159_v5, %v1158_v30  ;;  %v1168_v51 = vrot.slane %v1167_v50, 1  ;;  %v7626_v45 = vld [vmem:[#allocation39_spill] sm:$0xff] }
 0x375   :  { %2371 = vperm.xlu2 %3694, %v7623_v18   ;;  %1792 = vperm.xlu1 %3695, %v7624_v11   ;;  %v1502_v56 = vrot.slane %v1501_v35, 4  ;;  %v5967_v13 = vadd.f32 %v1329_v41, %v1289_v20  ;;  %v1479_v22 = vrot.slane %v5940_v38, 1  ;;  %v1496_v27 = vadd.f32 %v1495_v28, %v1494_v7  ;;  %v7627_v48 = vld [vmem:[#allocation23_spill] sm:$0xff] }
 0x376   :  { %v1174_v58 = vadd.f32 %v1173_v33, %v1172_v23  ;;  %v5972_v32 = vadd.f32 %v7625_v8, %v5910_v47  ;;  %v1214_v44 = vsel %vm870_vm2, %v1151_v17, %v1142_v63  ;;  %v1129_v5 = vmul.f32 %v1091_v12, %v7627_v48 }
 0x377   :  { %v1503_v18 = vadd.f32 %v1502_v56, %v1501_v35  ;;  %v1465_v30 = vmul.f32 %v7626_v45, %v5967_v13  ;;  %v1489_v20 = vadd.f32 %v1488_v16, %v1487_v34  ;;  %v1309_v11 = vperm.slane %v1301_v53, 0  ;;  %v7628_v45 = vld [vmem:[#allocation65_spill] sm:$0xff] }
 0x378   :  { %v1175_v41 = vrot.slane %v1174_v58, 2  ;;  %v1259_v21 = vmul.f32 %v1237_v36, %v1091_v12  ;;  %v1215_v7 = vsel %vm872_vm3, %v1160_v19, %v1214_v44  ;;  %v1169_v28 = vadd.f32 %v1168_v51, %v1167_v50 }
 0x379   :  { %v1504_v23 = vrot.slane %v1503_v18, 2  ;;  %v1509_v33 = vsel %vm131_vm0, %v1465_v30, 0.0  ;;  %v1497_v47 = vrot.slane %v1496_v27, 1  ;;  %v1180_v56 = vsel %vm131_vm0, %v1129_v5, 0.0 }
 0x37a   :  { %v1176_v8 = vadd.f32 %v1175_v41, %v1174_v58  ;;  %v1510_v63 = vadd.f32 %v1509_v33, %v5531_v59  ;;  %v1275_v17 = vsub.f32 1.0, %v1259_v21  ;;  %v1128_v54 = vmul.f32 %v1085_v62, %v7628_v45  ;;  %v1098_v41 = vpop.permute.xlu1 %1097 }
 0x37b   :  { %v1505_v35 = vadd.f32 %v1504_v23, %v1503_v18  ;;  %v1258_v34 = vmul.f32 %v1237_v36, %v1085_v62  ;;  %v1331_v19 = vmul.f32 %v1309_v11, %v1091_v12  ;;  %v7629_v50 = vperm.slane %v7622_v43, 1  ;;  %v7631_v23 = vld [vmem:[#allocation71_spill] sm:$0xff] }
 0x37c   :  { %v1177_v16 = vrot.slane %v1176_v8, 1  ;;  %v1511_v53 = vrot.slane %v1510_v63, 4  ;;  %v1291_v6 = vmul.f32 %v1275_v17, %v7627_v48  ;;  %v7630_v51 = vperm.slane %v7622_v43, 0 }
 0x37d   :  { %2384 = vperm.xlu2 %3694, %v7629_v50   ;;  %v1216_v59 = vsel %vm874_vm4, %v1169_v28, %v1215_v7  ;;  %v1506_v21 = vrot.slane %v1505_v35, 1  ;;  %v1179_v58 = vsel %vm131_vm0, %v1128_v54, 0.0  ;;  %v1274_v44 = vsub.f32 1.0, %v1258_v34  ;;  %v7632_v28 = vld [vmem:[#allocation42_spill] sm:$0xff] }
 0x37e   :  { %2377 = vperm.xlu1 %3695, %v7630_v51   ;;  %v1178_v18 = vadd.f32 %v1177_v16, %v1176_v8  ;;  %v1512_v30 = vadd.f32 %v1511_v53, %v1510_v63  ;;  %v5990_v36 = vadd.f32 %v1331_v19, %v1291_v6  ;;  %v1181_v5 = vadd.f32 %v1180_v56, %v1179_v58  ;;  %v7633_v19 = vld [vmem:[#allocation43_spill] sm:$0xff] }
 0x37f   :  { %v1290_v12 = vmul.f32 %v1274_v44, %v7628_v45  ;;  %v1330_v48 = vmul.f32 %v1309_v11, %v1085_v62  ;;  %v1130_v33 = vmul.f32 %v1098_v41, %v7631_v23  ;;  %v1260_v17 = vmul.f32 %v5394_v46, %v1098_v41 }
 0x380   :  { %v1217_v50 = vsel %vm876_vm5, %v1178_v18, %v1216_v59  ;;  %v1513_v7 = vrot.slane %v1512_v30, 2  ;;  %v1467_v54 = vmul.f32 %v7632_v28, %v5990_v36  ;;  %v1231_v8 = vrot.slane %v4730_v10, 7 }
 0x381   :  { %v1480_v6 = vadd.f32 %v1479_v22, %v5940_v38  ;;  %v1182_v63 = vrot.slane %v1181_v5, 4  ;;  %v6000_v56 = vadd.f32 %v1330_v48, %v1290_v12  ;;  %v1188_v45 = vsel %vm131_vm0, %v1130_v33, 0.0  ;;  %v1111_v12 = vpop.permute.xlu2 %1110 }
 0x382   :  { %v1498_v62 = vadd.f32 %v1497_v47, %v1496_v27  ;;  %v1507_v11 = vadd.f32 %v1506_v21, %v1505_v35  ;;  %v1514_v34 = vadd.f32 %v1513_v7, %v1512_v30  ;;  %v1190_v46 = vadd.f32 %v5586_v2, %v1188_v45  ;;  %v6011_v47 = vpop.permute.xlu0 %3060  ;;  %v7637_v45 = vld [vmem:[#allocation25_spill] sm:$0xff] }
 0x383   :  { %v1518_v16 = vsel %vm131_vm0, %v1467_v54, 0.0  ;;  %v1183_v53 = vadd.f32 %v1182_v63, %v1181_v5  ;;  %v1466_v51 = vmul.f32 %v7633_v19, %v6000_v56  ;;  %v1276_v59 = vsub.f32 1.0, %v1260_v17  ;;  %7635 = vst [vmem:[#allocation63_spill] sm:$0xff] %v6011_v47 }
 0x384   :  { %v1552_v10 = vsel %vm870_vm2, %v1489_v20, %v1480_v6  ;;  %v1515_v38 = vrot.slane %v1514_v34, 1  ;;  %v1191_v22 = vrot.slane %v1190_v46, 4  ;;  %v7634_v58 = vperm.slane %v7622_v43, 1 }
 0x385   :  { %3697 = vset.pattern.permute.xlu2 %v4181_v25  ;;  %v1239_v27 = vperm.slane %v1231_v8, 0  ;;  %v1184_v2 = vrot.slane %v1183_v53, 2  ;;  %v1517_v35 = vsel %vm131_vm0, %v1466_v51, 0.0  ;;  %v1292_v21 = vmul.f32 %v1276_v59, %v7631_v23  ;;  %v7636_v8 = vld [vmem:[#allocation48_spill] sm:$0xff] }
 0x386   :  { %2390 = vperm.xlu1 %3695, %v7634_v58   ;;  %v1332_v44 = vmul.f32 %v5451_v29, %v1098_v41  ;;  %v1553_v18 = vsel %vm872_vm3, %v1498_v62, %v1552_v10  ;;  %v1516_v20 = vadd.f32 %v1515_v38, %v1514_v34  ;;  %v1519_v30 = vadd.f32 %v1518_v16, %v1517_v35  ;;  %v7640_v58 = vld [vmem:[#allocation66_spill] sm:$0xff] }
 0x387   :  { %v1192_v5 = vadd.f32 %v1191_v22, %v1190_v46  ;;  %v1554_v48 = vsel %vm874_vm4, %v1507_v11, %v1553_v18  ;;  %v1185_v33 = vadd.f32 %v1184_v2, %v1183_v53  ;;  %v1262_v7 = vmul.f32 %v1239_v27, %v1111_v12  ;;  %v7641_v35 = vld [vmem:[#allocation26_spill] sm:$0xff] }
 0x388   :  { %v6018_v17 = vadd.f32 %v1332_v44, %v1292_v21  ;;  %v6022_v28 = vmul.f32 %v5861_v3, %v6011_v47  ;;  %v1555_v23 = vsel %vm876_vm5, %v1516_v20, %v1554_v48  ;;  %v1520_v54 = vrot.slane %v1519_v30, 4  ;;  %v7737_v3 = vld [vmem:[#allocation88_spill] sm:$0xff] }
 0x389   :  { %v1193_v29 = vrot.slane %v1192_v5, 2  ;;  %v1186_v41 = vrot.slane %v1185_v33, 1  ;;  %v1303_v63 = vrot.slane %v4818_v26, 7  ;;  %v7638_v62 = vsub.f32 1.0, %v7637_v45 }
 0x38a   :  { %v1468_v6 = vmul.f32 %v7636_v8, %v6018_v17  ;;  %v1521_v34 = vadd.f32 %v1520_v54, %v1519_v30  ;;  %v6033_v16 = vsel %vm131_vm0, %v5918_v40, 0.0  ;;  %v2013_v53 = vadd.f32 %v5609_v1, %v5922_v31 }
 0x38b   :  { %v1620_v11 = vmul.f32 %v7638_v62, %v5822_v39  ;;  %v1194_v46 = vadd.f32 %v1193_v29, %v1192_v5  ;;  %v6039_v19 = vmul.f32 %v5872_v15, %v6011_v47  ;;  %v1187_v51 = vadd.f32 %v1186_v41, %v1185_v33  ;;  %v6053_v5 = vpop.permute.xlu2 %1708 }
 0x38c   :  { %v1526_v26 = vsel %vm131_vm0, %v1468_v6, 0.0  ;;  %v1278_v59 = vsub.f32 1.0, %v1262_v7  ;;  %v1522_v39 = vrot.slane %v1521_v34, 2  ;;  %v7639_v40 = vperm.slane %v7622_v43, 2  ;;  %v7642_v7 = vld [vmem:[#allocation55_spill] sm:$0xff] }
 0x38d   :  { %v1195_v38 = vrot.slane %v1194_v46, 1  ;;  %v1528_v22 = vadd.f32 %v5617_v60, %v1526_v26  ;;  %v1218_v1 = vsel %vm878_vm6, %v1187_v51, %v1217_v50  ;;  %v1311_v31 = vperm.slane %v1303_v63, 0  ;;  %v1117_v60 = vpop.permute.xlu1 %1116  ;;  %v7643_v6 = vld [vmem:[#allocation75_spill] sm:$0xff] }
 0x38e   :  { %2403 = vperm.xlu2 %3697, %v7639_v40   ;;  %3698 = vset.pattern.permute.xlu1 %v4176_v24  ;;  %v1132_v2 = vmul.f32 %v1111_v12, %v7640_v58  ;;  %v6050_v21 = vadd.f32 %v7641_v35, %v1620_v11  ;;  %v1523_v44 = vadd.f32 %v1522_v39, %v1521_v34  ;;  %v1901_v30 = vrot.slane %v4940_v61, 1  ;;  %v7644_v34 = vld [vmem:[#allocation76_spill] sm:$0xff]  ;;  %v6073_v40 = vpop.permute.xlu0 %3125 }
 0x38f   :  { %v1196_v18 = vadd.f32 %v1195_v38, %v1194_v46  ;;  %v1529_v20 = vrot.slane %v1528_v22, 4  ;;  %v1294_v48 = vmul.f32 %v1278_v59, %v7640_v58  ;;  %v1902_v50 = vrot.slane %v4940_v61, 2  ;;  %7646 = vst [vmem:[#allocation72_spill] sm:$0xff] %v6073_v40 }
 0x390   :  { %v6058_v33 = vmul.f32 %v6053_v5, %v6050_v21  ;;  %v2133_v54 = vmul.f32 %v7642_v7, %v2013_v53  ;;  %v1524_v29 = vrot.slane %v1523_v44, 1  ;;  %v1133_v63 = vmul.f32 %v1117_v60, %v7643_v6 }
 0x391   :  { %v6063_v41 = vsel %vm880_vm7, %v1196_v18, %v1218_v1  ;;  %v1530_v8 = vadd.f32 %v1529_v20, %v1528_v22  ;;  %v1197_v45 = vsel %vm131_vm0, %v1132_v2, 0.0  ;;  %v1334_v62 = vmul.f32 %v1311_v31, %v1111_v12 }
 0x392   :  { %v1263_v11 = vmul.f32 %v1239_v27, %v1117_v60  ;;  %v7645_v46 = vsub.f32 1.0, %v7644_v34  ;;  %v1525_v26 = vadd.f32 %v1524_v29, %v1523_v44  ;;  %v6070_v39 = vperm.slane %v1901_v30, 0 }
 0x393   :  { %v1531_v59 = vrot.slane %v1530_v8, 2  ;;  %v1198_v38 = vsel %vm131_vm0, %v1133_v63, 0.0  ;;  %v6075_v1 = vadd.f32 %v1334_v62, %v1294_v48  ;;  %v7647_v2 = vsub.f32 1.0, %v5373_v4 }
 0x394   :  { %v1622_v51 = vmul.f32 %v7645_v46, %v5892_v37  ;;  %v1199_v22 = vadd.f32 %v1198_v38, %v1197_v45  ;;  %v1279_v58 = vsub.f32 1.0, %v1263_v11  ;;  %v1556_v27 = vsel %vm878_vm6, %v1525_v26, %v1555_v23  ;;  %v7651_v45 = vld [vmem:[#allocation95_spill] sm:$0xff]  ;;  %v7654_v38 = vld [vmem:[#allocation49_spill] sm:$0xff] }
 0x395   :  { %v2295_v12 = vmul.f32 %v7647_v2, %v2013_v53  ;;  %v1532_v35 = vadd.f32 %v1531_v59, %v1530_v8  ;;  %v7648_v37 = vperm.slane %v7622_v43, 3  ;;  %v6084_v18 = vperm.slane %v1902_v50, 0  ;;  %v6097_v8 = vpop.permute.xlu2 %1721  ;;  %v7650_v50 = vld [vmem:[#allocation77_spill] sm:$0xff] }
 0x396   :  { %v1974_v20 = vrot.slane %v4958_v14, 2  ;;  %v1200_v30 = vrot.slane %v1199_v22, 4  ;;  %v1295_v48 = vmul.f32 %v1279_v58, %v7643_v6  ;;  %v1335_v7 = vmul.f32 %v1311_v31, %v1117_v60  ;;  %v7653_v60 = vld [vmem:[#allocation46_spill] sm:$0xff] }
 0x397   :  { %2416 = vperm.xlu2 %3697, %v7648_v37   ;;  %v7649_v44 = vmov %v7648_v37  ;;  %v6089_v4 = vsel %vm131_vm0, %v2133_v54, 0.0  ;;  %v6093_v23 = vmul.f32 %v5882_v57, %v6073_v40  ;;  %v1533_v53 = vrot.slane %v1532_v35, 1  ;;  %v7656_v37 = vld [vmem:[#allocation82_spill] sm:$0xff] }
 0x398   :  { %2410 = vperm.xlu1 %3698, %v7649_v44   ;;  %v1926_v29 = vmul.f32 %v6070_v39, %v6053_v5  ;;  %v6100_v63 = vadd.f32 %v7650_v50, %v1622_v51  ;;  %v7652_v6 = vsub.f32 1.0, %v7651_v45  ;;  %v1470_v54 = vmul.f32 %v7653_v60, %v6075_v1  ;;  %v7660_v50 = vld [vmem:[#allocation100_spill] sm:$0xff] }
 0x399   :  { %v1201_v62 = vadd.f32 %v1200_v30, %v1199_v22  ;;  %v6107_v11 = vadd.f32 %v1335_v7, %v1295_v48  ;;  %v1534_v34 = vadd.f32 %v1533_v53, %v1532_v35  ;;  %v1973_v46 = vrot.slane %v4958_v14, 1  ;;  %v7658_v48 = vld [vmem:[#allocation68_spill] sm:$0xff] }
 0x39a   :  { %v1629_v31 = vmul.f32 %v7652_v6, %v5990_v36  ;;  %v6110_v26 = vperm.slane %v1974_v20, 0  ;;  %v1928_v59 = vmul.f32 %v6084_v18, %v6097_v8  ;;  %v7655_v36 = vld [vmem:[#allocation126_spill] sm:$0xff]  ;;  %v7657_v22 = vsub.f32 1.0, %v7656_v37 }
 0x39b   :  { %v1202_v51 = vrot.slane %v1201_v62, 2  ;;  %v1471_v58 = vmul.f32 %v7654_v38, %v6107_v11  ;;  %v1800_v2 = vmul.f32 %v7655_v36, %v5928_v0  ;;  %v6122_v35 = vsel %vm880_vm7, %v1534_v34, %v1556_v27  ;;  %v7663_v34 = vld [vmem:[#allocation118_spill] sm:$0xff]  ;;  %v1696_v36 = vpop.permute.xlu1 %1695 }
 0x39c   :  { %v1623_v44 = vmul.f32 %v7657_v22, %v5914_v49  ;;  %v1942_v30 = vsub.f32 1.0, %v1926_v29  ;;  %v1944_v20 = vsub.f32 1.0, %v1928_v59  ;;  %v7659_v7 = vsub.f32 1.0, %v7658_v48  ;;  %v7664_v22 = vld [vmem:[#allocation170_spill] sm:$0xff] }
 0x39d   :  { %v6128_v45 = vadd.f32 %v7660_v50, %v1629_v31  ;;  %v1535_v6 = vsel %vm131_vm0, %v1470_v54, 0.0  ;;  %v1203_v60 = vadd.f32 %v1202_v51, %v1201_v62  ;;  %v1536_v0 = vsel %vm131_vm0, %v1471_v58, 0.0 }
 0x39e   :  { %v1625_v53 = vmul.f32 %v7659_v7, %v5943_v42  ;;  %v6132_v38 = vperm.slane %v1973_v46, 0  ;;  %v1537_v49 = vadd.f32 %v1536_v0, %v1535_v6  ;;  %v1960_v27 = vmul.f32 %v1944_v20, %v6100_v63 }
 0x39f   :  { %v2000_v29 = vmul.f32 %v6110_v26, %v6097_v8  ;;  %3700 = vset.pattern.permute.xlu2 %v4176_v24  ;;  %v7661_v42 = vperm.slane %v7622_v43, 4  ;;  %v6143_v54 = vmul.f32 %v5898_v9, %v6073_v40  ;;  %v1204_v62 = vrot.slane %v1203_v60, 1 }
 0x3a0   :  { %v6146_v46 = vadd.f32 %v7663_v34, %v2295_v12  ;;  %v1958_v59 = vmul.f32 %v1942_v30, %v6050_v21  ;;  %v1538_v51 = vrot.slane %v1537_v49, 4  ;;  %v1837_v37 = vsel %vm131_vm0, %v1800_v2, 0.0  ;;  %v7667_v30 = vld [vmem:[#allocation74_spill] sm:$0xff] }
 0x3a1   :  { %2423 = vperm.xlu1 %3698, %v7661_v42   ;;  %7662 = vst [vmem:[#allocation34_spill] sm:$0xff] %v6143_v54  ;;  %v6149_v58 = vadd.f32 %v2000_v29, %v1960_v27  ;;  %v7665_v20 = vsub.f32 1.0, %v7664_v22  ;;  %v1205_v7 = vadd.f32 %v1204_v62, %v1203_v60  ;;  %v1794_v50 = vmul.f32 %v1696_v36, %v5972_v32  ;;  %v7668_v29 = vld [vmem:[#allocation85_spill] sm:$0xff] }
 0x3a2   :  { %v7666_v6 = vperm.slane %v4940_v61, 0  ;;  %v1998_v12 = vmul.f32 %v6132_v38, %v6053_v5  ;;  %v1539_v21 = vadd.f32 %v1538_v51, %v1537_v49  ;;  %v1681_v27 = vadd.f32 %v7667_v30, %v1625_v53  ;;  %v7669_v62 = vld [vmem:[#allocation21_spill] sm:$0xff]  ;;  %v7670_v53 = vld [vmem:[#allocation87_spill] sm:$0xff] }
 0x3a3   :  { %v1967_v48 = vmul.f32 %v7665_v20, %v6128_v45  ;;  %v6162_v42 = vadd.f32 %v7668_v29, %v1623_v44  ;;  %v1220_v2 = vsel %vm882_vm8, %v1205_v7, %v6063_v41  ;;  %v1810_v34 = vsel %vm131_vm0, %v1794_v50, 0.0  ;;  %v7672_v51 = vld [vmem:[#allocation173_spill] sm:$0xff] }
 0x3a4   :  { %v1924_v0 = vmul.f32 %v7666_v6, %v1696_v36  ;;  %v2138_v22 = vmul.f32 %v7669_v62, %v5965_v55  ;;  %v2014_v20 = vadd.f32 %v1998_v12, %v1958_v59  ;;  %1223 = vst.msk [vmem:[#allocation3 + $0x8] sm:$0xff] %vm131_vm0, %v1220_v2  ;;  %v1540_v6 = vrot.slane %v1539_v21, 2 }
 0x3a5   :  { %v1812_v5 = vadd.f32 %v6033_v16, %v1810_v34  ;;  %v7671_v49 = vsub.f32 1.0, %v7670_v53  ;;  %v6175_v30 = vadd.f32 %v7672_v51, %v1967_v48  ;;  %v7673_v7 = vperm.slane %v4958_v14, 0  ;;  %v7677_v34 = vld [vmem:[#allocation35_spill] sm:$0xff]  ;;  %v7680_v51 = vld [vmem:[#allocation89_spill] sm:$0xff] }
 0x3a6   :  { %v1940_v60 = vsub.f32 1.0, %v1924_v0  ;;  %v7674_v0 = vld [vmem:[#allocation128_spill] sm:$0xff]  ;;  %v6185_v29 = vsel %vm131_vm0, %v6058_v33, 0.0  ;;  %v1541_v16 = vadd.f32 %v1540_v6, %v1539_v21  ;;  %v6196_v62 = vsel %vm131_vm0, %v2138_v22, 0.0  ;;  %v7679_v33 = vld [vmem:[#allocation50_spill] sm:$0xff]  ;;  %v7683_v22 = vld [vmem:[#allocation105_spill] sm:$0xff] }
 0x3a7   :  { %v1627_v44 = vmul.f32 %v7671_v49, %v5967_v13  ;;  %v1996_v50 = vmul.f32 %v7673_v7, %v1696_v36  ;;  %v7675_v59 = vsub.f32 1.0, %v7674_v0  ;;  %v1813_v2 = vrot.slane %v1812_v5, 4  ;;  %v1741_v49 = vpop.permute.xlu2 %1740 }
 0x3a8   :  { %v1956_v41 = vmul.f32 %v1940_v60, %v5972_v32  ;;  %v7676_v13 = vperm.slane %v7622_v43, 5  ;;  %v1904_v32 = vrot.slane %v4940_v61, 4  ;;  %v1976_v36 = vrot.slane %v4958_v14, 4 }
 0x3a9   :  { %v2300_v12 = vmul.f32 %v7675_v59, %v5965_v55  ;;  %3701 = vset.pattern.permute.xlu1 %v4181_v25  ;;  %v7678_v60 = vsub.f32 1.0, %v7677_v34  ;;  %v2134_v21 = vmul.f32 %v7679_v33, %v2014_v20  ;;  %v1542_v6 = vrot.slane %v1541_v16, 1 }
 0x3aa   :  { %2436 = vperm.xlu2 %3700, %v7676_v13   ;;  %v2012_v48 = vadd.f32 %v1996_v50, %v1956_v41  ;;  %v1814_v53 = vadd.f32 %v1813_v2, %v1812_v5  ;;  %v1683_v7 = vadd.f32 %v7680_v51, %v1627_v44  ;;  %v1798_v0 = vmul.f32 %v6097_v8, %v6100_v63  ;;  %v7681_v41 = vld [vmem:[#allocation51_spill] sm:$0xff]  ;;  %v7685_v5 = vld [vmem:[#allocation96_spill] sm:$0xff] }
 0x3ab   :  { %v1630_v55 = vmul.f32 %v7678_v60, %v6018_v17  ;;  %v1801_v59 = vmul.f32 %v1741_v49, %v1681_v27  ;;  %v7682_v13 = vld [vmem:[#allocation139_spill] sm:$0xff]  ;;  %v1543_v34 = vadd.f32 %v1542_v6, %v1541_v16  ;;  %v6204_v17 = vperm.slane %v1904_v32, 0  ;;  %v7687_v44 = vld [vmem:[#allocation116_spill] sm:$0xff] }
 0x3ac   :  { %v2132_v50 = vmul.f32 %v7681_v41, %v2012_v48  ;;  %v1931_v31 = vmul.f32 %v7682_v13, %v1741_v49  ;;  %v7684_v60 = vsub.f32 1.0, %v7683_v22  ;;  %v7686_v2 = vsub.f32 1.0, %v7685_v5  ;;  %v3397_v16 = vld [vmem:[#allocation3 + $0x8] sm:$0xff] }
 0x3ad   :  { %v7688_v51 = vsub.f32 1.0, %v7687_v44  ;;  %v1838_v41 = vsel %vm131_vm0, %v1801_v59, 0.0  ;;  %v1558_v32 = vsel %vm882_vm8, %v1543_v34, %v6122_v35  ;;  %v1815_v6 = vrot.slane %v1814_v53, 2  ;;  %3620 = vmatmul.msk.f32.gmra.mxu0 %vm131_vm0, %v3397_v16  ;;  %v7690_v5 = vld [vmem:[#allocation70_spill] sm:$0xff] }
 0x3ae   :  { %v1632_v33 = vmul.f32 %v7684_v60, %v6075_v1  ;;  %v1628_v10 = vmul.f32 %v7686_v2, %v6000_v56  ;;  %v2148_v63 = vsel %vm131_vm0, %v2132_v50, 0.0  ;;  %v1947_v13 = vsub.f32 1.0, %v1931_v31  ;;  %v7689_v1 = vld [vmem:[#allocation135_spill] sm:$0xff]  ;;  %1561 = vst.msk [vmem:[#allocation3 + $0x10] sm:$0xff] %vm131_vm0, %v1558_v32 }
 0x3af   :  { %v2298_v8 = vmul.f32 %v7688_v51, %v6149_v58  ;;  %v1839_v22 = vadd.f32 %v1838_v41, %v1837_v37  ;;  %v1805_v56 = vmul.f32 %v7689_v1, %v6128_v45  ;;  %v2143_v50 = vmul.f32 %v7690_v5, %v6175_v30  ;;  %v7691_v2 = vld [vmem:[#allocation111_spill] sm:$0xff]  ;;  %v7695_v51 = vld [vmem:[#allocation78_spill] sm:$0xff] }
 0x3b0   :  { %v1963_v60 = vmul.f32 %v1947_v13, %v1681_v27  ;;  %v7692_v59 = vsub.f32 1.0, %v7691_v2  ;;  %v6228_v44 = vadd.f32 %v6089_v4, %v2148_v63  ;;  %v6231_v35 = vsel %vm131_vm0, %v2134_v21, 0.0  ;;  %v7697_v63 = vld [vmem:[#allocation140_spill] sm:$0xff]  ;;  %v7698_v13 = vld [vmem:[#allocation106_spill] sm:$0xff] }
 0x3b1   :  { %v6234_v37 = vsel %vm131_vm0, %v1798_v0, 0.0  ;;  %v7693_v45 = vperm.slane %v7622_v43, 6  ;;  %v7694_v27 = vperm.slane %v7622_v43, 5  ;;  %v6240_v34 = vperm.slane %v1976_v36, 0  ;;  %v7699_v0 = vld [vmem:[#allocation101_spill] sm:$0xff]  ;;  %v7700_v1 = vld [vmem:[#allocation54_spill] sm:$0xff] }
 0x3b2   :  { %v2296_v31 = vmul.f32 %v7692_v59, %v2014_v20  ;;  %v6243_v41 = vadd.f32 %v7695_v51, %v1630_v55  ;;  %v7696_v20 = vld [vmem:[#allocation117_spill] sm:$0xff]  ;;  %v2003_v21 = vmul.f32 %v7697_v63, %v1741_v49  ;;  %v6250_v16 = vadd.f32 %v7698_v13, %v1632_v33  ;;  %v1754_v59 = vpop.permute.xlu2 %1753  ;;  %v7702_v51 = vld [vmem:[#allocation136_spill] sm:$0xff] }
 0x3b3   :  { %2449 = vperm.xlu2 %3700, %v7693_v45   ;;  %2442 = vperm.xlu1 %3701, %v7694_v27   ;;  %v6246_v4 = vadd.f32 %v7696_v20, %v2298_v8  ;;  %v6253_v32 = vadd.f32 %v7699_v0, %v1628_v10  ;;  %v2136_v5 = vmul.f32 %v7700_v1, %v6149_v58  ;;  %v1840_v36 = vrot.slane %v1839_v22, 4  ;;  %v1715_v45 = vpop.permute.xlu1 %1714  ;;  %v7701_v27 = vld [vmem:[#allocation114_spill] sm:$0xff] }
 0x3b4   :  { %v1816_v2 = vadd.f32 %v1815_v6, %v1814_v53  ;;  %v6258_v55 = vsel %vm131_vm0, %v1805_v56, 0.0  ;;  %v6260_v8 = vadd.f32 %v2003_v21, %v1963_v60  ;;  %v1933_v49 = vmul.f32 %v6204_v17, %v1754_v59  ;;  %v7703_v53 = vld [vmem:[#allocation110_spill] sm:$0xff]  ;;  %v7705_v56 = vld [vmem:[#allocation132_spill] sm:$0xff] }
 0x3b5   :  { %v6264_v33 = vsel %vm131_vm0, %v2143_v50, 0.0  ;;  %v6267_v10 = vadd.f32 %v7701_v27, %v2296_v31  ;;  %v1797_v20 = vmul.f32 %v1715_v45, %v7702_v51  ;;  %v1927_v58 = vmul.f32 %v6070_v39, %v1715_v45  ;;  %v7706_v21 = vld [vmem:[#allocation84_spill] sm:$0xff]  ;;  %v7708_v31 = vld [vmem:[#allocation142_spill] sm:$0xff] }
 0x3b6   :  { %v7704_v6 = vsub.f32 1.0, %v7703_v53  ;;  %v6275_v13 = vadd.f32 %v7705_v56, %v2300_v12  ;;  %v1949_v60 = vsub.f32 1.0, %v1933_v49  ;;  %v7707_v0 = vsub.f32 1.0, %v7706_v21  ;;  %v7710_v12 = vld [vmem:[#allocation58_spill] sm:$0xff] }
 0x3b7   :  { %v2474_v50 = vmul.f32 %v5582_v52, %v6246_v4  ;;  %v7709_v27 = vsub.f32 1.0, %v7708_v31  ;;  %v1817_v57 = vrot.slane %v1816_v2, 1  ;;  %v1841_v39 = vadd.f32 %v1840_v36, %v1839_v22 }
 0x3b8   :  { %v1633_v63 = vmul.f32 %v7704_v6, %v6107_v11  ;;  %v2294_v1 = vmul.f32 %v7707_v0, %v2012_v48  ;;  %v1820_v40 = vsel %vm131_vm0, %v1797_v20, 0.0  ;;  %v1943_v53 = vsub.f32 1.0, %v1927_v58  ;;  %v3398_v11 = vld [vmem:[#allocation3 + $0x10] sm:$0xff] }
 0x3b9   :  { %v2305_v9 = vmul.f32 %v7709_v27, %v6175_v30  ;;  %v2139_v6 = vmul.f32 %v7710_v12, %v6260_v8  ;;  %v1803_v49 = vmul.f32 %v1754_v59, %v1683_v7  ;;  %v1965_v56 = vmul.f32 %v1949_v60, %v1683_v7  ;;  %3621 = vmatmul.msk.f32.gmra.mxu0 %vm131_vm0, %v3398_v11  ;;  %v7712_v7 = vld [vmem:[#allocation113_spill] sm:$0xff] }
 0x3ba   :  { %v1821_v48 = vadd.f32 %v1820_v40, %v6185_v29  ;;  %v6290_v52 = vsel %vm131_vm0, %v2136_v5, 0.0  ;;  %v2005_v30 = vmul.f32 %v6240_v34, %v1754_v59  ;;  %v1959_v22 = vmul.f32 %v1943_v53, %v7702_v51  ;;  %v7713_v29 = vld [vmem:[#allocation147_spill] sm:$0xff]  ;;  %v7715_v51 = vld [vmem:[#allocation86_spill] sm:$0xff] }
 0x3bb   :  { %v1999_v36 = vmul.f32 %v6132_v38, %v1715_v45  ;;  %3702 = vset.pattern.permute.xlu2 %v4181_v25  ;;  %v7711_v20 = vperm.slane %v7622_v43, 6  ;;  %v6299_v60 = vadd.f32 %v7712_v7, %v1633_v63  ;;  %v2151_v40 = vrot.slane %v6228_v44, 4  ;;  %v1728_v0 = vpop.permute.xlu1 %1727 }
 0x3bc   :  { %v1822_v58 = vrot.slane %v1821_v48, 4  ;;  %v6303_v5 = vadd.f32 %v7713_v29, %v2305_v9  ;;  %v2021_v21 = vadd.f32 %v2005_v30, %v1965_v56  ;;  %v6306_v31 = vadd.f32 %v7715_v51, %v2294_v1  ;;  %v7716_v9 = vld [vmem:[#allocation59_spill] sm:$0xff] }
 0x3bd   :  { %2455 = vperm.xlu1 %3701, %v7711_v20   ;;  %v2015_v59 = vadd.f32 %v1999_v36, %v1959_v22  ;;  %v6309_v38 = vsel %vm131_vm0, %v2474_v50, 0.0  ;;  %v1818_v45 = vadd.f32 %v1817_v57, %v1816_v2  ;;  %v1842_v27 = vrot.slane %v1841_v39, 2  ;;  %v7717_v2 = vld [vmem:[#allocation127_spill] sm:$0xff] }
 0x3be   :  { %7714 = vst [vmem:[#allocation67_spill] sm:$0xff] %v6303_v5  ;;  %v1823_v53 = vadd.f32 %v1822_v58, %v1821_v48  ;;  %v1799_v63 = vmul.f32 %v1728_v0, %v6162_v42  ;;  %v2176_v11 = vsel %vm131_vm0, %v2139_v6, 0.0  ;;  %v6314_v12 = vsel %vm131_vm0, %v1803_v49, 0.0 }
 0x3bf   :  { %v2135_v56 = vmul.f32 %v7716_v9, %v2015_v59  ;;  %v1929_v30 = vmul.f32 %v6084_v18, %v1728_v0  ;;  %v1906_v50 = vrot.slane %v4940_v61, 6  ;;  %v2152_v57 = vadd.f32 %v2151_v40, %v6228_v44  ;;  %v7719_v18 = vld [vmem:[#allocation123_spill] sm:$0xff] }
 0x3c0   :  { %v1824_v22 = vrot.slane %v1823_v53, 2  ;;  %v1829_v1 = vsel %vm131_vm0, %v1799_v63, 0.0  ;;  %v7718_v48 = vsub.f32 1.0, %v7717_v2  ;;  %v1843_v58 = vadd.f32 %v1842_v27, %v1841_v39  ;;  %v7722_v2 = vld [vmem:[#allocation44_spill] sm:$0xff] }
 0x3c1   :  { %v2158_v20 = vsel %vm131_vm0, %v2135_v56, 0.0  ;;  %v1830_v6 = vadd.f32 %v1829_v1, %v6234_v37  ;;  %v1945_v49 = vsub.f32 1.0, %v1929_v30  ;;  %v7720_v51 = vsub.f32 1.0, %v7719_v18  ;;  %v7726_v18 = vld [vmem:[#allocation53_spill] sm:$0xff] }
 0x3c2   :  { %v2303_v36 = vmul.f32 %v7718_v48, %v2021_v21  ;;  %v1825_v7 = vadd.f32 %v1824_v22, %v1823_v53  ;;  %v2159_v29 = vadd.f32 %v2158_v20, %v6231_v35  ;;  %v2001_v44 = vmul.f32 %v6110_v26, %v1728_v0  ;;  %v7724_v35 = vld [vmem:[#allocation125_spill] sm:$0xff] }
 0x3c3   :  { %v2297_v9 = vmul.f32 %v7720_v51, %v2015_v59  ;;  %v1831_v63 = vrot.slane %v1830_v6, 4  ;;  %v1961_v15 = vmul.f32 %v1945_v49, %v6162_v42  ;;  %v7721_v40 = vperm.slane %v7622_v43, 7  ;;  %v7725_v59 = vld [vmem:[#allocation31_spill] sm:$0xff]  ;;  %v1774_v43 = vpop.permute.xlu2 %1773 }
 0x3c4   :  { %v7723_v56 = vperm.slane %v7722_v2, 0  ;;  %v2177_v37 = vadd.f32 %v2176_v11, %v6196_v62  ;;  %v1826_v39 = vrot.slane %v1825_v7, 1  ;;  %v2160_v27 = vrot.slane %v2159_v29, 4 }
 0x3c5   :  { %2468 = vperm.xlu2 %3702, %v7721_v40   ;;  %v2153_v53 = vrot.slane %v2152_v57, 2  ;;  %v6336_v30 = vadd.f32 %v7724_v35, %v2297_v9  ;;  %v6339_v22 = vadd.f32 %v7725_v59, %v2303_v36  ;;  %v1832_v42 = vadd.f32 %v1831_v63, %v1830_v6 }
 0x3c6   :  { %3053 = vperm.xlu1 %3701, %v7723_v56   ;;  %v2017_v1 = vadd.f32 %v2001_v44, %v1961_v15  ;;  %v1978_v26 = vrot.slane %v4958_v14, 6  ;;  %v1827_v0 = vadd.f32 %v1826_v39, %v1825_v7  ;;  %v2161_v48 = vadd.f32 %v2160_v27, %v2159_v29  ;;  %v7727_v15 = vld [vmem:[#allocation124_spill] sm:$0xff]  ;;  %v7729_v7 = vld [vmem:[#allocation22_spill] sm:$0xff] }
 0x3c7   :  { %v6342_v20 = vperm.slane %v1906_v50, 0  ;;  %v1907_v62 = vrot.slane %v4940_v61, 7  ;;  %v1844_v11 = vrot.slane %v1843_v58, 1  ;;  %v1833_v49 = vrot.slane %v1832_v42, 2  ;;  %v7730_v50 = vld [vmem:[#allocation32_spill] sm:$0xff] }
 0x3c8   :  { %v2137_v51 = vmul.f32 %v7726_v18, %v2017_v1  ;;  %v1979_v9 = vrot.slane %v4958_v14, 7  ;;  %v1890_v36 = vsel %vm870_vm2, %v1827_v0, %v1818_v45  ;;  %v2162_v40 = vrot.slane %v2161_v48, 2 }
 0x3c9   :  { %v7728_v6 = vsub.f32 1.0, %v7727_v15  ;;  %v2154_v44 = vadd.f32 %v2153_v53, %v2152_v57  ;;  %v2141_v29 = vmul.f32 %v7729_v7, %v2021_v21  ;;  %v7731_v56 = vsub.f32 1.0, %v7730_v50 }
 0x3ca   :  { %v1834_v39 = vadd.f32 %v1833_v49, %v1832_v42  ;;  %v2167_v27 = vsel %vm131_vm0, %v2137_v51, 0.0  ;;  %v2163_v35 = vadd.f32 %v2162_v40, %v2161_v48  ;;  %v6357_v59 = vperm.slane %v1978_v26, 0  ;;  %v7732_v42 = vld [vmem:[#allocation129_spill] sm:$0xff]  ;;  %v1748_v40 = vpop.permute.xlu1 %1747 }
 0x3cb   :  { %v2301_v63 = vmul.f32 %v7728_v6, %v6260_v8  ;;  %v2641_v61 = vmul.f32 %v7731_v56, %v6339_v22  ;;  %v2168_v14 = vadd.f32 %v2167_v27, %v6290_v52  ;;  %v1936_v45 = vmul.f32 %v6342_v20, %v1774_v43  ;;  %v7733_v49 = vld [vmem:[#allocation33_spill] sm:$0xff]  ;;  %v6375_v51 = vpop.permute.xlu2 %1786  ;;  %v7734_v56 = vld [vmem:[#allocation146_spill] sm:$0xff] }
 0x3cc   :  { %v1845_v0 = vadd.f32 %v1844_v11, %v1843_v58  ;;  %v1835_v18 = vrot.slane %v1834_v39, 1  ;;  %v6362_v8 = vperm.slane %v1907_v62, 0  ;;  %v6364_v21 = vperm.slane %v1979_v9, 0 }
 0x3cd   :  { %3703 = vset.pattern.permute.xlu2 %v4176_v24  ;;  %v2164_v57 = vrot.slane %v2163_v35, 1  ;;  %v2169_v53 = vrot.slane %v2168_v14, 4  ;;  %v6367_v48 = vadd.f32 %v7732_v42, %v2301_v63  ;;  %v2155_v52 = vrot.slane %v2154_v44, 1 }
 0x3ce   :  { %3705 = vset.pattern.permute.xlu1 %v4176_v24  ;;  %v6370_v26 = vsel %vm131_vm0, %v2141_v29, 0.0  ;;  %v6373_v58 = vadd.f32 %v7733_v49, %v2641_v61  ;;  %v1836_v11 = vadd.f32 %v1835_v18, %v1834_v39  ;;  %v2178_v62 = vrot.slane %v2177_v37, 4  ;;  %v7735_v18 = vld [vmem:[#allocation40_spill] sm:$0xff] }
 0x3cf   :  { %v2170_v15 = vadd.f32 %v2169_v53, %v2168_v14  ;;  %v1806_v9 = vmul.f32 %v1774_v43, %v6243_v41  ;;  %v1952_v6 = vsub.f32 1.0, %v1936_v45  ;;  %v2008_v7 = vmul.f32 %v6357_v59, %v1774_v43 }
 0x3d0   :  { %v2165_v63 = vadd.f32 %v2164_v57, %v2163_v35  ;;  %v1891_v50 = vsel %vm872_vm3, %v1836_v11, %v1890_v36  ;;  %v1938_v29 = vmul.f32 %v6362_v8, %v6375_v51  ;;  %v1802_v61 = vmul.f32 %v1748_v40, %v7734_v56 }
 0x3d1   :  { %v2171_v27 = vrot.slane %v2170_v15, 2  ;;  %v6384_v39 = vsel %vm874_vm4, %v1845_v0, %v1891_v50  ;;  %v7736_v42 = vsub.f32 1.0, %v7735_v18  ;;  %v2156_v53 = vadd.f32 %v2155_v52, %v2154_v44  ;;  %v7740_v52 = vld [vmem:[#allocation97_spill] sm:$0xff] }
 0x3d2   :  { %v1954_v49 = vsub.f32 1.0, %v1938_v29  ;;  %v1846_v45 = vsel %vm131_vm0, %v1802_v61, 0.0  ;;  %v1932_v43 = vmul.f32 %v6204_v17, %v1748_v40  ;;  %v2179_v35 = vadd.f32 %v2178_v62, %v2177_v37 }
 0x3d3   :  { %v2299_v14 = vmul.f32 %v7736_v42, %v2017_v1  ;;  %v2172_v36 = vadd.f32 %v2171_v27, %v2170_v15  ;;  %v1968_v57 = vmul.f32 %v1952_v6, %v6243_v41  ;;  %v1848_v11 = vadd.f32 %v6314_v12, %v1846_v45  ;;  %v7741_v15 = vld [vmem:[#allocation94_spill] sm:$0xff]  ;;  %v7742_v6 = vld [vmem:[#allocation176_spill] sm:$0xff]  ;;  %v2372_v42 = vpop.permute.xlu2 %2371  ;;  %v1761_v45 = vpop.permute.xlu1 %1760 }
 0x3d4   :  { %v7258_v5 = vperm.slane %v7737_v3, 0  ;;  %v6394_v0 = vsel %vm131_vm0, %v1806_v9, 0.0  ;;  %v1948_v50 = vsub.f32 1.0, %v1932_v43  ;;  %v7738_v1 = vperm.slane %v7722_v2, 2 }
 0x3d5   :  { %v7739_v44 = vperm.slane %v7722_v2, 0  ;;  %v7260_v17 = vperm.slane %v7740_v52, 0  ;;  %v2228_v37 = vsel %vm870_vm2, %v2165_v63, %v2156_v53  ;;  %v2173_v62 = vrot.slane %v2172_v36, 1 }
 0x3d6   :  { %3073 = vperm.xlu1 %3705, %v7738_v1   ;;  %v1849_v41 = vrot.slane %v1848_v11, 4  ;;  %v6403_v12 = vadd.f32 %v7741_v15, %v2299_v14  ;;  %v7743_v9 = vsub.f32 1.0, %v7742_v6  ;;  %v1970_v61 = vmul.f32 %v1954_v49, %v6250_v16  ;;  %v7745_v15 = vld [vmem:[#allocation153_spill] sm:$0xff] }
 0x3d7   :  { %3047 = vperm.xlu2 %3703, %v7739_v44   ;;  %v1964_v27 = vmul.f32 %v1948_v50, %v7734_v56  ;;  %v2004_v18 = vmul.f32 %v6240_v34, %v1748_v40  ;;  %v2180_v43 = vrot.slane %v2179_v35, 2  ;;  %v2024_v1 = vadd.f32 %v2008_v7, %v1968_v57 }
 0x3d8   :  { %v2636_v29 = vmul.f32 %v7743_v9, %v6246_v4  ;;  %v1850_v63 = vadd.f32 %v1849_v41, %v1848_v11  ;;  %v6412_v53 = vmul.f32 %v2372_v42, %v6306_v31  ;;  %v2600_v14 = vmul.f32 %v7258_v5, %v2372_v42  ;;  %v7744_v11 = vld [vmem:[#allocation28_spill] sm:$0xff] }
 0x3d9   :  { %v2010_v4 = vmul.f32 %v6364_v21, %v6375_v51  ;;  %v6418_v44 = vadd.f32 %v2004_v18, %v1964_v27  ;;  %v2577_v56 = vrot.slane %v7737_v3, 1  ;;  %v2649_v34 = vrot.slane %v7740_v52, 1 }
 0x3da   :  { %v2174_v40 = vadd.f32 %v2173_v62, %v2172_v36  ;;  %v1851_v49 = vrot.slane %v1850_v63, 2  ;;  %v2616_v50 = vsub.f32 1.0, %v2600_v14  ;;  %v1804_v7 = vmul.f32 %v1761_v45, %v6253_v32 }
 0x3db   :  { %v2026_v57 = vadd.f32 %v2010_v4, %v1970_v61  ;;  %v2140_v41 = vmul.f32 %v7744_v11, %v6418_v44  ;;  %v1934_v6 = vmul.f32 %v7745_v15, %v1761_v45  ;;  %v2181_v9 = vadd.f32 %v2180_v43, %v2179_v35 }
 0x3dc   :  { %v1852_v5 = vadd.f32 %v1851_v49, %v1850_v63  ;;  %v2632_v27 = vmul.f32 %v2616_v50, %v6306_v31  ;;  %v2672_v18 = vmul.f32 %v7260_v17, %v2372_v42  ;;  %v1855_v47 = vsel %vm131_vm0, %v1804_v7, 0.0  ;;  %v7747_v63 = vld [vmem:[#allocation141_spill] sm:$0xff] }
 0x3dd   :  { %v2184_v36 = vsel %vm131_vm0, %v2140_v41, 0.0  ;;  %v1857_v62 = vadd.f32 %v6258_v55, %v1855_v47  ;;  %v1950_v14 = vsub.f32 1.0, %v1934_v6  ;;  %v7746_v61 = vperm.slane %v7722_v2, 3  ;;  %v7749_v55 = vld [vmem:[#allocation157_spill] sm:$0xff]  ;;  %v2385_v41 = vpop.permute.xlu2 %2384 }
 0x3de   :  { %v6435_v4 = vperm.slane %v2577_v56, 0  ;;  %v1853_v35 = vrot.slane %v1852_v5, 1  ;;  %v2186_v31 = vadd.f32 %v6370_v26, %v2184_v36  ;;  %v6438_v43 = vadd.f32 %v2672_v18, %v2632_v27 }
 0x3df   :  { %3086 = vperm.xlu1 %3705, %v7746_v61   ;;  %3704 = vset.pattern.permute.xlu2 %v4181_v25  ;;  %v2229_v42 = vsel %vm872_vm3, %v2174_v40, %v2228_v37  ;;  %v7748_v49 = vsub.f32 1.0, %v7747_v63  ;;  %v1858_v7 = vrot.slane %v1857_v62, 4  ;;  %v1966_v47 = vmul.f32 %v1950_v14, %v6253_v32  ;;  %v7750_v40 = vld [vmem:[#allocation64_spill] sm:$0xff] }
 0x3e0   :  { %v2006_v11 = vmul.f32 %v7749_v55, %v1761_v45  ;;  %v1854_v15 = vadd.f32 %v1853_v35, %v1852_v5  ;;  %v2187_v6 = vrot.slane %v2186_v31, 4  ;;  %v6446_v56 = vmul.f32 %v2385_v41, %v6267_v10  ;;  %v7751_v45 = vld [vmem:[#allocation179_spill] sm:$0xff] }
 0x3e1   :  { %v2308_v50 = vmul.f32 %v7748_v49, %v2026_v57  ;;  %v2182_v61 = vrot.slane %v2181_v9, 1  ;;  %v1859_v26 = vadd.f32 %v1858_v7, %v1857_v62  ;;  %v6448_v18 = vperm.slane %v2649_v34, 0  ;;  %v7752_v49 = vld [vmem:[#allocation57_spill] sm:$0xff] }
 0x3e2   :  { %v2022_v27 = vadd.f32 %v2006_v11, %v1966_v47  ;;  %v2602_v37 = vmul.f32 %v6435_v4, %v2385_v41  ;;  %v2144_v36 = vmul.f32 %v7750_v40, %v2024_v1  ;;  %v1893_v32 = vsel %vm876_vm5, %v1854_v15, %v6384_v39  ;;  %v7753_v34 = vld [vmem:[#allocation145_spill] sm:$0xff]  ;;  %v7754_v11 = vld [vmem:[#allocation134_spill] sm:$0xff] }
 0x3e3   :  { %v2188_v14 = vadd.f32 %v2187_v6, %v2186_v31  ;;  %v6455_v63 = vadd.f32 %v7751_v45, %v2636_v29  ;;  %v1808_v5 = vmul.f32 %v6375_v51, %v6250_v16  ;;  %v1860_v35 = vrot.slane %v1859_v26, 2 }
 0x3e4   :  { %v2142_v62 = vmul.f32 %v7752_v49, %v2022_v27  ;;  %v2618_v7 = vsub.f32 1.0, %v2602_v37  ;;  %v6461_v47 = vadd.f32 %v7753_v34, %v2308_v50  ;;  %v7755_v40 = vsub.f32 1.0, %v7754_v11  ;;  %v7758_v49 = vld [vmem:[#allocation107_spill] sm:$0xff] }
 0x3e5   :  { %v2189_v55 = vrot.slane %v2188_v14, 2  ;;  %v2183_v54 = vadd.f32 %v2182_v61, %v2181_v9  ;;  %v1861_v39 = vadd.f32 %v1860_v35, %v1859_v26  ;;  %v2674_v15 = vmul.f32 %v6448_v18, %v2385_v41  ;;  %v7757_v61 = vld [vmem:[#allocation69_spill] sm:$0xff]  ;;  %v1780_v41 = vpop.permute.xlu1 %1779 }
 0x3e6   :  { %v2306_v17 = vmul.f32 %v7755_v40, %v2024_v1  ;;  %v2193_v31 = vsel %vm131_vm0, %v2142_v62, 0.0  ;;  %v2634_v29 = vmul.f32 %v2618_v7, %v6267_v10  ;;  %v7756_v16 = vperm.slane %v7722_v2, 1 }
 0x3e7   :  { %3708 = vset.pattern.permute.xlu1 %v4181_v25  ;;  %v2202_v51 = vsel %vm131_vm0, %v2144_v36, 0.0  ;;  %v2190_v50 = vadd.f32 %v2189_v55, %v2188_v14  ;;  %v2195_v6 = vadd.f32 %v6264_v33, %v2193_v31  ;;  %v2230_v1 = vsel %vm874_vm4, %v2183_v54, %v2229_v42  ;;  %v7759_v36 = vld [vmem:[#allocation41_spill] sm:$0xff]  ;;  %v7761_v54 = vld [vmem:[#allocation152_spill] sm:$0xff] }
 0x3e8   :  { %3066 = vperm.xlu2 %3704, %v7756_v16   ;;  %v1873_v9 = vsel %vm131_vm0, %v1808_v5, 0.0  ;;  %v2146_v26 = vmul.f32 %v7757_v61, %v2026_v57  ;;  %v1862_v37 = vrot.slane %v1861_v39, 1  ;;  %v6476_v10 = vadd.f32 %v2674_v15, %v2634_v29  ;;  %v7763_v57 = vld [vmem:[#allocation138_spill] sm:$0xff] }
 0x3e9   :  { %v2191_v45 = vrot.slane %v2190_v50, 1  ;;  %v2196_v35 = vrot.slane %v2195_v6, 4  ;;  %v1807_v62 = vmul.f32 %v1780_v41, %v7758_v49  ;;  %v1937_v7 = vmul.f32 %v6342_v20, %v1780_v41 }
 0x3ea   :  { %v7760_v14 = vsub.f32 1.0, %v7759_v36  ;;  %v1863_v34 = vadd.f32 %v1862_v37, %v1861_v39  ;;  %v7762_v42 = vsub.f32 1.0, %v7761_v54  ;;  %v6487_v55 = vadd.f32 %v7763_v57, %v2306_v17  ;;  %v7764_v39 = vld [vmem:[#allocation158_spill] sm:$0xff] }
 0x3eb   :  { %v2192_v11 = vadd.f32 %v2191_v45, %v2190_v50  ;;  %v2197_v40 = vadd.f32 %v2196_v35, %v2195_v6  ;;  %v1865_v31 = vsel %vm131_vm0, %v1807_v62, 0.0  ;;  %v1953_v29 = vsub.f32 1.0, %v1937_v7  ;;  %v7765_v45 = vld [vmem:[#allocation188_spill] sm:$0xff] }
 0x3ec   :  { %v2646_v33 = vmul.f32 %v7760_v14, %v6461_v47  ;;  %v2972_v5 = vmul.f32 %v7762_v42, %v6476_v10  ;;  %v6492_v20 = vsel %vm131_vm0, %v6412_v53, 0.0  ;;  %v6495_v15 = vsel %vm878_vm6, %v1863_v34, %v1893_v32  ;;  %v7771_v14 = vld [vmem:[#allocation98_spill] sm:$0xff]  ;;  %v2404_v42 = vpop.permute.xlu2 %2403 }
 0x3ed   :  { %v1866_v61 = vadd.f32 %v1865_v31, %v6394_v0  ;;  %v6502_v17 = vsel %vm131_vm0, %v2146_v26, 0.0  ;;  %v2198_v50 = vrot.slane %v2197_v40, 2  ;;  %v1969_v6 = vmul.f32 %v1953_v29, %v7758_v49  ;;  %v7770_v49 = vld [vmem:[#allocation79_spill] sm:$0xff]  ;;  %v7773_v31 = vld [vmem:[#allocation160_spill] sm:$0xff] }
 0x3ee   :  { %v6498_v16 = vadd.f32 %v7764_v39, %v2972_v5  ;;  %v2009_v37 = vmul.f32 %v6357_v59, %v1780_v41  ;;  %v6507_v35 = vadd.f32 %v7765_v45, %v2646_v33  ;;  %v7767_v53 = vsub.f32 1.0, %v6022_v28  ;;  %v1793_v5 = vpop.permute.xlu1 %1792 }
 0x3ef   :  { %v1867_v62 = vrot.slane %v1866_v61, 4  ;;  %v7768_v7 = vperm.slane %v7722_v2, 4  ;;  %v7769_v0 = vperm.slane %v7722_v2, 2  ;;  %v2231_v26 = vsel %vm876_vm5, %v2192_v11, %v2230_v1  ;;  %v7774_v11 = vld [vmem:[#allocation80_spill] sm:$0xff] }
 0x3f0   :  { %7766 = vst [vmem:[#allocation81_spill] sm:$0xff] %v6507_v35  ;;  %v3310_v32 = vmul.f32 %v7767_v53, %v6498_v16  ;;  %v2808_v36 = vmul.f32 %v7770_v49, %v6438_v43  ;;  %v2199_v59 = vadd.f32 %v2198_v50, %v2197_v40  ;;  %v6519_v41 = vadd.f32 %v2009_v37, %v1969_v6  ;;  %v7775_v50 = vld [vmem:[#allocation163_spill] sm:$0xff] }
 0x3f1   :  { %3105 = vperm.xlu1 %3708, %v7768_v7   ;;  %3079 = vperm.xlu2 %3704, %v7769_v0   ;;  %v7772_v33 = vsub.f32 1.0, %v7771_v14  ;;  %v1868_v54 = vadd.f32 %v1867_v62, %v1866_v61  ;;  %v2579_v57 = vrot.slane %v7737_v3, 3  ;;  %v2479_v29 = vmul.f32 %v7773_v31, %v6339_v22 }
 0x3f2   :  { %v3366_v28 = vadd.f32 %v6039_v19, %v3310_v32  ;;  %v2200_v1 = vrot.slane %v2199_v59, 1  ;;  %v2145_v39 = vmul.f32 %v7774_v11, %v6519_v41  ;;  %v2475_v40 = vmul.f32 %v2404_v42, %v6403_v12 }
 0x3f3   :  { %v2304_v34 = vmul.f32 %v7772_v33, %v2022_v27  ;;  %v2605_v6 = vmul.f32 %v7775_v50, %v2404_v42  ;;  %v1869_v27 = vrot.slane %v1868_v54, 2  ;;  %v1809_v19 = vmul.f32 %v1793_v5, %v6299_v60  ;;  %v7776_v33 = vld [vmem:[#allocation166_spill] sm:$0xff] }
 0x3f4   :  { %3382 = vst.msk [vmem:[#allocation2 + $0x10] sm:$0xff] %vm131_vm0, %v3366_v28  ;;  %v1939_v61 = vmul.f32 %v6362_v8, %v1793_v5  ;;  %v2651_v37 = vrot.slane %v7740_v52, 3  ;;  %v2201_v45 = vadd.f32 %v2200_v1, %v2199_v59  ;;  %v2203_v22 = vsel %vm131_vm0, %v2145_v39, 0.0 }
 0x3f5   :  { %v2505_v53 = vsel %vm131_vm0, %v2475_v40, 0.0  ;;  %v2621_v32 = vsub.f32 1.0, %v2605_v6  ;;  %v1870_v62 = vadd.f32 %v1869_v27, %v1868_v54  ;;  %v2204_v7 = vadd.f32 %v2203_v22, %v2202_v51 }
 0x3f6   :  { %v2506_v0 = vadd.f32 %v2505_v53, %v6309_v38  ;;  %v1874_v49 = vsel %vm131_vm0, %v1809_v19, 0.0  ;;  %v2677_v28 = vmul.f32 %v7776_v33, %v2404_v42  ;;  %v1955_v8 = vsub.f32 1.0, %v1939_v61  ;;  %v2378_v27 = vpop.permute.xlu1 %2377  ;;  %v7778_v61 = vld [vmem:[#allocation102_spill] sm:$0xff] }
 0x3f7   :  { %v2637_v14 = vmul.f32 %v2621_v32, %v6403_v12  ;;  %v1875_v31 = vadd.f32 %v1874_v49, %v1873_v9  ;;  %v1871_v11 = vrot.slane %v1870_v62, 1  ;;  %v2205_v50 = vrot.slane %v2204_v7, 4 }
 0x3f8   :  { %v7777_v59 = vperm.slane %v7722_v2, 5  ;;  %v6544_v1 = vperm.slane %v2579_v57, 0  ;;  %v6547_v51 = vsel %vm878_vm6, %v2201_v45, %v2231_v26  ;;  %v1971_v12 = vmul.f32 %v1955_v8, %v6299_v60  ;;  %v6558_v57 = vpop.permute.xlu2 %2416  ;;  %v7779_v60 = vld [vmem:[#allocation131_spill] sm:$0xff] }
 0x3f9   :  { %3707 = vset.pattern.permute.xlu2 %v4176_v24  ;;  %v6549_v38 = vadd.f32 %v2677_v28, %v2637_v14  ;;  %v1876_v54 = vrot.slane %v1875_v31, 4  ;;  %v2011_v9 = vmul.f32 %v6364_v21, %v1793_v5  ;;  %v6554_v42 = vsel %vm131_vm0, %v2808_v36, 0.0  ;;  %v7782_v14 = vld [vmem:[#allocation90_spill] sm:$0xff]  ;;  %v7783_v28 = vld [vmem:[#allocation133_spill] sm:$0xff] }
 0x3fa   :  { %3118 = vperm.xlu1 %3708, %v7777_v59   ;;  %v2495_v39 = vsel %vm131_vm0, %v6446_v56, 0.0  ;;  %v1872_v40 = vadd.f32 %v1871_v11, %v1870_v62  ;;  %v2206_v6 = vadd.f32 %v2205_v50, %v2204_v7  ;;  %v6563_v45 = vadd.f32 %v7778_v61, %v2304_v34  ;;  %v7780_v62 = vld [vmem:[#allocation19_spill] sm:$0xff]  ;;  %v7781_v7 = vld [vmem:[#allocation104_spill] sm:$0xff] }
 0x3fb   :  { %v1877_v26 = vadd.f32 %v1876_v54, %v1875_v31  ;;  %v6560_v19 = vadd.f32 %v2011_v9, %v1971_v12  ;;  %v2817_v21 = vmul.f32 %v7779_v60, %v6373_v58  ;;  %v6569_v5 = vperm.slane %v2651_v37, 0 }
 0x3fc   :  { %v1895_v36 = vsel %vm880_vm7, %v1872_v40, %v6495_v15  ;;  %v2607_v56 = vmul.f32 %v6544_v1, %v6558_v57  ;;  %v6574_v22 = vsel %vm131_vm0, %v2479_v29, 0.0  ;;  %v2507_v53 = vrot.slane %v2506_v0, 4 }
 0x3fd   :  { %v1878_v32 = vrot.slane %v1877_v26, 2  ;;  %v2147_v34 = vmul.f32 %v7780_v62, %v6560_v19  ;;  %v6580_v49 = vmul.f32 %v7781_v7, %v6455_v63  ;;  %v6584_v15 = vmul.f32 %v7782_v14, %v6476_v10 }
 0x3fe   :  { %v2207_v37 = vrot.slane %v2206_v6, 2  ;;  %v2623_v33 = vsub.f32 1.0, %v2607_v56  ;;  %v7784_v31 = vsub.f32 1.0, %v7783_v28  ;;  %v2471_v50 = vmul.f32 %v2378_v27, %v6146_v46 }
 0x3ff   :  { %v1879_v8 = vadd.f32 %v1878_v32, %v1877_v26  ;;  %v2212_v11 = vsel %vm131_vm0, %v2147_v34, 0.0  ;;  %v7785_v59 = vperm.slane %v7737_v3, 0  ;;  %v2679_v9 = vmul.f32 %v6569_v5, %v6558_v57 }
 0x400   :  { %v6589_v29 = vmul.f32 %v7784_v31, %v6418_v44  ;;  %v2213_v12 = vadd.f32 %v2212_v11, %v6502_v17  ;;  %v2639_v10 = vmul.f32 %v2623_v33, %v6367_v48  ;;  %v7786_v44 = vperm.slane %v7722_v2, 4  ;;  %v2391_v33 = vpop.permute.xlu1 %2390 }
 0x401   :  { %v2601_v54 = vmul.f32 %v7785_v59, %v2378_v27  ;;  %v6603_v40 = vsel %vm131_vm0, %v2817_v21, 0.0  ;;  %v2508_v26 = vadd.f32 %v2507_v53, %v2506_v0  ;;  %v1880_v61 = vrot.slane %v1879_v8, 1  ;;  %v7788_v53 = vld [vmem:[#allocation168_spill] sm:$0xff] }
 0x402   :  { %3710 = vset.pattern.permute.xlu1 %v4176_v24  ;;  %3099 = vperm.xlu2 %3707, %v7786_v44   ;;  %v2487_v56 = vsel %vm131_vm0, %v2471_v50, 0.0  ;;  %v2208_v62 = vadd.f32 %v2207_v37, %v2206_v6  ;;  %v2214_v17 = vrot.slane %v2213_v12, 4  ;;  %v6606_v34 = vadd.f32 %v2679_v9, %v2639_v10  ;;  %v7790_v37 = vld [vmem:[#allocation181_spill] sm:$0xff]  ;;  %v7791_v10 = vld [vmem:[#allocation52_spill] sm:$0xff] }
 0x403   :  { %v2617_v32 = vsub.f32 1.0, %v2601_v54  ;;  %v7787_v7 = vperm.slane %v7740_v52, 0  ;;  %v1881_v24 = vadd.f32 %v1880_v61, %v1879_v8  ;;  %v2488_v28 = vadd.f32 %v2487_v56, %v6492_v20  ;;  %v7792_v56 = vld [vmem:[#allocation91_spill] sm:$0xff] }
 0x404   :  { %v2473_v21 = vmul.f32 %v2391_v33, %v6336_v30  ;;  %v2215_v0 = vadd.f32 %v2214_v17, %v2213_v12  ;;  %v7789_v11 = vsub.f32 1.0, %v7788_v53  ;;  %v2603_v6 = vmul.f32 %v6435_v4, %v2391_v33  ;;  %v7793_v17 = vld [vmem:[#allocation184_spill] sm:$0xff] }
 0x405   :  { %v2673_v14 = vmul.f32 %v7787_v7, %v2378_v27  ;;  %v2633_v31 = vmul.f32 %v2617_v32, %v6146_v46  ;;  %v2484_v59 = vmul.f32 %v7790_v37, %v6461_v47  ;;  %v1896_v27 = vsel %vm882_vm8, %v1881_v24, %v1895_v36 }
 0x406   :  { %v2977_v50 = vmul.f32 %v7789_v11, %v6606_v34  ;;  %v2489_v54 = vrot.slane %v2488_v28, 4  ;;  %v2496_v20 = vsel %vm131_vm0, %v2473_v21, 0.0  ;;  %v2509_v46 = vrot.slane %v2508_v26, 2  ;;  %1899 = vst.msk [vmem:[#allocation3 + $0x18] sm:$0xff] %vm131_vm0, %v1896_v27 }
 0x407   :  { %v6620_v8 = vadd.f32 %v2673_v14, %v2633_v31  ;;  %v2216_v12 = vrot.slane %v2215_v0, 2  ;;  %v2497_v44 = vadd.f32 %v2496_v20, %v2495_v39  ;;  %v2209_v61 = vrot.slane %v2208_v62, 1  ;;  %v6642_v20 = vpop.permute.xlu2 %2436 }
 0x408   :  { %v6625_v9 = vadd.f32 %v7791_v10, %v2977_v50  ;;  %v2490_v4 = vadd.f32 %v2489_v54, %v2488_v28  ;;  %v2619_v32 = vsub.f32 1.0, %v2603_v6  ;;  %v7794_v7 = vsub.f32 1.0, %v7793_v17  ;;  %v7797_v6 = vld [vmem:[#allocation186_spill] sm:$0xff] }
 0x409   :  { %v2809_v47 = vmul.f32 %v7792_v56, %v6620_v8  ;;  %v2217_v36 = vadd.f32 %v2216_v12, %v2215_v0  ;;  %v2498_v24 = vrot.slane %v2497_v44, 4  ;;  %v7795_v31 = vperm.slane %v7722_v2, 7 }
 0x40a   :  { %v3315_v14 = vmul.f32 %v7794_v7, %v6625_v9  ;;  %v7796_v21 = vperm.slane %v7722_v2, 5  ;;  %v2581_v39 = vrot.slane %v7737_v3, 5  ;;  %v2491_v53 = vrot.slane %v2490_v4, 2 }
 0x40b   :  { %3138 = vperm.xlu1 %3710, %v7795_v31   ;;  %v2825_v28 = vsel %vm131_vm0, %v2809_v47, 0.0  ;;  %v2635_v11 = vmul.f32 %v2619_v32, %v6336_v30  ;;  %v2675_v0 = vmul.f32 %v6448_v18, %v2391_v33  ;;  %v2218_v50 = vrot.slane %v2217_v36, 1  ;;  %v7798_v33 = vld [vmem:[#allocation137_spill] sm:$0xff] }
 0x40c   :  { %3112 = vperm.xlu2 %3707, %v7796_v21   ;;  %v3371_v37 = vadd.f32 %v7797_v6, %v3315_v14  ;;  %v2826_v27 = vadd.f32 %v2825_v28, %v6554_v42  ;;  %v2499_v54 = vadd.f32 %v2498_v24, %v2497_v44  ;;  %v2510_v12 = vadd.f32 %v2509_v46, %v2508_v26  ;;  %v7799_v26 = vld [vmem:[#allocation27_spill] sm:$0xff] }
 0x40d   :  { %v2492_v10 = vadd.f32 %v2491_v53, %v2490_v4  ;;  %v6644_v56 = vadd.f32 %v2675_v0, %v2635_v11  ;;  %v6646_v17 = vperm.slane %v2581_v39, 0  ;;  %v2833_v47 = vsel %vm131_vm0, %v6584_v15, 0.0  ;;  %v3399_v4 = vld [vmem:[#allocation3 + $0x18] sm:$0xff] }
 0x40e   :  { %3387 = vst.msk [vmem:[#allocation2 + $0x38] sm:$0xff] %vm131_vm0, %v3371_v37  ;;  %v2827_v30 = vrot.slane %v2826_v27, 4  ;;  %v2500_v18 = vrot.slane %v2499_v54, 2  ;;  %v6653_v32 = vadd.f32 %v7798_v33, %v6589_v29  ;;  %v2210_v42 = vadd.f32 %v2209_v61, %v2208_v62  ;;  %3622 = vmatmul.msk.f32.gmra.mxu0 %vm131_vm0, %v3399_v4  ;;  %v7800_v0 = vld [vmem:[#allocation156_spill] sm:$0xff] }
 0x40f   :  { %v2219_v44 = vadd.f32 %v2218_v50, %v2217_v36  ;;  %v2811_v46 = vmul.f32 %v7799_v26, %v6644_v56  ;;  %v6658_v7 = vsel %vm131_vm0, %v2484_v59, 0.0  ;;  %v2493_v14 = vrot.slane %v2492_v10, 1 }
 0x410   :  { %v2828_v24 = vadd.f32 %v2827_v30, %v2826_v27  ;;  %v2501_v15 = vadd.f32 %v2500_v18, %v2499_v54  ;;  %v2582_v31 = vrot.slane %v7737_v3, 6  ;;  %v2511_v21 = vrot.slane %v2510_v12, 1  ;;  %v2450_v54 = vpop.permute.xlu2 %2449 }
 0x411   :  { %v2834_v29 = vsel %vm131_vm0, %v2811_v46, 0.0  ;;  %v2610_v62 = vmul.f32 %v6646_v17, %v6642_v20  ;;  %v2654_v61 = vrot.slane %v7740_v52, 6  ;;  %v2477_v28 = vmul.f32 %v6558_v57, %v6367_v48 }
 0x412   :  { %v2829_v36 = vrot.slane %v2828_v24, 2  ;;  %v2502_v39 = vrot.slane %v2501_v15, 1  ;;  %v2835_v53 = vadd.f32 %v2834_v29, %v2833_v47  ;;  %v6667_v59 = vperm.slane %v2582_v31, 0  ;;  %v2411_v47 = vpop.permute.xlu1 %2410 }
 0x413   :  { %v2653_v3 = vrot.slane %v7740_v52, 5  ;;  %v2233_v11 = vsel %vm880_vm7, %v2210_v42, %v6547_v51  ;;  %v6676_v50 = vmul.f32 %v7800_v0, %v6507_v35  ;;  %v2494_v6 = vadd.f32 %v2493_v14, %v2492_v10  ;;  %v7801_v42 = vld [vmem:[#allocation119_spill] sm:$0xff] }
 0x414   :  { %3709 = vset.pattern.permute.xlu2 %v4181_v25  ;;  %v2503_v37 = vadd.f32 %v2502_v39, %v2501_v15  ;;  %v2836_v27 = vrot.slane %v2835_v53, 4  ;;  %v2234_v25 = vsel %vm882_vm8, %v2219_v44, %v2233_v11  ;;  %v2512_v30 = vadd.f32 %v2511_v21, %v2510_v12 }
 0x415   :  { %v2626_v18 = vsub.f32 1.0, %v2610_v62  ;;  %v6679_v33 = vperm.slane %v2654_v61, 0  ;;  %v2612_v48 = vmul.f32 %v6667_v59, %v2450_v54  ;;  %2237 = vst.msk [vmem:[#allocation3 + $0x20] sm:$0xff] %vm131_vm0, %v2234_v25  ;;  %v2830_v52 = vadd.f32 %v2829_v36, %v2828_v24  ;;  %v7802_v62 = vld [vmem:[#allocation103_spill] sm:$0xff] }
 0x416   :  { %v2566_v51 = vsel %vm870_vm2, %v2503_v37, %v2494_v6  ;;  %v2837_v57 = vadd.f32 %v2836_v27, %v2835_v53  ;;  %v2476_v10 = vmul.f32 %v2411_v47, %v6275_v13  ;;  %v2815_v26 = vmul.f32 %v7801_v42, %v6606_v34 }
 0x417   :  { %v6687_v46 = vperm.slane %v2653_v3, 0  ;;  %v2628_v44 = vsub.f32 1.0, %v2612_v48  ;;  %v6690_v12 = vsel %vm872_vm3, %v2512_v30, %v2566_v51  ;;  %v2514_v4 = vsel %vm131_vm0, %v2477_v28, 0.0 }
 0x418   :  { %v2838_v14 = vrot.slane %v2837_v57, 2  ;;  %v2513_v15 = vsel %vm131_vm0, %v2476_v10, 0.0  ;;  %v2606_v24 = vmul.f32 %v6544_v1, %v2411_v47  ;;  %v2642_v31 = vmul.f32 %v2626_v18, %v6563_v45 }
 0x419   :  { %v2644_v21 = vmul.f32 %v2628_v44, %v6487_v55  ;;  %v2684_v29 = vmul.f32 %v6679_v33, %v2450_v54  ;;  %v2515_v34 = vadd.f32 %v2514_v4, %v2513_v15  ;;  %v2813_v61 = vmul.f32 %v7802_v62, %v6549_v38 }
 0x41a   :  { %v2831_v36 = vrot.slane %v2830_v52, 1  ;;  %v2839_v39 = vadd.f32 %v2838_v14, %v2837_v57  ;;  %v2622_v53 = vsub.f32 1.0, %v2606_v24  ;;  %v7803_v28 = vperm.slane %v7722_v2, 6  ;;  %v2424_v48 = vpop.permute.xlu1 %2423  ;;  %v7804_v57 = vld [vmem:[#allocation61_spill] sm:$0xff] }
 0x41b   :  { %v2852_v3 = vsel %vm131_vm0, %v2815_v26, 0.0  ;;  %v2682_v1 = vmul.f32 %v6687_v46, %v6642_v20  ;;  %v6705_v11 = vadd.f32 %v2684_v29, %v2644_v21  ;;  %v2516_v6 = vrot.slane %v2515_v34, 4 }
 0x41c   :  { %3131 = vperm.xlu2 %3709, %v7803_v28   ;;  %v2840_v37 = vrot.slane %v2839_v39, 1  ;;  %v2480_v27 = vmul.f32 %v6642_v20, %v6563_v45  ;;  %v2638_v25 = vmul.f32 %v2622_v53, %v6275_v13  ;;  %v2678_v30 = vmul.f32 %v6569_v5, %v2411_v47  ;;  %v3400_v18 = vld [vmem:[#allocation3 + $0x20] sm:$0xff]  ;;  %v7806_v13 = vld [vmem:[#allocation60_spill] sm:$0xff] }
 0x41d   :  { %v6711_v51 = vadd.f32 %v2682_v1, %v2642_v31  ;;  %v7805_v10 = vsub.f32 1.0, %v7804_v57  ;;  %v2517_v26 = vadd.f32 %v2516_v6, %v2515_v34  ;;  %3623 = vmatmul.msk.f32.gmra.mxu0 %vm131_vm0, %v3400_v18  ;;  %v2478_v44 = vmul.f32 %v2424_v48, %v6653_v32  ;;  %v7807_v5 = vld [vmem:[#allocation182_spill] sm:$0xff]  ;;  %v7809_v31 = vld [vmem:[#allocation112_spill] sm:$0xff] }
 0x41e   :  { %v2832_v4 = vadd.f32 %v2831_v36, %v2830_v52  ;;  %v2841_v14 = vadd.f32 %v2840_v37, %v2839_v39  ;;  %v6718_v45 = vadd.f32 %v2678_v30, %v2638_v25  ;;  %v2608_v20 = vmul.f32 %v7806_v13, %v2424_v48  ;;  %v7811_v52 = vld [vmem:[#allocation120_spill] sm:$0xff]  ;;  %v7812_v53 = vld [vmem:[#allocation130_spill] sm:$0xff] }
 0x41f   :  { %v2982_v42 = vmul.f32 %v7805_v10, %v6705_v11  ;;  %v2518_v15 = vrot.slane %v2517_v26, 2  ;;  %v2522_v24 = vsel %vm131_vm0, %v2478_v44, 0.0  ;;  %v7810_v21 = vsub.f32 1.0, %v7809_v31  ;;  %v7814_v57 = vld [vmem:[#allocation174_spill] sm:$0xff] }
 0x420   :  { %v6729_v34 = vsel %vm870_vm2, %v2841_v14, %v2832_v4  ;;  %v2814_v62 = vmul.f32 %v7811_v52, %v6718_v45  ;;  %v2524_v36 = vadd.f32 %v6574_v22, %v2522_v24  ;;  %v2624_v39 = vsub.f32 1.0, %v2608_v20 }
 0x421   :  { %v6722_v47 = vadd.f32 %v7807_v5, %v2982_v42  ;;  %v2309_v29 = vmul.f32 %v7810_v21, %v6560_v19  ;;  %v2818_v28 = vmul.f32 %v7812_v53, %v6711_v51  ;;  %v2482_v1 = vmul.f32 %v2450_v54, %v6487_v55  ;;  %v7816_v42 = vld [vmem:[#allocation34_spill] sm:$0xff]  ;;  %v7817_v55 = vld [vmem:[#allocation115_spill] sm:$0xff] }
 0x422   :  { %v7813_v6 = vsub.f32 1.0, %v6093_v23  ;;  %v2519_v25 = vadd.f32 %v2518_v15, %v2517_v26  ;;  %v2851_v19 = vsel %vm131_vm0, %v2814_v62, 0.0  ;;  %v2525_v30 = vrot.slane %v2524_v36, 4  ;;  %v7818_v15 = vld [vmem:[#allocation183_spill] sm:$0xff] }
 0x423   :  { %7808 = vst [vmem:[#allocation24_spill] sm:$0xff] %v6722_v47  ;;  %v2640_v18 = vmul.f32 %v2624_v39, %v6653_v32  ;;  %v2680_v10 = vmul.f32 %v7814_v57, %v2424_v48  ;;  %v7815_v22 = vperm.slane %v7722_v2, 7  ;;  %v2853_v14 = vadd.f32 %v2852_v3, %v2851_v19  ;;  %v2469_v32 = vpop.permute.xlu2 %2468  ;;  %v7822_v57 = vld [vmem:[#allocation185_spill] sm:$0xff] }
 0x424   :  { %v3320_v37 = vmul.f32 %v7813_v6, %v6722_v47  ;;  %v2520_v4 = vrot.slane %v2519_v25, 1  ;;  %v2365_v54 = vadd.f32 %v7817_v55, %v2309_v29  ;;  %v6748_v23 = vsel %vm131_vm0, %v2813_v61, 0.0 }
 0x425   :  { %3144 = vperm.xlu2 %3709, %v7815_v22   ;;  %v2531_v26 = vsel %vm131_vm0, %v2480_v27, 0.0  ;;  %v2526_v13 = vadd.f32 %v2525_v30, %v2524_v36  ;;  %v6751_v20 = vadd.f32 %v2680_v10, %v2640_v18  ;;  %v2854_v2 = vrot.slane %v2853_v14, 4  ;;  %v7819_v27 = vld [vmem:[#allocation189_spill] sm:$0xff]  ;;  %v7823_v22 = vld [vmem:[#allocation143_spill] sm:$0xff] }
 0x426   :  { %v3376_v44 = vadd.f32 %v7816_v42, %v3320_v37  ;;  %v2521_v48 = vadd.f32 %v2520_v4, %v2519_v25  ;;  %v2485_v5 = vmul.f32 %v2469_v32, %v2365_v54  ;;  %v2615_v24 = vmul.f32 %v7818_v15, %v2469_v32  ;;  %v7820_v37 = vld [vmem:[#allocation121_spill] sm:$0xff] }
 0x427   :  { %v6756_v3 = vsel %vm131_vm0, %v2818_v28, 0.0  ;;  %v6759_v31 = vsel %vm131_vm0, %v2482_v1, 0.0  ;;  %v2527_v61 = vrot.slane %v2526_v13, 2  ;;  %v2816_v21 = vmul.f32 %v7819_v27, %v6751_v20 }
 0x428   :  { %3392 = vst.msk [vmem:[#allocation2 + $0x60] sm:$0xff] %vm131_vm0, %v3376_v44  ;;  %v2568_v29 = vsel %vm874_vm4, %v2521_v48, %v6690_v12  ;;  %v2855_v52 = vadd.f32 %v2854_v2, %v2853_v14  ;;  %v2550_v62 = vsel %vm131_vm0, %v2485_v5, 0.0  ;;  %v2631_v36 = vsub.f32 1.0, %v2615_v24  ;;  %v633_v12 = vpop.f32.mrf.mxu3  ;;  %v7824_v14 = vld [vmem:[#allocation122_spill] sm:$0xff]  ;;  %v2443_v2 = vpop.permute.xlu1 %2442  ;;  %v7828_v5 = vld [vmem:[#allocation148_spill] sm:$0xff]  ;;  %v7830_v24 = vld [vmem:[#allocation63_spill] sm:$0xff] }
 0x429   :  { %v2528_v39 = vadd.f32 %v2527_v61, %v2526_v13  ;;  %v2860_v6 = vsel %vm131_vm0, %v2816_v21, 0.0  ;;  %v2551_v28 = vadd.f32 %v2550_v62, %v6658_v7  ;;  %v7821_v1 = vsub.f32 1.0, %v7820_v37  ;;  %v7832_v37 = vld [vmem:[#allocation67_spill] sm:$0xff] }
 0x42a   :  { %v2856_v19 = vrot.slane %v2855_v52, 2  ;;  %v2862_v30 = vadd.f32 %v6603_v40, %v2860_v6  ;;  %v2647_v18 = vmul.f32 %v2631_v36, %v2365_v54  ;;  %v2687_v10 = vmul.f32 %v7822_v57, %v2469_v32  ;;  %v7826_v40 = vld [vmem:[#allocation149_spill] sm:$0xff] }
 0x42b   :  { %v2973_v25 = vmul.f32 %v7821_v1, %v6644_v56  ;;  %v2820_v42 = vmul.f32 %v7823_v22, %v6705_v11  ;;  %v2529_v44 = vrot.slane %v2528_v39, 1  ;;  %v2552_v4 = vrot.slane %v2551_v28, 4 }
 0x42c   :  { %v2863_v7 = vrot.slane %v2862_v30, 4  ;;  %v6778_v13 = vadd.f32 %v2687_v10, %v2647_v18  ;;  %v2887_v56 = vsel %vm131_vm0, %v6676_v50, 0.0  ;;  %v7827_v54 = vsub.f32 1.0, %v7826_v40  ;;  %v7831_v50 = vld [vmem:[#allocation155_spill] sm:$0xff]  ;;  %v7835_v18 = vld [vmem:[#allocation162_spill] sm:$0xff] }
 0x42d   :  { %v6776_v55 = vadd.f32 %v7824_v14, %v2973_v25  ;;  %v2530_v32 = vadd.f32 %v2529_v44, %v2528_v39  ;;  %v7829_v11 = vsub.f32 1.0, %v7828_v5  ;;  %v3148_v61 = vmul.f32 %v7830_v24, %v6498_v16 }
 0x42e   :  { %7825 = vst [vmem:[#allocation38_spill] sm:$0xff] %v6778_v13  ;;  %v2307_v48 = vmul.f32 %v7827_v54, %v6519_v41  ;;  %v6792_v21 = vsel %vm131_vm0, %v6580_v49, 0.0  ;;  %v2857_v62 = vadd.f32 %v2856_v19, %v2855_v52  ;;  %v2553_v36 = vadd.f32 %v2552_v4, %v2551_v28  ;;  %v7833_v52 = vld [vmem:[#allocation154_spill] sm:$0xff] }
 0x42f   :  { %v2970_v15 = vmul.f32 %v7829_v11, %v6438_v43  ;;  %v2823_v6 = vmul.f32 %v7831_v50, %v6778_v13  ;;  %v2481_v41 = vmul.f32 %v2443_v2, %v7832_v37  ;;  %v6798_v39 = vsel %vm131_vm0, %v2820_v42, 0.0 }
 0x430   :  { %v6801_v1 = vsel %vm876_vm5, %v2530_v32, %v2568_v29  ;;  %v2864_v43 = vadd.f32 %v2863_v7, %v2862_v30  ;;  %v2611_v16 = vmul.f32 %v6646_v17, %v2443_v2  ;;  %v7834_v28 = vsub.f32 1.0, %v7833_v52  ;;  %v7837_v29 = vld [vmem:[#allocation151_spill] sm:$0xff]  ;;  %v7838_v17 = vld [vmem:[#allocation150_spill] sm:$0xff]  ;;  %v636_v11 = vpop.f32.mrf.mxu3  ;;  %v7843_v52 = vld [vmem:[#allocation180_spill] sm:$0xff] }
 0x431   :  { %v2888_v25 = vsel %vm131_vm0, %v2823_v6, 0.0  ;;  %v2532_v49 = vsel %vm131_vm0, %v2481_v41, 0.0  ;;  %v7836_v57 = vsub.f32 1.0, %v7835_v18  ;;  %v2363_v4 = vadd.f32 %v7837_v29, %v2307_v48 }
 0x432   :  { %v2971_v19 = vmul.f32 %v7834_v28, %v6620_v8  ;;  %v2889_v22 = vadd.f32 %v2888_v25, %v2887_v56  ;;  %v2533_v42 = vadd.f32 %v2532_v49, %v2531_v26  ;;  %v2627_v44 = vsub.f32 1.0, %v2611_v16  ;;  %v7839_v56 = vld [vmem:[#allocation167_spill] sm:$0xff]  ;;  %v3048_v49 = vpop.permute.xlu2 %3047 }
 0x433   :  { %v2974_v10 = vmul.f32 %v7836_v57, %v6455_v63  ;;  %v2858_v30 = vrot.slane %v2857_v62, 1  ;;  %v2554_v14 = vrot.slane %v2553_v36, 2  ;;  %v3026_v7 = vadd.f32 %v7838_v17, %v2970_v15  ;;  %v6822_v63 = vld [vmem:[%s7036_s10] ss:$0 sm:$0xff]  ;;  %v7840_v15 = vld [vmem:[#allocation159_spill] sm:$0xff]  ;;  %v3452_v57 = vpop.f32.mrf.mxu0 }
 0x434   :  { %v6815_v40 = vsel %vm131_vm0, %v3148_v61, 0.0  ;;  %v2865_v54 = vrot.slane %v2864_v43, 2  ;;  %v2534_v32 = vrot.slane %v2533_v42, 4  ;;  %v2643_v8 = vmul.f32 %v2627_v44, %v7832_v37  ;;  %v7841_v61 = vld [vmem:[#allocation165_spill] sm:$0xff] }
 0x435   :  { %v2683_v5 = vmul.f32 %v6687_v46, %v2443_v2  ;;  %v634_v26 = vadd.f32 %v6822_v63, %v633_v12  ;;  %v3260_v48 = vperm.slane %v7839_v56, 0  ;;  %v6827_v24 = vadd.f32 %v7840_v15, %v2971_v19  ;;  %v2456_v46 = vpop.permute.xlu1 %2455  ;;  %v7842_v2 = vld [vmem:[#allocation171_spill] sm:$0xff]  ;;  %3494 = vadd.xlane.f32.xlu1 %v7843_v52 }
 0x436   :  { %v6830_v6 = vadd.f32 %v7841_v61, %v2974_v10  ;;  %v2890_v41 = vrot.slane %v2889_v22, 4  ;;  %v2535_v37 = vadd.f32 %v2534_v32, %v2533_v42  ;;  %v3332_v25 = vperm.slane %v7842_v2, 0  ;;  %v7844_v42 = vld [vmem:[#allocation144_spill] sm:$0xff] }
 0x437   :  { %v6832_v16 = vadd.f32 %v2683_v5, %v2643_v8  ;;  %v6836_v12 = vadd.f32 %v2858_v30, %v2857_v62  ;;  %v6838_v28 = vadd.f32 %v2554_v14, %v2553_v36  ;;  %v2483_v18 = vmul.f32 %v2456_v46, %v2363_v4 }
 0x438   :  { %v2613_v19 = vmul.f32 %v6667_v59, %v2456_v46  ;;  %v6841_v10 = vadd.f32 %v2865_v54, %v2864_v43  ;;  %v2536_v44 = vrot.slane %v2535_v37, 2  ;;  %v3146_v17 = vmul.f32 %v3048_v49, %v3026_v7 }
 0x439   :  { %v2819_v29 = vmul.f32 %v7844_v42, %v6832_v16  ;;  %v2541_v32 = vsel %vm131_vm0, %v2483_v18, 0.0  ;;  %v3276_v5 = vmul.f32 %v3260_v48, %v3048_v49  ;;  %v637_v62 = vadd.f32 %v6822_v63, %v636_v11 }
 0x43a   :  { %v2629_v8 = vsub.f32 1.0, %v2613_v19  ;;  %v2891_v30 = vadd.f32 %v2890_v41, %v2889_v22  ;;  %v2537_v36 = vadd.f32 %v2536_v44, %v2535_v37  ;;  %v2542_v59 = vadd.f32 %v2541_v32, %v6759_v31 }
 0x43b   :  { %v2870_v14 = vsel %vm131_vm0, %v2819_v29, 0.0  ;;  %v2685_v15 = vmul.f32 %v6679_v33, %v2456_v46  ;;  %v3292_v61 = vsub.f32 1.0, %v3276_v5  ;;  %v3348_v35 = vmul.f32 %v3332_v25, %v3048_v49  ;;  %v7845_v33 = vld [vmem:[#allocation29_spill] sm:$0xff]  ;;  %v3455_v32 = vpop.f32.mrf.mxu0 }
 0x43c   :  { %v2871_v43 = vadd.f32 %v2870_v14, %v6756_v3  ;;  %v2645_v54 = vmul.f32 %v2629_v8, %v2363_v4  ;;  %v2538_v52 = vrot.slane %v2537_v36, 1  ;;  %v2543_v13 = vrot.slane %v2542_v59, 4 }
 0x43d   :  { %v3453_v18 = vadd.f32 %v3452_v57, %v634_v26  ;;  %v3308_v11 = vmul.f32 %v3292_v61, %v3026_v7  ;;  %v2556_v22 = vrot.slane %v6838_v28, 1  ;;  %v3054_v31 = vpop.permute.xlu1 %3053  ;;  %v3977_v44 = vmov 0  }
 0x43e   :  { %v2872_v19 = vrot.slane %v2871_v43, 4  ;;  %v6851_v47 = vadd.f32 %v2685_v15, %v2645_v54  ;;  %v2539_v41 = vadd.f32 %v2538_v52, %v2537_v36  ;;  %v2544_v37 = vadd.f32 %v2543_v13, %v2542_v59  ;;  %3711 = vset.pattern.permute.xlu1 %v3977_v44  ;;  %3712 = vset.pattern.permute.xlu0 %v3977_v44 }
 0x43f   :  { %3800 = vtanh.f32 %v3453_v18  ;;  %v3364_v46 = vadd.f32 %v3348_v35, %v3308_v11  ;;  %v3147_v26 = vmul.f32 %v3054_v31, %v6827_v24  ;;  %v2892_v49 = vrot.slane %v2891_v30, 2 }
 0x440   :  { %v2873_v3 = vadd.f32 %v2872_v19, %v2871_v43  ;;  %v2821_v4 = vmul.f32 %v7845_v33, %v6851_v47  ;;  %v2570_v7 = vsel %vm878_vm6, %v2539_v41, %v6801_v1  ;;  %v2545_v57 = vrot.slane %v2544_v37, 2 }
 0x441   :  { %v3277_v29 = vmul.f32 %v3260_v48, %v3054_v31  ;;  %v3162_v8 = vsel %vm131_vm0, %v3146_v17, 0.0  ;;  %3380 = vst.msk [vmem:[#allocation2] sm:$0xff] %vm131_vm0, %v3364_v46  ;;  %v3163_v5 = vsel %vm131_vm0, %v3147_v26, 0.0  ;;  %v3456_v36 = vadd.f32 %v3455_v32, %v637_v62 }
 0x442   :  { %v2879_v13 = vsel %vm131_vm0, %v2821_v4, 0.0  ;;  %v2546_v14 = vadd.f32 %v2545_v57, %v2544_v37  ;;  %v3164_v59 = vadd.f32 %v3163_v5, %v3162_v8  ;;  %v2874_v54 = vrot.slane %v2873_v3, 2  ;;  %v3067_v4 = vpop.permute.xlu2 %3066 }
 0x443   :  { %v2880_v35 = vadd.f32 %v2879_v13, %v6798_v39  ;;  %v3293_v43 = vsub.f32 1.0, %v3277_v29  ;;  %v3349_v15 = vmul.f32 %v3332_v25, %v3054_v31  ;;  %3802 = vtanh.f32 %v3456_v36  ;;  %v6873_v39 = vld [vmem:[%s7037_s11] ss:$0 sm:$0xff]  ;;  %s3978_s11 = smov [#allocation14]  }
 0x444   :  { %v3254_v1 = vrot.slane %v7839_v56, 2  ;;  %v2547_v61 = vrot.slane %v2546_v14, 1  ;;  %v3165_v18 = vrot.slane %v3164_v59, 4  ;;  %v2867_v19 = vrot.slane %v6841_v10, 1  ;;  %s3565_s18 = sshll.u32 %s3978_s11, 4  ;;  %s3566_s18 = int_to_ptr.vmem [resolvable:$true] %s3565_s18 }
 0x445   :  { %v3801_v48 = vpop.eup %3800  ;;  %v2881_v52 = vrot.slane %v2880_v35, 4  ;;  %v3309_v17 = vmul.f32 %v3293_v43, %v6827_v24  ;;  %v2557_v62 = vadd.f32 %v2556_v22, %v6838_v28  ;;  %v6868_v11 = vadd.f32 %v2892_v49, %v2891_v30  ;;  %v7846_v28 = vld [vmem:[#allocation187_spill] sm:$0xff] }
 0x446   :  { %v3486_v25 = vmul.f32 %v6873_v39, %v3801_v48  ;;  %v2548_v41 = vadd.f32 %v2547_v61, %v2546_v14  ;;  %v3166_v31 = vadd.f32 %v3165_v18, %v3164_v59  ;;  %v2875_v46 = vadd.f32 %v2874_v54, %v2873_v3  ;;  %v7847_v14 = vld [vmem:[#allocation190_spill] sm:$0xff]  ;;  %v3717_v61 = vld [vmem:[#allocation4] ss:$0 sm:$0xff] }
 0x447   :  { %v2882_v37 = vadd.f32 %v2881_v52, %v2880_v35  ;;  %v3365_v44 = vadd.f32 %v3349_v15, %v3309_v17  ;;  %v3149_v26 = vmul.f32 %v3067_v4, %v6776_v55  ;;  %v3279_v30 = vmul.f32 %v7846_v28, %v3067_v4  ;;  %v7848_v15 = vld [vmem:[#allocation161_spill] sm:$0xff] }
 0x448   :  { %v3496_v24 = vsel %vm131_vm0, %v3486_v25, 0.0  ;;  %v2571_v22 = vsel %vm880_vm7, %v2548_v41, %v2570_v7  ;;  %v3262_v57 = vperm.slane %v3254_v1, 0  ;;  %v3326_v29 = vrot.slane %v7842_v2, 2  ;;  %v7850_v52 = vld [vmem:[#allocation169_spill] sm:$0xff]  ;;  %v3074_v28 = vpop.permute.xlu1 %3073 }
 0x449   :  { %v2883_v49 = vrot.slane %v2882_v37, 2  ;;  %3381 = vst.msk [vmem:[#allocation2 + $0x8] sm:$0xff] %vm131_vm0, %v3365_v44  ;;  %3497 = vadd.xlane.f32.xlu0 %v3496_v24  ;;  %v3803_v32 = vpop.eup %3802  ;;  %v2572_v13 = vsel %vm882_vm8, %v2557_v62, %v2571_v22  ;;  %v3172_v3 = vsel %vm131_vm0, %v3149_v26, 0.0  ;;  %v3295_v8 = vsub.f32 1.0, %v3279_v30  ;;  %v7852_v44 = vld [vmem:[#allocation172_spill] sm:$0xff] }
 0x44a   :  { %v2844_v5 = vadd.f32 %v6748_v23, %v6792_v21  ;;  %2575 = vst.msk [vmem:[#allocation3 + $0x28] sm:$0xff] %vm131_vm0, %v2572_v13  ;;  %v3167_v36 = vrot.slane %v3166_v31, 2  ;;  %v3173_v7 = vadd.f32 %v3172_v3, %v6815_v40  ;;  %v3351_v35 = vmul.f32 %v7847_v14, %v3067_v4  ;;  %v7853_v30 = vld [vmem:[#allocation164_spill] sm:$0xff] }
 0x44b   :  { %v3487_v59 = vmul.f32 %v6873_v39, %v3803_v32  ;;  %v3311_v43 = vmul.f32 %v3295_v8, %v6776_v55  ;;  %v7849_v1 = vsub.f32 1.0, %v7848_v15  ;;  %v7851_v23 = vsub.f32 1.0, %v7850_v52  ;;  %v7854_v52 = vld [vmem:[#allocation175_spill] sm:$0xff] }
 0x44c   :  { %v2845_v54 = vrot.slane %v2844_v5, 4  ;;  %v6898_v18 = vadd.f32 %v2867_v19, %v6841_v10  ;;  %v2876_v40 = vrot.slane %v2875_v46, 1  ;;  %v3174_v17 = vrot.slane %v3173_v7, 4 }
 0x44d   :  { %v2975_v48 = vmul.f32 %v7849_v1, %v6549_v38  ;;  %v2976_v21 = vmul.f32 %v7851_v23, %v6718_v45  ;;  %v3499_v62 = vsel %vm131_vm0, %v3487_v59, 0.0  ;;  %v2884_v25 = vadd.f32 %v2883_v49, %v2882_v37  ;;  %v3080_v45 = vpop.permute.xlu2 %3079 }
 0x44e   :  { %v3367_v41 = vadd.f32 %v3351_v35, %v3311_v43  ;;  %3500 = vadd.xlane.f32.xlu2 %v3499_v62  ;;  %v2846_v55 = vadd.f32 %v2845_v54, %v2844_v5  ;;  %v2894_v38 = vrot.slane %v6868_v11, 1  ;;  %v3168_v24 = vadd.f32 %v3167_v36, %v3166_v31  ;;  %3521 = vperm.xlu1 %3711, %v3717_v61  }
 0x44f   :  { %v6902_v4 = vadd.f32 %v7852_v44, %v2976_v21  ;;  %v3175_v26 = vadd.f32 %v3174_v17, %v3173_v7  ;;  %v3031_v10 = vadd.f32 %v7853_v30, %v2975_v48  ;;  %v3334_v19 = vperm.slane %v3326_v29, 0 }
 0x450   :  { %3383 = vst.msk [vmem:[#allocation2 + $0x18] sm:$0xff] %vm131_vm0, %v3367_v41  ;;  %v2847_v22 = vrot.slane %v2846_v55, 2  ;;  %v3150_v37 = vmul.f32 %v3074_v28, %v6830_v6  ;;  %v3280_v49 = vmul.f32 %v3262_v57, %v3074_v28  ;;  %v2877_v32 = vadd.f32 %v2876_v40, %v2875_v46 }
 0x451   :  { %v3176_v13 = vrot.slane %v3175_v26, 2  ;;  %v3151_v3 = vmul.f32 %v3080_v45, %v3031_v10  ;;  %v3281_v8 = vmul.f32 %v3262_v57, %v3080_v45  ;;  %v2885_v5 = vrot.slane %v2884_v25, 1  ;;  %v3401_v7 = vld [vmem:[#allocation3 + $0x28] sm:$0xff] }
 0x452   :  { %v2848_v14 = vadd.f32 %v2847_v22, %v2846_v55  ;;  %v3180_v31 = vsel %vm131_vm0, %v3150_v37, 0.0  ;;  %v3296_v36 = vsub.f32 1.0, %v3280_v49  ;;  %v3169_v35 = vrot.slane %v3168_v24, 1  ;;  %3624 = vmatmul.msk.f32.gmra.mxu0 %vm131_vm0, %v3401_v7  ;;  %v7857_v7 = vld [vmem:[#allocation93_spill] sm:$0xff] }
 0x453   :  { %v3177_v59 = vadd.f32 %v3176_v13, %v3175_v26  ;;  %v3181_v43 = vsel %vm131_vm0, %v3151_v3, 0.0  ;;  %v3297_v29 = vsub.f32 1.0, %v3281_v8  ;;  %v3352_v46 = vmul.f32 %v3334_v19, %v3074_v28  ;;  %v3087_v26 = vpop.permute.xlu1 %3086 }
 0x454   :  { %v2849_v54 = vrot.slane %v2848_v14, 1  ;;  %v3312_v15 = vmul.f32 %v3296_v36, %v6830_v6  ;;  %v3182_v1 = vadd.f32 %v3181_v43, %v3180_v31  ;;  %v3353_v61 = vmul.f32 %v3334_v19, %v3080_v45  ;;  %v7856_v31 = vld [vmem:[#allocation99_spill] sm:$0xff] }
 0x455   :  { %v3178_v48 = vrot.slane %v3177_v59, 1  ;;  %v3313_v57 = vmul.f32 %v3297_v29, %v3031_v10  ;;  %v3153_v23 = vmul.f32 %v7854_v52, %v6625_v9  ;;  %v2886_v21 = vadd.f32 %v2885_v5, %v2884_v25  ;;  %v7855_v10 = vld [vmem:[#allocation177_spill] sm:$0xff]  ;;  %v7859_v29 = vld [vmem:[#allocation92_spill] sm:$0xff] }
 0x456   :  { %v2850_v40 = vadd.f32 %v2849_v54, %v2848_v14  ;;  %v3368_v17 = vadd.f32 %v3352_v46, %v3312_v15  ;;  %v3183_v62 = vrot.slane %v3182_v1, 4  ;;  %v3170_v41 = vadd.f32 %v3169_v35, %v3168_v24 }
 0x457   :  { %v3179_v55 = vadd.f32 %v3178_v48, %v3177_v59  ;;  %v3369_v44 = vadd.f32 %v3353_v61, %v3313_v57  ;;  %v3256_v30 = vrot.slane %v7839_v56, 4  ;;  %v3152_v45 = vmul.f32 %v3087_v26, %v6902_v4  ;;  %v7863_v61 = vld [vmem:[#allocation178_spill] sm:$0xff] }
 0x458   :  { %v2905_v6 = vsel %vm872_vm3, %v2850_v40, %v6729_v34  ;;  %3384 = vst.msk [vmem:[#allocation2 + $0x20] sm:$0xff] %vm131_vm0, %v3368_v17  ;;  %v3184_v28 = vadd.f32 %v3183_v62, %v3182_v1  ;;  %v3282_v9 = vmul.f32 %v7855_v10, %v3087_v26  ;;  %v2895_v25 = vadd.f32 %v2894_v38, %v6868_v11  ;;  %v7861_v1 = vld [vmem:[#allocation30_spill] sm:$0xff] }
 0x459   :  { %v3242_v19 = vsel %vm870_vm2, %v3179_v55, %v3170_v41  ;;  %v2906_v24 = vsel %vm874_vm4, %v6836_v12, %v2905_v6  ;;  %3385 = vst.msk [vmem:[#allocation2 + $0x28] sm:$0xff] %vm131_vm0, %v3369_v44  ;;  %v3190_v22 = vsel %vm131_vm0, %v3153_v23, 0.0  ;;  %v3189_v49 = vsel %vm131_vm0, %v3152_v45, 0.0 }
 0x45a   :  { %v2907_v34 = vsel %vm876_vm5, %v6898_v18, %v2906_v24  ;;  %v3185_v37 = vrot.slane %v3184_v28, 2  ;;  %v3298_v13 = vsub.f32 1.0, %v3282_v9  ;;  %v3191_v8 = vadd.f32 %v3190_v22, %v3189_v49 }
 0x45b   :  { %v2908_v3 = vsel %vm878_vm6, %v2877_v32, %v2907_v34  ;;  %v3264_v11 = vperm.slane %v3256_v30, 0  ;;  %v3328_v38 = vrot.slane %v7842_v2, 4  ;;  %v3354_v36 = vmul.f32 %v7856_v31, %v3087_v26 }
 0x45c   :  { %v2909_v5 = vsel %vm880_vm7, %v2886_v21, %v2908_v3  ;;  %v3186_v12 = vadd.f32 %v3185_v37, %v3184_v28  ;;  %v3314_v14 = vmul.f32 %v3298_v13, %v6902_v4  ;;  %v7858_v35 = vrot.slane %v7857_v7, 5  ;;  %v3100_v21 = vpop.permute.xlu2 %3099 }
 0x45d   :  { %v3192_v59 = vrot.slane %v3191_v8, 4  ;;  %v2910_v43 = vsel %vm882_vm8, %v2895_v25, %v2909_v5  ;;  %v7860_v54 = vrot.slane %v7859_v29, 4  ;;  %v7862_v48 = vsub.f32 1.0, %v7861_v1 }
 0x45e   :  { %v2927_v18 = vperm.slane %v7858_v35, 0  ;;  %v3187_v15 = vrot.slane %v3186_v12, 1  ;;  %v3370_v46 = vadd.f32 %v3354_v36, %v3314_v14  ;;  %2913 = vst.msk [vmem:[#allocation3 + $0x30] sm:$0xff] %vm131_vm0, %v2910_v43  ;;  %v2991_v4 = vrot.slane %v7859_v29, 5 }
 0x45f   :  { %v2998_v32 = vperm.slane %v7860_v54, 0  ;;  %v2978_v57 = vmul.f32 %v7862_v48, %v6751_v20  ;;  %v2963_v52 = vsub.f32 1.0, %v7863_v61  ;;  %v3193_v23 = vadd.f32 %v3192_v59, %v3191_v8 }
 0x460   :  { %v3188_v17 = vadd.f32 %v3187_v15, %v3186_v12  ;;  %3386 = vst.msk [vmem:[#allocation2 + $0x30] sm:$0xff] %vm131_vm0, %v3370_v46  ;;  %v3336_v62 = vperm.slane %v3328_v38, 0  ;;  %v3284_v41 = vmul.f32 %v3264_v11, %v3100_v21  ;;  %v2948_v55 = vmul.f32 %v2927_v18, %v7812_v53 }
 0x461   :  { %v3018_v40 = vmul.f32 %v2998_v32, %v7819_v27  ;;  %v3194_v44 = vrot.slane %v3193_v23, 2  ;;  %v3257_v26 = vrot.slane %v7839_v56, 5  ;;  %v2979_v28 = vmul.f32 %v2963_v52, %v6373_v58 }
 0x462   :  { %v3243_v20 = vsel %vm872_vm3, %v3188_v17, %v3242_v19  ;;  %v3300_v6 = vsub.f32 1.0, %v3284_v41  ;;  %v2999_v45 = vperm.slane %v2991_v4, 0  ;;  %v3019_v27 = vmul.f32 %v2998_v32, %v7779_v60 }
 0x463   :  { %v3034_v30 = vadd.f32 %v3018_v40, %v2978_v57  ;;  %v3195_v10 = vadd.f32 %v3194_v44, %v3193_v23  ;;  %v2949_v9 = vmul.f32 %v2927_v18, %v7844_v42  ;;  %v3356_v24 = vmul.f32 %v3336_v62, %v3100_v21  ;;  %v3106_v38 = vpop.permute.xlu1 %3105 }
 0x464   :  { %v2964_v22 = vsub.f32 1.0, %v2948_v55  ;;  %v3265_v49 = vperm.slane %v3257_v26, 0  ;;  %v3329_v13 = vrot.slane %v7842_v2, 5  ;;  %v3035_v8 = vadd.f32 %v3019_v27, %v2979_v28 }
 0x465   :  { %v3316_v25 = vmul.f32 %v3300_v6, %v3034_v30  ;;  %v3196_v34 = vrot.slane %v3195_v10, 1  ;;  %v3402_v37 = vld [vmem:[#allocation3 + $0x30] sm:$0xff]  ;;  %v3154_v19 = vmul.f32 %v3100_v21, %v3034_v30  ;;  %v2965_v12 = vsub.f32 1.0, %v2949_v9 }
 0x466   :  { %3625 = vmatmul.msk.f32.gmra.mxu0 %vm131_vm0, %v3402_v37  ;;  %v3113_v5 = vpop.permute.xlu2 %3112  ;;  %v2980_v60 = vmul.f32 %v2964_v22, %v6711_v51  ;;  %v3155_v14 = vmul.f32 %v3106_v38, %v3035_v8  ;;  %v3285_v31 = vmul.f32 %v3264_v11, %v3106_v38  ;;  %v3020_v36 = vmul.f32 %v2999_v45, %v7812_v53  ;;  %v7864_v11 = vld [vmem:[#allocation47_spill] sm:$0xff] }
 0x467   :  { %v3372_v3 = vadd.f32 %v3356_v24, %v3316_v25  ;;  %v3197_v58 = vadd.f32 %v3196_v34, %v3195_v10  ;;  %v3337_v18 = vperm.slane %v3329_v13, 0  ;;  %v3286_v59 = vmul.f32 %v3265_v49, %v3113_v5  ;;  %v7865_v24 = vld [vmem:[#allocation108_spill] sm:$0xff] }
 0x468   :  { %v3198_v43 = vsel %vm131_vm0, %v3154_v19, 0.0  ;;  %v3199_v54 = vsel %vm131_vm0, %v3155_v14, 0.0  ;;  %v3301_v32 = vsub.f32 1.0, %v3285_v31  ;;  %v2981_v15 = vmul.f32 %v2965_v12, %v6832_v16 }
 0x469   :  { %3388 = vst.msk [vmem:[#allocation2 + $0x40] sm:$0xff] %vm131_vm0, %v3372_v3  ;;  %v3244_v35 = vsel %vm874_vm4, %v3197_v58, %v3243_v20  ;;  %v2921_v51 = vrot.slane %v7857_v7, 7  ;;  %v3200_v46 = vadd.f32 %v3199_v54, %v3198_v43  ;;  %v3036_v1 = vadd.f32 %v3020_v36, %v2980_v60  ;;  %v7866_v58 = vld [vmem:[#allocation24_spill] sm:$0xff]  ;;  %v7868_v36 = vld [vmem:[#allocation62_spill] sm:$0xff] }
 0x46a   :  { %v3302_v48 = vsub.f32 1.0, %v3286_v59  ;;  %v2951_v57 = vmul.f32 %v7864_v11, %v7845_v33  ;;  %v3021_v53 = vmul.f32 %v2999_v45, %v7844_v42  ;;  %v3317_v4 = vmul.f32 %v3301_v32, %v3035_v8  ;;  %v7869_v32 = vld [vmem:[#allocation81_spill] sm:$0xff] }
 0x46b   :  { %v3357_v61 = vmul.f32 %v3336_v62, %v3106_v38  ;;  %v3201_v52 = vrot.slane %v3200_v46, 4  ;;  %v3358_v21 = vmul.f32 %v3337_v18, %v3113_v5  ;;  %v3156_v17 = vmul.f32 %v3113_v5, %v3036_v1  ;;  %v7867_v38 = vld [vmem:[#allocation72_spill] sm:$0xff] }
 0x46c   :  { %v3318_v23 = vmul.f32 %v3302_v48, %v3036_v1  ;;  %v3037_v41 = vadd.f32 %v3021_v53, %v2981_v15  ;;  %v2929_v55 = vperm.slane %v2921_v51, 0  ;;  %v3119_v7 = vpop.permute.xlu1 %3118  ;;  %v2967_v26 = vsub.f32 1.0, %v2951_v57  ;;  %v7870_v48 = vld [vmem:[#allocation38_spill] sm:$0xff] }
 0x46d   :  { %v3373_v40 = vadd.f32 %v3357_v61, %v3317_v4  ;;  %v3202_v16 = vadd.f32 %v3201_v52, %v3200_v46  ;;  %v3287_v30 = vmul.f32 %v3265_v49, %v3119_v7  ;;  %v3207_v42 = vsel %vm131_vm0, %v3156_v17, 0.0 }
 0x46e   :  { %v3374_v44 = vadd.f32 %v3358_v21, %v3318_v23  ;;  %v3157_v20 = vmul.f32 %v3119_v7, %v3037_v41  ;;  %v2983_v45 = vmul.f32 %v2967_v26, %v6851_v47  ;;  %v2993_v10 = vrot.slane %v7859_v29, 7 }
 0x46f   :  { %3389 = vst.msk [vmem:[#allocation2 + $0x48] sm:$0xff] %vm131_vm0, %v3373_v40  ;;  %v3203_v6 = vrot.slane %v3202_v16, 2  ;;  %v3303_v28 = vsub.f32 1.0, %v3287_v30  ;;  %v2952_v27 = vmul.f32 %v2929_v55, %v7800_v0  ;;  %v3023_v22 = vmul.f32 %v7865_v24, %v7845_v33 }
 0x470   :  { %3390 = vst.msk [vmem:[#allocation2 + $0x50] sm:$0xff] %vm131_vm0, %v3374_v44  ;;  %v3208_v62 = vsel %vm131_vm0, %v3157_v20, 0.0  ;;  %v2953_v34 = vmul.f32 %v2929_v55, %v7831_v50  ;;  %v3359_v49 = vmul.f32 %v3337_v18, %v3119_v7  ;;  %v3158_v47 = vmul.f32 %v7867_v38, %v7866_v58 }
 0x471   :  { %v3204_v9 = vadd.f32 %v3203_v6, %v3202_v16  ;;  %v3209_v25 = vadd.f32 %v3208_v62, %v3207_v42  ;;  %v3319_v37 = vmul.f32 %v3303_v28, %v3037_v41  ;;  %v3039_v8 = vadd.f32 %v3023_v22, %v2983_v45 }
 0x472   :  { %v3001_v5 = vperm.slane %v2993_v10, 0  ;;  %v2968_v29 = vsub.f32 1.0, %v2952_v27  ;;  %v2969_v31 = vsub.f32 1.0, %v2953_v34  ;;  %v3259_v18 = vrot.slane %v7839_v56, 7  ;;  %v7871_v56 = vld [vmem:[#allocation56_spill] sm:$0xff] }
 0x473   :  { %v3205_v13 = vrot.slane %v3204_v9, 1  ;;  %v3210_v19 = vrot.slane %v3209_v25, 4  ;;  %v3375_v3 = vadd.f32 %v3359_v49, %v3319_v37  ;;  %v3216_v51 = vsel %vm131_vm0, %v3158_v47, 0.0 }
 0x474   :  { %v2984_v15 = vmul.f32 %v2968_v29, %v7869_v32  ;;  %v2985_v11 = vmul.f32 %v2969_v31, %v7870_v48  ;;  %v3025_v57 = vmul.f32 %v3001_v5, %v7831_v50  ;;  %v3024_v53 = vmul.f32 %v3001_v5, %v7800_v0  ;;  %v639_v5 = vpop.f32.mrf.mxu3 }
 0x475   :  { %v3206_v60 = vadd.f32 %v3205_v13, %v3204_v9  ;;  %v3211_v12 = vadd.f32 %v3210_v19, %v3209_v25  ;;  %3391 = vst.msk [vmem:[#allocation2 + $0x58] sm:$0xff] %vm131_vm0, %v3375_v3  ;;  %v3331_v21 = vrot.slane %v7842_v2, 7 }
 0x476   :  { %v3132_v14 = vpop.permute.xlu2 %3131  ;;  %v3040_v55 = vadd.f32 %v3024_v53, %v2984_v15  ;;  %v3041_v16 = vadd.f32 %v3025_v57, %v2985_v11 }
 0x477   :  { %v3159_v33 = vmul.f32 %v3132_v14, %v3039_v8  ;;  %v3289_v59 = vmul.f32 %v7868_v36, %v3132_v14  ;;  %v3245_v43 = vsel %vm876_vm5, %v3206_v60, %v3244_v35  ;;  %v3212_v54 = vrot.slane %v3211_v12, 2 }
 0x478   :  { %v3361_v23 = vmul.f32 %v7871_v56, %v3132_v14  ;;  %v3267_v35 = vperm.slane %v3259_v18, 0  ;;  %v3339_v0 = vperm.slane %v3331_v21, 0 }
 0x479   :  { %v3217_v46 = vsel %vm131_vm0, %v3159_v33, 0.0  ;;  %v3305_v1 = vsub.f32 1.0, %v3289_v59  ;;  %v3213_v4 = vadd.f32 %v3212_v54, %v3211_v12  ;;  %v640_v12 = vadd.f32 %v6822_v63, %v639_v5 }
 0x47a   :  { %v3218_v61 = vadd.f32 %v3217_v46, %v3216_v51 }
 0x47b   :  { %v3321_v52 = vmul.f32 %v3305_v1, %v3039_v8  ;;  %v3214_v40 = vrot.slane %v3213_v4, 1 }
 0x47c   :  { %v3219_v17 = vrot.slane %v3218_v61, 4  ;;  %v642_v59 = vpop.f32.mrf.mxu3 }
 0x47d   :  { %v3377_v41 = vadd.f32 %v3361_v23, %v3321_v52  ;;  %v3215_v44 = vadd.f32 %v3214_v40, %v3213_v4  ;;  %v3139_v26 = vpop.permute.xlu1 %3138  ;;  %v643_v54 = vadd.f32 %v6822_v63, %v642_v59 }
 0x47e   :  { %v3220_v7 = vadd.f32 %v3219_v17, %v3218_v61  ;;  %v3160_v50 = vmul.f32 %v3139_v26, %v3040_v55  ;;  %v3290_v30 = vmul.f32 %v3267_v35, %v3139_v26  ;;  %v3362_v22 = vmul.f32 %v3339_v0, %v3139_v26 }
 0x47f   :  { %v3145_v20 = vpop.permute.xlu2 %3144  ;;  %3393 = vst.msk [vmem:[#allocation2 + $0x68] sm:$0xff] %vm131_vm0, %v3377_v41  ;;  %v3246_v42 = vsel %vm878_vm6, %v3215_v44, %v3245_v43 }
 0x480   :  { %v3161_v6 = vmul.f32 %v3145_v20, %v3041_v16  ;;  %v3221_v62 = vrot.slane %v3220_v7, 2  ;;  %v3291_v28 = vmul.f32 %v3267_v35, %v3145_v20  ;;  %v3225_v2 = vsel %vm131_vm0, %v3160_v50, 0.0 }
 0x481   :  { %v3306_v45 = vsub.f32 1.0, %v3290_v30  ;;  %v3363_v13 = vmul.f32 %v3339_v0, %v3145_v20 }
 0x482   :  { %v3226_v10 = vsel %vm131_vm0, %v3161_v6, 0.0  ;;  %v3222_v27 = vadd.f32 %v3221_v62, %v3220_v7  ;;  %v3307_v25 = vsub.f32 1.0, %v3291_v28 }
 0x483   :  { %v3227_v9 = vadd.f32 %v3226_v10, %v3225_v2  ;;  %v3322_v24 = vmul.f32 %v3306_v45, %v3040_v55 }
 0x484   :  { %v3223_v34 = vrot.slane %v3222_v27, 1  ;;  %v3323_v49 = vmul.f32 %v3307_v25, %v3041_v16  ;;  %v645_v57 = vpop.f32.mrf.mxu3 }
 0x485   :  { %v3228_v37 = vrot.slane %v3227_v9, 4  ;;  %v3378_v19 = vadd.f32 %v3362_v22, %v3322_v24  ;;  %v646_v53 = vadd.f32 %v6822_v63, %v645_v57 }
 0x486   :  { %v3224_v3 = vadd.f32 %v3223_v34, %v3222_v27  ;;  %v3379_v58 = vadd.f32 %v3363_v13, %v3323_v49 }
 0x487   :  { %v3229_v8 = vadd.f32 %v3228_v37, %v3227_v9  ;;  %3394 = vst.msk [vmem:[#allocation2 + $0x70] sm:$0xff] %vm131_vm0, %v3378_v19  ;;  %v7872_v9 = vlaneseq }
 0x488   :  { %v3247_v38 = vsel %vm880_vm7, %v3224_v3, %v3246_v42  ;;  %3395 = vst.msk [vmem:[#allocation2 + $0x78] sm:$0xff] %vm131_vm0, %v3379_v58 }
 0x489   :  { %v3230_v47 = vrot.slane %v3229_v8, 2  ;;  %v3541_v25 = vand.u32 127, %v7872_v9 }
 0x48b   :  { %v3231_v29 = vadd.f32 %v3230_v47, %v3229_v8  ;;  %v3458_v31 = vpop.f32.mrf.mxu0 }
 0x48c   :  { %v3459_v36 = vadd.f32 %v3458_v31, %v640_v12  ;;  %v648_v35 = vpop.f32.mrf.mxu3 }
 0x48d   :  { %v3232_v60 = vrot.slane %v3231_v29, 1  ;;  %v649_v21 = vadd.f32 %v6822_v63, %v648_v35 }
 0x48e   :  { %3804 = vtanh.f32 %v3459_v36 }
 0x48f   :  { %v3233_v14 = vadd.f32 %v3232_v60, %v3231_v29 }
 0x491   :  { %v3248_v33 = vsel %vm882_vm8, %v3233_v14, %v3247_v38 }
 0x492   :  { %3251 = vst.msk [vmem:[#allocation3 + $0x38] sm:$0xff] %vm131_vm0, %v3248_v33 }
 0x494   :  { %v3805_v18 = vpop.eup %3804  ;;  %v651_v44 = vpop.f32.mrf.mxu3 }
 0x495   :  { %v3488_v32 = vmul.f32 %v6873_v39, %v3805_v18  ;;  %v652_v7 = vadd.f32 %v6822_v63, %v651_v44 }
 0x497   :  { %v3502_v15 = vsel %vm131_vm0, %v3488_v32, 0.0 }
 0x498   :  { %3503 = vadd.xlane.f32.xlu2 %v3502_v15 }
 0x499   :  { %v3403_v43 = vld [vmem:[#allocation3 + $0x38] sm:$0xff] }
 0x49a   :  { %3626 = vmatmul.msk.f32.gmra.mxu0 %vm131_vm0, %v3403_v43  ;;  %v3461_v51 = vpop.f32.mrf.mxu0 }
 0x49b   :  { %v3462_v46 = vadd.f32 %v3461_v51, %v643_v54 }
 0x49d   :  { %3806 = vtanh.f32 %v3462_v46 }
 0x4a3   :  { %v3807_v1 = vpop.eup %3806 }
 0x4a4   :  { %v3489_v48 = vmul.f32 %v6873_v39, %v3807_v1 }
 0x4a6   :  { %v3505_v11 = vsel %vm131_vm0, %v3489_v48, 0.0 }
 0x4a7   :  { %3506 = vadd.xlane.f32.xlu0 %v3505_v11 }
 0x4a8   :  { %v3495_v62 = vpop.xlane.xlu1 %3494 }
 0x4bc   :  { %v3498_v42 = vpop.xlane.xlu0 %3497 }
 0x4c0   :  { %v3522_v45 = vpop.permute.xlu1 %3521 }
 0x4c1   :  { %v3501_v6 = vpop.xlane.xlu2 %3500  ;;  %v3524_v10 = vadd.f32 %v3522_v45, %v3495_v62  ;;  %v3525_v27 = vadd.f32 %v3522_v45, %v3498_v42 }
 0x4c2   :  { %v3526_v63 = vadd.f32 %v3522_v45, %v3501_v6 }
 0x4c3   :  { %v3542_v34 = vperm.slane %v3524_v10, %v3541_v25  ;;  %v3543_v37 = vperm.slane %v3525_v27, %v3541_v25 }
 0x4c4   :  { %v3544_v19 = vperm.slane %v3526_v63, %v3541_v25 }
 0x4c5   :  { %v3550_v58 = vsel %vm870_vm2, %v3543_v37, %v3542_v34 }
 0x4c6   :  { %v3551_v5 = vsel %vm872_vm3, %v3544_v19, %v3550_v58 }
 0x4cf   :  { %v3464_v4 = vpop.f32.mrf.mxu0 }
 0x4d0   :  { %v3465_v61 = vadd.f32 %v3464_v4, %v646_v53 }
 0x4d2   :  { %3808 = vtanh.f32 %v3465_v61 }
 0x4d8   :  { %v3809_v52 = vpop.eup %3808 }
 0x4d9   :  { %v3490_v56 = vmul.f32 %v6873_v39, %v3809_v52 }
 0x4db   :  { %v3508_v23 = vsel %vm131_vm0, %v3490_v56, 0.0 }
 0x4dc   :  { %3509 = vadd.xlane.f32.xlu2 %v3508_v23 }
 0x4e3   :  { %v3467_v40 = vpop.f32.mrf.mxu0 }
 0x4e4   :  { %v3468_v17 = vadd.f32 %v3467_v40, %v649_v21 }
 0x4e6   :  { %3810 = vtanh.f32 %v3468_v17 }
 0x4ec   :  { %v3811_v41 = vpop.eup %3810 }
 0x4ed   :  { %v3491_v55 = vmul.f32 %v6873_v39, %v3811_v41 }
 0x4ef   :  { %v3511_v16 = vsel %vm131_vm0, %v3491_v55, 0.0 }
 0x4f0   :  { %3512 = vadd.xlane.f32.xlu0 %v3511_v16 }
 0x50b   :  { %v3504_v28 = vpop.xlane.xlu2 %3503 }
 0x50c   :  { %v3527_v22 = vadd.f32 %v3522_v45, %v3504_v28 }
 0x50e   :  { %v3545_v8 = vperm.slane %v3527_v22, %v3541_v25 }
 0x510   :  { %v3552_v12 = vsel %vm874_vm4, %v3545_v8, %v3551_v5 }
 0x517   :  { %v3470_v26 = vpop.f32.mrf.mxu0 }
 0x518   :  { %v3471_v20 = vadd.f32 %v3470_v26, %v652_v7 }
 0x51a   :  { %3812 = vtanh.f32 %v3471_v20  ;;  %v3507_v2 = vpop.xlane.xlu0 %3506 }
 0x520   :  { %v3813_v0 = vpop.eup %3812 }
 0x521   :  { %v3492_v50 = vmul.f32 %v6873_v39, %v3813_v0  ;;  %v3528_v39 = vadd.f32 %v3522_v45, %v3507_v2 }
 0x523   :  { %v3514_v30 = vsel %vm131_vm0, %v3492_v50, 0.0  ;;  %v3546_v38 = vperm.slane %v3528_v39, %v3541_v25  ;;  %vm3558_vm0 = vcmask 64512  }
 0x524   :  { %3515 = vadd.xlane.f32.xlu2 %v3514_v30 }
 0x525   :  { %v3553_v31 = vsel %vm876_vm5, %v3546_v38, %v3552_v12 }
 0x54f   :  { %v3510_v24 = vpop.xlane.xlu2 %3509 }
 0x550   :  { %v3529_v13 = vadd.f32 %v3522_v45, %v3510_v24 }
 0x552   :  { %v3547_v47 = vperm.slane %v3529_v13, %v3541_v25 }
 0x554   :  { %v3554_v33 = vsel %vm878_vm6, %v3547_v47, %v3553_v31 }
 0x563   :  { %v3513_v49 = vpop.xlane.xlu0 %3512 }
 0x564   :  { %v3530_v3 = vadd.f32 %v3522_v45, %v3513_v49 }
 0x566   :  { %v3548_v29 = vperm.slane %v3530_v3, %v3541_v25 }
 0x568   :  { %v3555_v59 = vsel %vm880_vm7, %v3548_v29, %v3554_v33 }
 0x597   :  { %v3516_v60 = vpop.xlane.xlu2 %3515 }
 0x598   :  { %v3531_v14 = vadd.f32 %v3522_v45, %v3516_v60 }
 0x59a   :  { %v3549_v36 = vperm.slane %v3531_v14, %v3541_v25 }
 0x59c   :  { %v3556_v18 = vsel %vm882_vm8, %v3549_v36, %v3555_v59 }
 0x59d   :  { %3559 = vst.msk [vmem:[#allocation14] sm:$0xff] %vm3558_vm0, %v3556_v18 }
 0x59e   :  { %3570 = dma.vmem_to_hbm [thread:$0]  %s3566_s18, 128, %s3568_s2, [#allocation7]  }
 0x59f   :  { %3968 = dma.done.wait [#allocation7], 128  }
 0x5a0   :  { %3969 = vsyncadd [#allocation7], 4294967168 }
 0x5a1   :  { %3575 = vsyncpa [#allocation6], 1 }
 0x5a2   :  { %3576 = vsyncpa [#allocation9], 1 }
 0x5a3   :  { %3577 = vsyncpa [#allocation12], 1 }
 0x5a4   :  { %3578 = vsyncpa [#allocation7], 1 }

</bundles_post_ra>
